<compile_context>
chip_gen: v5e
topology: v5e:2x2
jax: 0.10.0
libtpu: 0.0.40
codegen_flags: <defaults>
</compile_context>

<pallas_src>
import functools
import math

import jax
import jax.numpy as jnp
from jax.experimental import pallas as pl
from jax.experimental.pallas import tpu as pltpu

DIM_Z = 512          # fixed by StyleGAN2Wrapper (self.dim_z = 512)
STYLE_DIM = 512
CH = 64              # base feature channels
SIZE = 4             # single 4x4 synthesis block (conv1 / to_rgb1)
HW = SIZE * SIZE
KK = 9               # 3x3 kernel taps
LR_MLP = 0.01
SQRT2 = math.sqrt(2.0)
LANE = 128           # lane-dense padded channel width

_VMEM = pl.BlockSpec(memory_space=pltpu.MemorySpace.VMEM)


# ------------------------------ kernel bodies ------------------------------

def _mapping_body(z, mw1_ref, mb1_ref, mw2_ref, mb2_ref):
    """PixelNorm + 2x EqualLinear(fused leaky-relu); scales folded into weights."""
    x = z.astype(jnp.float32)
    x = x * jax.lax.rsqrt(jnp.mean(x * x, axis=-1, keepdims=True) + 1e-8)
    h = jnp.dot(x.astype(jnp.bfloat16), mw1_ref[...],
                preferred_element_type=jnp.float32) + mb1_ref[...]
    h = jnp.where(h >= 0.0, h, 0.2 * h) * SQRT2
    h = jnp.dot(h.astype(jnp.bfloat16), mw2_ref[...],
                preferred_element_type=jnp.float32) + mb2_ref[...]
    h = jnp.where(h >= 0.0, h, 0.2 * h) * SQRT2
    return h


def _synthesis_body(w, modw_ref, modb_ref, patches_ref, cw_ref, cwsq_ref,
                    nb_ref, rgbmask_ref, rgbw_ref, rgbb_ref, o_ref):
    """Styles (B rows) + modulated 3x3 conv (demod) + noise/bias/lrelu + ToRGB."""
    B = w.shape[0]
    R = B * HW

    # Both modulation EqualLinears as one concatenated (512, 256) bf16 matmul at
    # BATCH granularity. Lanes [0,128) hold the ToRGB style, [128,256) the conv1
    # style (each padded from CH=64 to 128 so all slices are vreg-aligned).
    s = jnp.dot(w.astype(jnp.bfloat16), modw_ref[...],
                preferred_element_type=jnp.float32) + modb_ref[...]          # (B, 256)
    s_rgb = s[:, :LANE]                                                       # (B, 128)
    s_conv = s[:, LANE:]                                                      # (B, 128)

    # Demodulation per (sample, out-channel): rsqrt(sum_c s^2 * sum_k W^2 + eps).
    # Reduced-K (128) f32 matmul; kept f32 so squaring small styles can't
    # underflow toward the eps floor.
    d = jax.lax.rsqrt(jnp.dot(s_conv * s_conv, cwsq_ref[...],
                              preferred_element_type=jnp.float32) + 1e-8)     # (B, 128)

    # Modulated 3x3 conv = 9 accumulating (R, C) x (C, LANE) bf16 matmuls.
    # The per-input-channel modulation is a broadcast multiply of the shared
    # per-tap patches (HW, C) by the per-sample style (B, C).
    feat = jnp.zeros((R, LANE), jnp.float32)
    for k in range(KK):
        p_mod = (patches_ref[k][None, :, :] * s_conv[:, None, :]).reshape(R, LANE)
        feat = feat + jnp.dot(p_mod.astype(jnp.bfloat16), cw_ref[k],
                              preferred_element_type=jnp.float32)

    # demod scale + (noise_strength*noise + bias) + fused leaky relu (all f32).
    feat = feat.reshape(B, HW, LANE) * d[:, None, :] + nb_ref[...][None]
    feat = jnp.where(feat >= 0.0, feat, 0.2 * feat) * SQRT2

    # ToRGB: 1x1 modulated conv (no demodulation), fed directly from feat.
    feat_mod = (feat * (s_rgb * rgbmask_ref[...])[:, None, :]).reshape(R, LANE)
    img = jnp.dot(feat_mod.astype(jnp.bfloat16), rgbw_ref[...],
                  preferred_element_type=jnp.float32) + rgbb_ref[...]         # (R, 128)
    o_ref[...] = img


# ------------------------------ Pallas kernels ------------------------------

def _fused_forward_kernel(z_ref, mw1_ref, mb1_ref, mw2_ref, mb2_ref,
                          modw_ref, modb_ref, patches_ref, cw_ref, cwsq_ref,
                          nb_ref, rgbmask_ref, rgbw_ref, rgbb_ref, o_ref):
    """z -> image in a single kernel (mapping fused into synthesis)."""
    w = _mapping_body(z_ref[...], mw1_ref, mb1_ref, mw2_ref, mb2_ref)
    _synthesis_body(w, modw_ref, modb_ref, patches_ref, cw_ref, cwsq_ref,
                    nb_ref, rgbmask_ref, rgbw_ref, rgbb_ref, o_ref)


def _synthesis_only_kernel(w_ref, modw_ref, modb_ref, patches_ref, cw_ref,
                           cwsq_ref, nb_ref, rgbmask_ref, rgbw_ref, rgbb_ref,
                           o_ref):
    """w (latent) -> image."""
    _synthesis_body(w_ref[...].astype(jnp.float32), modw_ref, modb_ref,
                    patches_ref, cw_ref, cwsq_ref, nb_ref, rgbmask_ref,
                    rgbw_ref, rgbb_ref, o_ref)


def _mapping_only_kernel(z_ref, mw1_ref, mb1_ref, mw2_ref, mb2_ref, o_ref):
    """z -> w (get_latent)."""
    o_ref[...] = _mapping_body(z_ref[...], mw1_ref, mb1_ref, mw2_ref, mb2_ref)


# ------------------------------ kernel wrappers ------------------------------

def _synth_args(params):
    return (params["mod_wcat"], params["mod_bcat"], params["patches"],
            params["conv1_w"], params["conv1_wsq"], params["noise_bias"],
            params["rgb_modmask"], params["rgb_w"], params["rgb_bias"])


@functools.partial(jax.jit, static_argnames=("input_is_latent",))
def _forward_jit(params, x, input_is_latent=False):
    B = x.shape[0]
    R = B * HW
    out_shape = jax.ShapeDtypeStruct((R, LANE), jnp.float32)
    # TODO(synk): for large batches add a row-blocked grid with
    # dimension_semantics=("parallel",) so v7x's second TensorCore is used.
    if input_is_latent:
        out = pl.pallas_call(
            _synthesis_only_kernel, out_shape=out_shape,
            in_specs=[_VMEM] * 10, out_specs=_VMEM,
        )(x, *_synth_args(params))
    else:
        out = pl.pallas_call(
            _fused_forward_kernel, out_shape=out_shape,
            in_specs=[_VMEM] * 14, out_specs=_VMEM,
        )(x, params["map_w1"], params["map_b1"], params["map_w2"],
          params["map_b2"], *_synth_args(params))
    # Lane-dense (R, 128) slab -> (B, 3, H, W) NCHW image.
    img = out[:, :3].reshape(B, SIZE, SIZE, 3).transpose(0, 3, 1, 2)
    return img


@jax.jit
def _get_latent_jit(params, z):
    return pl.pallas_call(
        _mapping_only_kernel,
        out_shape=jax.ShapeDtypeStruct((z.shape[0], STYLE_DIM), jnp.float32),
        in_specs=[_VMEM] * 5, out_specs=_VMEM,
    )(z, params["map_w1"], params["map_b1"], params["map_w2"], params["map_b2"])


# ------------------------------ init / glue ------------------------------

def _im2col_kmajor(x_chw, k, pad):
    """(C, H, W) -> (k*k, H*W, C): per-tap, pixel-major, channel-minor patches."""
    C, H, W = x_chw.shape
    xp = jnp.pad(x_chw, ((0, 0), (pad, pad), (pad, pad)))
    taps = []
    for kh in range(k):
        for kw in range(k):
            taps.append(xp[:, kh:kh + H, kw:kw + W].reshape(C, H * W).T)  # (HW, C)
    return jnp.stack(taps, axis=0)                                        # (KK, HW, C)


def init_params(key):
    keys = jax.random.split(key, 8)
    p = {}

    # ---- mapping net: PixelNorm + 2x EqualLinear(fused_lrelu, lr_mul=0.01) ----
    map_scale = (1.0 / math.sqrt(STYLE_DIM)) * LR_MLP        # EqualLinear scale
    w1 = jax.random.normal(keys[0], (STYLE_DIM, DIM_Z), jnp.float32) / LR_MLP
    w2 = jax.random.normal(keys[1], (STYLE_DIM, STYLE_DIM), jnp.float32) / LR_MLP
    p["map_w1"] = (w1.T * map_scale).astype(jnp.bfloat16)    # scale folded in
    p["map_b1"] = jnp.zeros((1, STYLE_DIM), jnp.float32)     # bias*lr_mul folded
    p["map_w2"] = (w2.T * map_scale).astype(jnp.bfloat16)
    p["map_b2"] = jnp.zeros((1, STYLE_DIM), jnp.float32)

    # ---- ConstantInput (CH, 4, 4) -> shared per-tap im2col patches ----
    const = jax.random.normal(keys[2], (CH, SIZE, SIZE), jnp.float32)
    pat = _im2col_kmajor(const, 3, 1)                                     # (KK, HW, CH)
    p["patches"] = jnp.zeros((KK, HW, LANE), jnp.float32).at[:, :, :CH].set(pat)

    # ---- style modulation EqualLinears (bias_init=1), mod_scale folded ----
    mod_scale = 1.0 / math.sqrt(STYLE_DIM)
    mod_conv = jax.random.normal(keys[3], (CH, STYLE_DIM), jnp.float32)   # conv1
    mod_rgb = jax.random.normal(keys[4], (CH, STYLE_DIM), jnp.float32)    # to_rgb1
    modw = jnp.zeros((STYLE_DIM, 2 * LANE), jnp.float32)
    modw = modw.at[:, :CH].set(mod_rgb.T * mod_scale)                     # rgb style
    modw = modw.at[:, LANE:LANE + CH].set(mod_conv.T * mod_scale)         # conv style
    p["mod_wcat"] = modw.astype(jnp.bfloat16)
    modb = jnp.zeros((1, 2 * LANE), jnp.float32)
    modb = modb.at[:, :CH].set(1.0).at[:, LANE:LANE + CH].set(1.0)
    p["mod_bcat"] = modb

    # ---- conv1: modulated/demodulated 3x3 conv, scale folded into weights ----
    conv1_w = jax.random.normal(keys[5], (CH, CH, 3, 3), jnp.float32)     # (out,in,kh,kw)
    conv1_scale = 1.0 / math.sqrt(CH * KK)
    w_taps = conv1_w.transpose(2, 3, 1, 0).reshape(KK, CH, CH) * conv1_scale  # (k,in,out)
    cw = jnp.zeros((KK, LANE, LANE), jnp.float32).at[:, :CH, :CH].set(w_taps)
    p["conv1_w"] = cw.astype(jnp.bfloat16)
    # reduced demod weight: scale^2 * sum_k W[o,c,k]^2, laid out (in, out)
    wsq = (conv1_w ** 2).sum(axis=(2, 3)).T * (conv1_scale ** 2)          # (in, out)
    p["conv1_wsq"] = jnp.zeros((LANE, LANE), jnp.float32).at[:CH, :CH].set(wsq)

    # ---- noise injection + conv bias folded into one (HW, LANE) constant ----
    noise = jax.random.normal(keys[6], (HW, 1), jnp.float32)
    noise_strength = jnp.float32(0.0)          # NoiseInjection weight init (zeros)
    nb = jnp.zeros((HW, LANE), jnp.float32)
    nb = nb.at[:, :CH].set(jnp.broadcast_to(noise_strength * noise, (HW, CH)))
    p["noise_bias"] = nb                       # conv1 bias (zeros) already included

    # ---- to_rgb1: 1x1 modulated conv (no demodulate) ----
    rgb_w = jax.random.normal(keys[7], (3, CH), jnp.float32)
    rgbw = jnp.zeros((LANE, LANE), jnp.float32).at[:CH, :3].set(rgb_w.T)
    p["rgb_w"] = rgbw.astype(jnp.bfloat16)
    p["rgb_bias"] = jnp.zeros((1, LANE), jnp.float32)
    rgbmask = jnp.zeros((1, LANE), jnp.float32).at[:, :CH].set(1.0 / math.sqrt(CH))
    p["rgb_modmask"] = rgbmask                 # rgb scale baked into the style mask
    return p


class StyleGAN2WrapperPallas:
    """Pallas analogue of gan_models/gan_load.py::StyleGAN2Wrapper."""

    def __init__(self, params, shift_in_w=True):
        self.params = params
        self.shift_in_w = shift_in_w
        self.dim_z = DIM_Z
        self.dim_shift = STYLE_DIM if shift_in_w else self.dim_z

    def get_latent(self, z):
        return _get_latent_jit(self.params, z)

    def forward(self, x, input_is_latent=False):
        return _forward_jit(self.params, x, input_is_latent=input_is_latent)

    __call__ = forward

    def gen_shifted(self, z, shift):
        if self.shift_in_w:
            w = self.get_latent(z)
            return self.forward(w + shift, input_is_latent=True)
        else:
            return self.forward(z + shift, input_is_latent=False)


# TODO(synk): the multi-resolution upsample path (upfirdn2d blur + transposed
# conv + skip connections) is not implemented; the synthetic generator stops at
# the 4x4 conv1/to_rgb1 block. For larger resolutions keep the 9-accumulating-
# matmul conv form, add a row-tiled grid, and re-derive tiling for v7x's
# 64 MiB VMEM (vmem_limit_bytes explicitly).


if __name__ == "__main__":
    key = jax.random.PRNGKey(0)
    pkey, zkey, skey = jax.random.split(key, 3)
    params = init_params(pkey)
    g = StyleGAN2WrapperPallas(params, shift_in_w=True)

    z = jax.random.normal(zkey, (2, DIM_Z), jnp.float32)
    img = jax.block_until_ready(g.forward(z, input_is_latent=False))
    assert img.shape == (2, 3, SIZE, SIZE), img.shape

    shift = 0.1 * jax.random.normal(skey, (2, g.dim_shift), jnp.float32)
    img2 = jax.block_until_ready(g.gen_shifted(z, shift))
    assert img2.shape == (2, 3, SIZE, SIZE), img2.shape

    assert bool(jnp.all(jnp.isfinite(img))) and bool(jnp.all(jnp.isfinite(img2)))
    print("KERNEL_OK")
</pallas_src>

<mosaic_0001>
module attributes {stable_mosaic.version = 11 : i64} {
  func.func @_fused_forward_kernel(%arg0: memref<2x512xf32, #tpu.memory_space<vmem>>, %arg1: memref<512x512xbf16, #tpu.memory_space<vmem>>, %arg2: memref<1x512xf32, #tpu.memory_space<vmem>>, %arg3: memref<512x512xbf16, #tpu.memory_space<vmem>>, %arg4: memref<1x512xf32, #tpu.memory_space<vmem>>, %arg5: memref<512x256xbf16, #tpu.memory_space<vmem>>, %arg6: memref<1x256xf32, #tpu.memory_space<vmem>>, %arg7: memref<9x16x128xf32, #tpu.memory_space<vmem>>, %arg8: memref<9x128x128xbf16, #tpu.memory_space<vmem>>, %arg9: memref<128x128xf32, #tpu.memory_space<vmem>>, %arg10: memref<16x128xf32, #tpu.memory_space<vmem>>, %arg11: memref<1x128xf32, #tpu.memory_space<vmem>>, %arg12: memref<128x128xbf16, #tpu.memory_space<vmem>>, %arg13: memref<1x128xf32, #tpu.memory_space<vmem>>, %arg14: memref<32x128xf32, #tpu.memory_space<vmem>>) attributes {dimension_semantics = [], scalar_prefetch = 0 : i64, scratch_operands = 0 : i64, tpu.core_type = #tpu.core_type<tc>} {
    %c0 = arith.constant 0 : index
    %c0_0 = arith.constant 0 : index
    %0 = vector.load %arg0[%c0, %c0_0] : memref<2x512xf32, #tpu.memory_space<vmem>>, vector<2x512xf32>
    %1 = arith.mulf %0, %0 : vector<2x512xf32>
    %cst = arith.constant dense<0.000000e+00> : vector<2xf32>
    %2 = vector.multi_reduction <add>, %1, %cst [1] : vector<2x512xf32> to vector<2xf32>
    %3 = vector.shape_cast %2 : vector<2xf32> to vector<2x1xf32>
    %cst_1 = arith.constant 5.120000e+02 : f32
    %4 = vector.broadcast %cst_1 : f32 to vector<2x1xf32>
    %5 = arith.divf %3, %4 : vector<2x1xf32>
    %cst_2 = arith.constant 9.99999993E-9 : f32
    %6 = vector.broadcast %cst_2 : f32 to vector<2x1xf32>
    %7 = arith.addf %5, %6 : vector<2x1xf32>
    %8 = math.rsqrt %7 : vector<2x1xf32>
    %9 = vector.broadcast %8 : vector<2x1xf32> to vector<2x512xf32>
    %10 = arith.mulf %0, %9 : vector<2x512xf32>
    %11 = arith.truncf %10 : vector<2x512xf32> to vector<2x512xbf16>
    %c0_3 = arith.constant 0 : index
    %c0_4 = arith.constant 0 : index
    %12 = vector.load %arg1[%c0_3, %c0_4] : memref<512x512xbf16, #tpu.memory_space<vmem>>, vector<512x512xbf16>
    %cst_5 = arith.constant dense<0.000000e+00> : vector<2x512xf32>
    %13 = tpu.matmul %11, %12, %cst_5 {dimension_numbers = #tpu.dot_dimension_numbers<[1], [0], [0], [1], [0, 0, 1, 1], [], []>} : vector<2x512xbf16>, vector<512x512xbf16>, vector<2x512xf32> -> vector<2x512xf32>
    %c0_6 = arith.constant 0 : index
    %c0_7 = arith.constant 0 : index
    %14 = vector.load %arg2[%c0_6, %c0_7] : memref<1x512xf32, #tpu.memory_space<vmem>>, vector<1x512xf32>
    %15 = vector.broadcast %14 : vector<1x512xf32> to vector<2x512xf32>
    %16 = arith.addf %13, %15 : vector<2x512xf32>
    %cst_8 = arith.constant 0.000000e+00 : f32
    %17 = vector.broadcast %cst_8 : f32 to vector<2x512xf32>
    %18 = arith.cmpf oge, %16, %17 : vector<2x512xf32>
    %cst_9 = arith.constant 2.000000e-01 : f32
    %19 = vector.broadcast %cst_9 : f32 to vector<2x512xf32>
    %20 = arith.mulf %19, %16 : vector<2x512xf32>
    %21 = arith.select %18, %16, %20 : vector<2x512xi1>, vector<2x512xf32>
    %cst_10 = arith.constant 1.41421354 : f32
    %22 = vector.broadcast %cst_10 : f32 to vector<2x512xf32>
    %23 = arith.mulf %21, %22 : vector<2x512xf32>
    %24 = arith.truncf %23 : vector<2x512xf32> to vector<2x512xbf16>
    %c0_11 = arith.constant 0 : index
    %c0_12 = arith.constant 0 : index
    %25 = vector.load %arg3[%c0_11, %c0_12] : memref<512x512xbf16, #tpu.memory_space<vmem>>, vector<512x512xbf16>
    %cst_13 = arith.constant dense<0.000000e+00> : vector<2x512xf32>
    %26 = tpu.matmul %24, %25, %cst_13 {dimension_numbers = #tpu.dot_dimension_numbers<[1], [0], [0], [1], [0, 0, 1, 1], [], []>} : vector<2x512xbf16>, vector<512x512xbf16>, vector<2x512xf32> -> vector<2x512xf32>
    %c0_14 = arith.constant 0 : index
    %c0_15 = arith.constant 0 : index
    %27 = vector.load %arg4[%c0_14, %c0_15] : memref<1x512xf32, #tpu.memory_space<vmem>>, vector<1x512xf32>
    %28 = vector.broadcast %27 : vector<1x512xf32> to vector<2x512xf32>
    %29 = arith.addf %26, %28 : vector<2x512xf32>
    %cst_16 = arith.constant 0.000000e+00 : f32
    %30 = vector.broadcast %cst_16 : f32 to vector<2x512xf32>
    %31 = arith.cmpf oge, %29, %30 : vector<2x512xf32>
    %cst_17 = arith.constant 2.000000e-01 : f32
    %32 = vector.broadcast %cst_17 : f32 to vector<2x512xf32>
    %33 = arith.mulf %32, %29 : vector<2x512xf32>
    %34 = arith.select %31, %29, %33 : vector<2x512xi1>, vector<2x512xf32>
    %cst_18 = arith.constant 1.41421354 : f32
    %35 = vector.broadcast %cst_18 : f32 to vector<2x512xf32>
    %36 = arith.mulf %34, %35 : vector<2x512xf32>
    %37 = arith.truncf %36 : vector<2x512xf32> to vector<2x512xbf16>
    %c0_19 = arith.constant 0 : index
    %c0_20 = arith.constant 0 : index
    %38 = vector.load %arg5[%c0_19, %c0_20] : memref<512x256xbf16, #tpu.memory_space<vmem>>, vector<512x256xbf16>
    %cst_21 = arith.constant dense<0.000000e+00> : vector<2x256xf32>
    %39 = tpu.matmul %37, %38, %cst_21 {dimension_numbers = #tpu.dot_dimension_numbers<[1], [0], [0], [1], [0, 0, 1, 1], [], []>} : vector<2x512xbf16>, vector<512x256xbf16>, vector<2x256xf32> -> vector<2x256xf32>
    %c0_22 = arith.constant 0 : index
    %c0_23 = arith.constant 0 : index
    %40 = vector.load %arg6[%c0_22, %c0_23] : memref<1x256xf32, #tpu.memory_space<vmem>>, vector<1x256xf32>
    %41 = vector.broadcast %40 : vector<1x256xf32> to vector<2x256xf32>
    %42 = arith.addf %39, %41 : vector<2x256xf32>
    %43 = vector.extract_strided_slice %42 {offsets = [0, 0], sizes = [2, 128], strides = [1, 1]} : vector<2x256xf32> to vector<2x128xf32>
    %44 = vector.extract_strided_slice %42 {offsets = [0, 128], sizes = [2, 128], strides = [1, 1]} : vector<2x256xf32> to vector<2x128xf32>
    %45 = arith.mulf %44, %44 : vector<2x128xf32>
    %c0_24 = arith.constant 0 : index
    %c0_25 = arith.constant 0 : index
    %46 = vector.load %arg9[%c0_24, %c0_25] : memref<128x128xf32, #tpu.memory_space<vmem>>, vector<128x128xf32>
    %cst_26 = arith.constant dense<0.000000e+00> : vector<2x128xf32>
    %47 = tpu.matmul %45, %46, %cst_26 {dimension_numbers = #tpu.dot_dimension_numbers<[1], [0], [0], [1], [0, 0, 1, 1], [], []>} : vector<2x128xf32>, vector<128x128xf32>, vector<2x128xf32> -> vector<2x128xf32>
    %cst_27 = arith.constant 9.99999993E-9 : f32
    %48 = vector.broadcast %cst_27 : f32 to vector<2x128xf32>
    %49 = arith.addf %47, %48 : vector<2x128xf32>
    %50 = math.rsqrt %49 : vector<2x128xf32>
    %cst_28 = arith.constant 0.000000e+00 : f32
    %51 = vector.broadcast %cst_28 : f32 to vector<32x128xf32>
    %c0_29 = arith.constant 0 : index
    %c0_30 = arith.constant 0 : index
    %c0_31 = arith.constant 0 : index
    %52 = vector.load %arg7[%c0_29, %c0_30, %c0_31] : memref<9x16x128xf32, #tpu.memory_space<vmem>>, vector<1x16x128xf32>
    %53 = vector.shape_cast %52 : vector<1x16x128xf32> to vector<16x128xf32>
    %54 = vector.shape_cast %53 : vector<16x128xf32> to vector<1x16x128xf32>
    %55 = vector.shape_cast %44 : vector<2x128xf32> to vector<2x1x128xf32>
    %56 = vector.broadcast %54 : vector<1x16x128xf32> to vector<2x16x128xf32>
    %57 = vector.broadcast %55 : vector<2x1x128xf32> to vector<2x16x128xf32>
    %58 = arith.mulf %56, %57 : vector<2x16x128xf32>
    %59 = vector.shape_cast %58 : vector<2x16x128xf32> to vector<32x128xf32>
    %60 = arith.truncf %59 : vector<32x128xf32> to vector<32x128xbf16>
    %c0_32 = arith.constant 0 : index
    %c0_33 = arith.constant 0 : index
    %c0_34 = arith.constant 0 : index
    %61 = vector.load %arg8[%c0_32, %c0_33, %c0_34] : memref<9x128x128xbf16, #tpu.memory_space<vmem>>, vector<1x128x128xbf16>
    %62 = vector.shape_cast %61 : vector<1x128x128xbf16> to vector<128x128xbf16>
    %cst_35 = arith.constant dense<0.000000e+00> : vector<32x128xf32>
    %63 = tpu.matmul %60, %62, %cst_35 {dimension_numbers = #tpu.dot_dimension_numbers<[1], [0], [0], [1], [0, 0, 1, 1], [], []>} : vector<32x128xbf16>, vector<128x128xbf16>, vector<32x128xf32> -> vector<32x128xf32>
    %64 = arith.addf %51, %63 : vector<32x128xf32>
    %c1 = arith.constant 1 : index
    %c0_36 = arith.constant 0 : index
    %c0_37 = arith.constant 0 : index
    %65 = vector.load %arg7[%c1, %c0_36, %c0_37] : memref<9x16x128xf32, #tpu.memory_space<vmem>>, vector<1x16x128xf32>
    %66 = vector.shape_cast %65 : vector<1x16x128xf32> to vector<16x128xf32>
    %67 = vector.shape_cast %66 : vector<16x128xf32> to vector<1x16x128xf32>
    %68 = vector.shape_cast %44 : vector<2x128xf32> to vector<2x1x128xf32>
    %69 = vector.broadcast %67 : vector<1x16x128xf32> to vector<2x16x128xf32>
    %70 = vector.broadcast %68 : vector<2x1x128xf32> to vector<2x16x128xf32>
    %71 = arith.mulf %69, %70 : vector<2x16x128xf32>
    %72 = vector.shape_cast %71 : vector<2x16x128xf32> to vector<32x128xf32>
    %73 = arith.truncf %72 : vector<32x128xf32> to vector<32x128xbf16>
    %c1_38 = arith.constant 1 : index
    %c0_39 = arith.constant 0 : index
    %c0_40 = arith.constant 0 : index
    %74 = vector.load %arg8[%c1_38, %c0_39, %c0_40] : memref<9x128x128xbf16, #tpu.memory_space<vmem>>, vector<1x128x128xbf16>
    %75 = vector.shape_cast %74 : vector<1x128x128xbf16> to vector<128x128xbf16>
    %cst_41 = arith.constant dense<0.000000e+00> : vector<32x128xf32>
    %76 = tpu.matmul %73, %75, %cst_41 {dimension_numbers = #tpu.dot_dimension_numbers<[1], [0], [0], [1], [0, 0, 1, 1], [], []>} : vector<32x128xbf16>, vector<128x128xbf16>, vector<32x128xf32> -> vector<32x128xf32>
    %77 = arith.addf %64, %76 : vector<32x128xf32>
    %c2 = arith.constant 2 : index
    %c0_42 = arith.constant 0 : index
    %c0_43 = arith.constant 0 : index
    %78 = vector.load %arg7[%c2, %c0_42, %c0_43] : memref<9x16x128xf32, #tpu.memory_space<vmem>>, vector<1x16x128xf32>
    %79 = vector.shape_cast %78 : vector<1x16x128xf32> to vector<16x128xf32>
    %80 = vector.shape_cast %79 : vector<16x128xf32> to vector<1x16x128xf32>
    %81 = vector.shape_cast %44 : vector<2x128xf32> to vector<2x1x128xf32>
    %82 = vector.broadcast %80 : vector<1x16x128xf32> to vector<2x16x128xf32>
    %83 = vector.broadcast %81 : vector<2x1x128xf32> to vector<2x16x128xf32>
    %84 = arith.mulf %82, %83 : vector<2x16x128xf32>
    %85 = vector.shape_cast %84 : vector<2x16x128xf32> to vector<32x128xf32>
    %86 = arith.truncf %85 : vector<32x128xf32> to vector<32x128xbf16>
    %c2_44 = arith.constant 2 : index
    %c0_45 = arith.constant 0 : index
    %c0_46 = arith.constant 0 : index
    %87 = vector.load %arg8[%c2_44, %c0_45, %c0_46] : memref<9x128x128xbf16, #tpu.memory_space<vmem>>, vector<1x128x128xbf16>
    %88 = vector.shape_cast %87 : vector<1x128x128xbf16> to vector<128x128xbf16>
    %cst_47 = arith.constant dense<0.000000e+00> : vector<32x128xf32>
    %89 = tpu.matmul %86, %88, %cst_47 {dimension_numbers = #tpu.dot_dimension_numbers<[1], [0], [0], [1], [0, 0, 1, 1], [], []>} : vector<32x128xbf16>, vector<128x128xbf16>, vector<32x128xf32> -> vector<32x128xf32>
    %90 = arith.addf %77, %89 : vector<32x128xf32>
    %c3 = arith.constant 3 : index
    %c0_48 = arith.constant 0 : index
    %c0_49 = arith.constant 0 : index
    %91 = vector.load %arg7[%c3, %c0_48, %c0_49] : memref<9x16x128xf32, #tpu.memory_space<vmem>>, vector<1x16x128xf32>
    %92 = vector.shape_cast %91 : vector<1x16x128xf32> to vector<16x128xf32>
    %93 = vector.shape_cast %92 : vector<16x128xf32> to vector<1x16x128xf32>
    %94 = vector.shape_cast %44 : vector<2x128xf32> to vector<2x1x128xf32>
    %95 = vector.broadcast %93 : vector<1x16x128xf32> to vector<2x16x128xf32>
    %96 = vector.broadcast %94 : vector<2x1x128xf32> to vector<2x16x128xf32>
    %97 = arith.mulf %95, %96 : vector<2x16x128xf32>
    %98 = vector.shape_cast %97 : vector<2x16x128xf32> to vector<32x128xf32>
    %99 = arith.truncf %98 : vector<32x128xf32> to vector<32x128xbf16>
    %c3_50 = arith.constant 3 : index
    %c0_51 = arith.constant 0 : index
    %c0_52 = arith.constant 0 : index
    %100 = vector.load %arg8[%c3_50, %c0_51, %c0_52] : memref<9x128x128xbf16, #tpu.memory_space<vmem>>, vector<1x128x128xbf16>
    %101 = vector.shape_cast %100 : vector<1x128x128xbf16> to vector<128x128xbf16>
    %cst_53 = arith.constant dense<0.000000e+00> : vector<32x128xf32>
    %102 = tpu.matmul %99, %101, %cst_53 {dimension_numbers = #tpu.dot_dimension_numbers<[1], [0], [0], [1], [0, 0, 1, 1], [], []>} : vector<32x128xbf16>, vector<128x128xbf16>, vector<32x128xf32> -> vector<32x128xf32>
    %103 = arith.addf %90, %102 : vector<32x128xf32>
    %c4 = arith.constant 4 : index
    %c0_54 = arith.constant 0 : index
    %c0_55 = arith.constant 0 : index
    %104 = vector.load %arg7[%c4, %c0_54, %c0_55] : memref<9x16x128xf32, #tpu.memory_space<vmem>>, vector<1x16x128xf32>
    %105 = vector.shape_cast %104 : vector<1x16x128xf32> to vector<16x128xf32>
    %106 = vector.shape_cast %105 : vector<16x128xf32> to vector<1x16x128xf32>
    %107 = vector.shape_cast %44 : vector<2x128xf32> to vector<2x1x128xf32>
    %108 = vector.broadcast %106 : vector<1x16x128xf32> to vector<2x16x128xf32>
    %109 = vector.broadcast %107 : vector<2x1x128xf32> to vector<2x16x128xf32>
    %110 = arith.mulf %108, %109 : vector<2x16x128xf32>
    %111 = vector.shape_cast %110 : vector<2x16x128xf32> to vector<32x128xf32>
    %112 = arith.truncf %111 : vector<32x128xf32> to vector<32x128xbf16>
    %c4_56 = arith.constant 4 : index
    %c0_57 = arith.constant 0 : index
    %c0_58 = arith.constant 0 : index
    %113 = vector.load %arg8[%c4_56, %c0_57, %c0_58] : memref<9x128x128xbf16, #tpu.memory_space<vmem>>, vector<1x128x128xbf16>
    %114 = vector.shape_cast %113 : vector<1x128x128xbf16> to vector<128x128xbf16>
    %cst_59 = arith.constant dense<0.000000e+00> : vector<32x128xf32>
    %115 = tpu.matmul %112, %114, %cst_59 {dimension_numbers = #tpu.dot_dimension_numbers<[1], [0], [0], [1], [0, 0, 1, 1], [], []>} : vector<32x128xbf16>, vector<128x128xbf16>, vector<32x128xf32> -> vector<32x128xf32>
    %116 = arith.addf %103, %115 : vector<32x128xf32>
    %c5 = arith.constant 5 : index
    %c0_60 = arith.constant 0 : index
    %c0_61 = arith.constant 0 : index
    %117 = vector.load %arg7[%c5, %c0_60, %c0_61] : memref<9x16x128xf32, #tpu.memory_space<vmem>>, vector<1x16x128xf32>
    %118 = vector.shape_cast %117 : vector<1x16x128xf32> to vector<16x128xf32>
    %119 = vector.shape_cast %118 : vector<16x128xf32> to vector<1x16x128xf32>
    %120 = vector.shape_cast %44 : vector<2x128xf32> to vector<2x1x128xf32>
    %121 = vector.broadcast %119 : vector<1x16x128xf32> to vector<2x16x128xf32>
    %122 = vector.broadcast %120 : vector<2x1x128xf32> to vector<2x16x128xf32>
    %123 = arith.mulf %121, %122 : vector<2x16x128xf32>
    %124 = vector.shape_cast %123 : vector<2x16x128xf32> to vector<32x128xf32>
    %125 = arith.truncf %124 : vector<32x128xf32> to vector<32x128xbf16>
    %c5_62 = arith.constant 5 : index
    %c0_63 = arith.constant 0 : index
    %c0_64 = arith.constant 0 : index
    %126 = vector.load %arg8[%c5_62, %c0_63, %c0_64] : memref<9x128x128xbf16, #tpu.memory_space<vmem>>, vector<1x128x128xbf16>
    %127 = vector.shape_cast %126 : vector<1x128x128xbf16> to vector<128x128xbf16>
    %cst_65 = arith.constant dense<0.000000e+00> : vector<32x128xf32>
    %128 = tpu.matmul %125, %127, %cst_65 {dimension_numbers = #tpu.dot_dimension_numbers<[1], [0], [0], [1], [0, 0, 1, 1], [], []>} : vector<32x128xbf16>, vector<128x128xbf16>, vector<32x128xf32> -> vector<32x128xf32>
    %129 = arith.addf %116, %128 : vector<32x128xf32>
    %c6 = arith.constant 6 : index
    %c0_66 = arith.constant 0 : index
    %c0_67 = arith.constant 0 : index
    %130 = vector.load %arg7[%c6, %c0_66, %c0_67] : memref<9x16x128xf32, #tpu.memory_space<vmem>>, vector<1x16x128xf32>
    %131 = vector.shape_cast %130 : vector<1x16x128xf32> to vector<16x128xf32>
    %132 = vector.shape_cast %131 : vector<16x128xf32> to vector<1x16x128xf32>
    %133 = vector.shape_cast %44 : vector<2x128xf32> to vector<2x1x128xf32>
    %134 = vector.broadcast %132 : vector<1x16x128xf32> to vector<2x16x128xf32>
    %135 = vector.broadcast %133 : vector<2x1x128xf32> to vector<2x16x128xf32>
    %136 = arith.mulf %134, %135 : vector<2x16x128xf32>
    %137 = vector.shape_cast %136 : vector<2x16x128xf32> to vector<32x128xf32>
    %138 = arith.truncf %137 : vector<32x128xf32> to vector<32x128xbf16>
    %c6_68 = arith.constant 6 : index
    %c0_69 = arith.constant 0 : index
    %c0_70 = arith.constant 0 : index
    %139 = vector.load %arg8[%c6_68, %c0_69, %c0_70] : memref<9x128x128xbf16, #tpu.memory_space<vmem>>, vector<1x128x128xbf16>
    %140 = vector.shape_cast %139 : vector<1x128x128xbf16> to vector<128x128xbf16>
    %cst_71 = arith.constant dense<0.000000e+00> : vector<32x128xf32>
    %141 = tpu.matmul %138, %140, %cst_71 {dimension_numbers = #tpu.dot_dimension_numbers<[1], [0], [0], [1], [0, 0, 1, 1], [], []>} : vector<32x128xbf16>, vector<128x128xbf16>, vector<32x128xf32> -> vector<32x128xf32>
    %142 = arith.addf %129, %141 : vector<32x128xf32>
    %c7 = arith.constant 7 : index
    %c0_72 = arith.constant 0 : index
    %c0_73 = arith.constant 0 : index
    %143 = vector.load %arg7[%c7, %c0_72, %c0_73] : memref<9x16x128xf32, #tpu.memory_space<vmem>>, vector<1x16x128xf32>
    %144 = vector.shape_cast %143 : vector<1x16x128xf32> to vector<16x128xf32>
    %145 = vector.shape_cast %144 : vector<16x128xf32> to vector<1x16x128xf32>
    %146 = vector.shape_cast %44 : vector<2x128xf32> to vector<2x1x128xf32>
    %147 = vector.broadcast %145 : vector<1x16x128xf32> to vector<2x16x128xf32>
    %148 = vector.broadcast %146 : vector<2x1x128xf32> to vector<2x16x128xf32>
    %149 = arith.mulf %147, %148 : vector<2x16x128xf32>
    %150 = vector.shape_cast %149 : vector<2x16x128xf32> to vector<32x128xf32>
    %151 = arith.truncf %150 : vector<32x128xf32> to vector<32x128xbf16>
    %c7_74 = arith.constant 7 : index
    %c0_75 = arith.constant 0 : index
    %c0_76 = arith.constant 0 : index
    %152 = vector.load %arg8[%c7_74, %c0_75, %c0_76] : memref<9x128x128xbf16, #tpu.memory_space<vmem>>, vector<1x128x128xbf16>
    %153 = vector.shape_cast %152 : vector<1x128x128xbf16> to vector<128x128xbf16>
    %cst_77 = arith.constant dense<0.000000e+00> : vector<32x128xf32>
    %154 = tpu.matmul %151, %153, %cst_77 {dimension_numbers = #tpu.dot_dimension_numbers<[1], [0], [0], [1], [0, 0, 1, 1], [], []>} : vector<32x128xbf16>, vector<128x128xbf16>, vector<32x128xf32> -> vector<32x128xf32>
    %155 = arith.addf %142, %154 : vector<32x128xf32>
    %c8 = arith.constant 8 : index
    %c0_78 = arith.constant 0 : index
    %c0_79 = arith.constant 0 : index
    %156 = vector.load %arg7[%c8, %c0_78, %c0_79] : memref<9x16x128xf32, #tpu.memory_space<vmem>>, vector<1x16x128xf32>
    %157 = vector.shape_cast %156 : vector<1x16x128xf32> to vector<16x128xf32>
    %158 = vector.shape_cast %157 : vector<16x128xf32> to vector<1x16x128xf32>
    %159 = vector.shape_cast %44 : vector<2x128xf32> to vector<2x1x128xf32>
    %160 = vector.broadcast %158 : vector<1x16x128xf32> to vector<2x16x128xf32>
    %161 = vector.broadcast %159 : vector<2x1x128xf32> to vector<2x16x128xf32>
    %162 = arith.mulf %160, %161 : vector<2x16x128xf32>
    %163 = vector.shape_cast %162 : vector<2x16x128xf32> to vector<32x128xf32>
    %164 = arith.truncf %163 : vector<32x128xf32> to vector<32x128xbf16>
    %c8_80 = arith.constant 8 : index
    %c0_81 = arith.constant 0 : index
    %c0_82 = arith.constant 0 : index
    %165 = vector.load %arg8[%c8_80, %c0_81, %c0_82] : memref<9x128x128xbf16, #tpu.memory_space<vmem>>, vector<1x128x128xbf16>
    %166 = vector.shape_cast %165 : vector<1x128x128xbf16> to vector<128x128xbf16>
    %cst_83 = arith.constant dense<0.000000e+00> : vector<32x128xf32>
    %167 = tpu.matmul %164, %166, %cst_83 {dimension_numbers = #tpu.dot_dimension_numbers<[1], [0], [0], [1], [0, 0, 1, 1], [], []>} : vector<32x128xbf16>, vector<128x128xbf16>, vector<32x128xf32> -> vector<32x128xf32>
    %168 = arith.addf %155, %167 : vector<32x128xf32>
    %169 = vector.shape_cast %168 : vector<32x128xf32> to vector<2x16x128xf32>
    %170 = vector.shape_cast %50 : vector<2x128xf32> to vector<2x1x128xf32>
    %171 = vector.broadcast %170 : vector<2x1x128xf32> to vector<2x16x128xf32>
    %172 = arith.mulf %169, %171 : vector<2x16x128xf32>
    %c0_84 = arith.constant 0 : index
    %c0_85 = arith.constant 0 : index
    %173 = vector.load %arg10[%c0_84, %c0_85] : memref<16x128xf32, #tpu.memory_space<vmem>>, vector<16x128xf32>
    %174 = vector.shape_cast %173 : vector<16x128xf32> to vector<1x16x128xf32>
    %175 = vector.broadcast %174 : vector<1x16x128xf32> to vector<2x16x128xf32>
    %176 = arith.addf %172, %175 : vector<2x16x128xf32>
    %cst_86 = arith.constant 0.000000e+00 : f32
    %177 = vector.broadcast %cst_86 : f32 to vector<2x16x128xf32>
    %178 = arith.cmpf oge, %176, %177 : vector<2x16x128xf32>
    %cst_87 = arith.constant 2.000000e-01 : f32
    %179 = vector.broadcast %cst_87 : f32 to vector<2x16x128xf32>
    %180 = arith.mulf %179, %176 : vector<2x16x128xf32>
    %181 = arith.select %178, %176, %180 : vector<2x16x128xi1>, vector<2x16x128xf32>
    %cst_88 = arith.constant 1.41421354 : f32
    %182 = vector.broadcast %cst_88 : f32 to vector<2x16x128xf32>
    %183 = arith.mulf %181, %182 : vector<2x16x128xf32>
    %c0_89 = arith.constant 0 : index
    %c0_90 = arith.constant 0 : index
    %184 = vector.load %arg11[%c0_89, %c0_90] : memref<1x128xf32, #tpu.memory_space<vmem>>, vector<1x128xf32>
    %185 = vector.broadcast %184 : vector<1x128xf32> to vector<2x128xf32>
    %186 = arith.mulf %43, %185 : vector<2x128xf32>
    %187 = vector.shape_cast %186 : vector<2x128xf32> to vector<2x1x128xf32>
    %188 = vector.broadcast %187 : vector<2x1x128xf32> to vector<2x16x128xf32>
    %189 = arith.mulf %183, %188 : vector<2x16x128xf32>
    %190 = vector.shape_cast %189 : vector<2x16x128xf32> to vector<32x128xf32>
    %191 = arith.truncf %190 : vector<32x128xf32> to vector<32x128xbf16>
    %c0_91 = arith.constant 0 : index
    %c0_92 = arith.constant 0 : index
    %192 = vector.load %arg12[%c0_91, %c0_92] : memref<128x128xbf16, #tpu.memory_space<vmem>>, vector<128x128xbf16>
    %cst_93 = arith.constant dense<0.000000e+00> : vector<32x128xf32>
    %193 = tpu.matmul %191, %192, %cst_93 {dimension_numbers = #tpu.dot_dimension_numbers<[1], [0], [0], [1], [0, 0, 1, 1], [], []>} : vector<32x128xbf16>, vector<128x128xbf16>, vector<32x128xf32> -> vector<32x128xf32>
    %c0_94 = arith.constant 0 : index
    %c0_95 = arith.constant 0 : index
    %194 = vector.load %arg13[%c0_94, %c0_95] : memref<1x128xf32, #tpu.memory_space<vmem>>, vector<1x128xf32>
    %195 = vector.broadcast %194 : vector<1x128xf32> to vector<32x128xf32>
    %196 = arith.addf %193, %195 : vector<32x128xf32>
    %c0_96 = arith.constant 0 : index
    %c0_97 = arith.constant 0 : index
    %197 = vector.load %arg14[%c0_96, %c0_97] : memref<32x128xf32, #tpu.memory_space<vmem>>, vector<32x128xf32>
    tpu.vector_store %arg14[%c0_96, %c0_97], %196 {strides = array<i32>} : memref<32x128xf32, #tpu.memory_space<vmem>>, vector<32x128xf32>,
    return
  }
}

</mosaic_0001>

<bundles_post_ra>
// kernel: _forward_jit.1
= control target key start
LH: loop header
LB: loop body
LE: loop exit
PB: predicated region body
PF: predicated region fallthrough
CT: control target
= control target key end

     0   :  { %19 = vsyncpa [#allocation3], 0  ;;  %s6449_s0 = inlined_call_operand.vmem [shape: f32[2,512], index: 0, kind: input, shape index: {}]   ;;  %s6450_s1 = inlined_call_operand.hbm [shape: bf16[512,512], index: 1, kind: input, shape index: {}]   ;;  %s6451_s2 = inlined_call_operand.hbm [shape: f32[1,512], index: 2, kind: input, shape index: {}]   ;;  %s6452_s3 = inlined_call_operand.hbm [shape: bf16[512,512], index: 3, kind: input, shape index: {}]   ;;  %s6453_s4 = inlined_call_operand.hbm [shape: f32[1,512], index: 4, kind: input, shape index: {}]   ;;  %s6454_s5 = inlined_call_operand.hbm [shape: bf16[512,256], index: 5, kind: input, shape index: {}]   ;;  %s6455_s6 = inlined_call_operand.vmem [shape: f32[1,256], index: 6, kind: input, shape index: {}]   ;;  %s6456_s7 = inlined_call_operand.hbm [shape: f32[9,16,128], index: 7, kind: input, shape index: {}]   ;;  %s6457_s8 = inlined_call_operand.hbm [shape: bf16[9,128,128], index: 8, kind: input, shape index: {}]   ;;  %s6458_s9 = inlined_call_operand.hbm [shape: f32[128,128], index: 9, kind: input, shape index: {}]   ;;  %s6459_s10 = inlined_call_operand.hbm [shape: f32[16,128], index: 10, kind: input, shape index: {}]   ;;  %s6460_s11 = inlined_call_operand.vmem [shape: f32[1,128], index: 11, kind: input, shape index: {}]   ;;  %s6461_s12 = inlined_call_operand.hbm [shape: bf16[128,128], index: 12, kind: input, shape index: {}]   ;;  %s6462_s13 = inlined_call_operand.vmem [shape: f32[1,128], index: 13, kind: input, shape index: {}]   ;;  %s6463_s14 = inlined_call_operand.vmem [shape: f32[32,128], index: 14, kind: output, shape index: {}]  }
   0x1   :  { %20 = vsyncpa [#allocation5], 0 }
   0x2   :  { %21 = vsyncpa [#allocation8], 0 }
   0x3   :  { %22 = vsyncpa [#allocation11], 0 }
   0x4   :  { %23 = vsyncpa [#allocation14], 0  ;;  %s45_s15 = sshll.u32 %s6451_s2, 4  ;;  %s46_s15 = int_to_ptr.hbm [resolvable:$true] %s45_s15 }
   0x5   :  { %24 = vsyncpa [#allocation17], 0  ;;  %s6119_s16 = smov [#allocation4]   ;;  %s69_s20 = sshll.u32 %s6453_s4, 4  ;;  %s70_s20 = int_to_ptr.hbm [resolvable:$true] %s69_s20 }
   0x6   :  { %s47_s17 = sshll.u32 %s6119_s16, 4  ;;  %s6120_s21 = smov [#allocation7]   ;;  %s48_s17 = int_to_ptr.vmem [resolvable:$true] %s47_s17 }
   0x7   :  { %50 = dma.hbm_to_vmem [thread:$0]  %s46_s15, 64, %s48_s17, [#allocation5]  }
   0x8   :  { %s71_s22 = sshll.u32 %s6120_s21, 4  ;;  %s94_s25 = sshll.u32 %s6456_s7, 4  ;;  %s72_s22 = int_to_ptr.vmem [resolvable:$true] %s71_s22  ;;  %s95_s25 = int_to_ptr.hbm [resolvable:$true] %s94_s25 }
   0x9   :  { %74 = dma.hbm_to_vmem [thread:$0]  %s70_s20, 64, %s72_s22, [#allocation8]  }
   0xa   :  { %s6121_s2 = smov [#allocation10]   ;;  %s120_s29 = sshll.u32 %s6458_s9, 4  ;;  %s121_s29 = int_to_ptr.hbm [resolvable:$true] %s120_s29 }
   0xb   :  { %s96_s26 = sshll.u32 %s6121_s2, 4  ;;  %s6122_s30 = smov 128   ;;  %s97_s26 = int_to_ptr.vmem [resolvable:$true] %s96_s26 }
   0xc   :  { %s6123_s4 = smov 8   ;;  %s6124_s15 = smov [#allocation13]  }
   0xd   :  { %102 = dma.hbm_to_vmem [thread:$0]  %s95_s25, 2304, %s97_s26, [#allocation11], %s6122_s30, %s6122_s30, %s6123_s4  }
   0xe   :  { %s122_s16 = sshll.u32 %s6124_s15, 4  ;;  %s31_s7 = sshll.u32 %s6450_s1, 4  ;;  %s123_s16 = int_to_ptr.vmem [resolvable:$true] %s122_s16  ;;  %s32_s7 = int_to_ptr.hbm [resolvable:$true] %s31_s7 }
   0xf   :  { %128 = dma.hbm_to_vmem [thread:$0]  %s121_s29, 2048, %s123_s16, [#allocation14], %s6122_s30, %s6122_s30, %s6123_s4  }
  0x10   :  { %s6125_s9 = smov [#allocation2]   ;;  %s55_s22 = sshll.u32 %s6452_s3, 4  ;;  %s56_s22 = int_to_ptr.hbm [resolvable:$true] %s55_s22 }
  0x11   :  { %s33_s19 = sshll.u32 %s6125_s9, 4  ;;  %s6126_s23 = smov 256   ;;  %s34_s19 = int_to_ptr.vmem [resolvable:$true] %s33_s19 }
  0x12   :  { %s6127_s24 = smov 16   ;;  %s6128_s25 = smov [#allocation6]  }
  0x13   :  { %39 = dma.hbm_to_vmem [thread:$0]  %s32_s7, 16384, %s34_s19, [#allocation3], %s6126_s23, %s6126_s23, %s6127_s24  }
  0x14   :  { %s57_s2 = sshll.u32 %s6128_s25, 4  ;;  %s79_s27 = sshll.u32 %s6454_s5, 4  ;;  %s58_s2 = int_to_ptr.vmem [resolvable:$true] %s57_s2  ;;  %s80_s27 = int_to_ptr.hbm [resolvable:$true] %s79_s27 }
  0x15   :  { %63 = dma.hbm_to_vmem [thread:$0]  %s56_s22, 16384, %s58_s2, [#allocation5], %s6126_s23, %s6126_s23, %s6127_s24  }
  0x16   :  { %s107_s15 = sshll.u32 %s6457_s8, 4  ;;  %s6129_s16 = smov [#allocation9]   ;;  %s108_s15 = int_to_ptr.hbm [resolvable:$true] %s107_s15 }
  0x17   :  { %s81_s17 = sshll.u32 %s6129_s16, 4  ;;  %s6130_s3 = smov [#allocation12]   ;;  %s82_s17 = int_to_ptr.vmem [resolvable:$true] %s81_s17 }
  0x18   :  { %87 = dma.hbm_to_vmem [thread:$0]  %s80_s27, 8192, %s82_s17, [#allocation8], %s6122_s30, %s6122_s30, %s6123_s4  }
  0x19   :  { %s109_s18 = sshll.u32 %s6130_s3, 4  ;;  %s6131_s7 = smov 64   ;;  %s110_s18 = int_to_ptr.vmem [resolvable:$true] %s109_s18 }
  0x1a   :  { %s6132_s5 = smov 4   ;;  %s133_s20 = sshll.u32 %s6459_s10, 4  ;;  %s134_s20 = int_to_ptr.hbm [resolvable:$true] %s133_s20 }
  0x1b   :  { %115 = dma.hbm_to_vmem [thread:$0]  %s108_s15, 9216, %s110_s18, [#allocation11], %s6131_s7, %s6131_s7, %s6132_s5  }
  0x1c   :  { %s6133_s8 = smov [#allocation15]   ;;  %s148_s24 = sshll.u32 %s6461_s12, 4  ;;  %s149_s24 = int_to_ptr.hbm [resolvable:$true] %s148_s24 }
  0x1d   :  { %s135_s21 = sshll.u32 %s6133_s8, 4  ;;  %s6134_s25 = smov [#allocation16]   ;;  %s136_s21 = int_to_ptr.vmem [resolvable:$true] %s135_s21 }
  0x1e   :  { %141 = dma.hbm_to_vmem [thread:$0]  %s134_s20, 256, %s136_s21, [#allocation14], %s6122_s30, %s6122_s30, %s6123_s4  }
  0x1f   :  { %s150_s2 = sshll.u32 %s6134_s25, 4  ;;  %s151_s2 = int_to_ptr.vmem [resolvable:$true] %s150_s2 }
  0x20   :  { %156 = dma.hbm_to_vmem [thread:$0]  %s149_s24, 1024, %s151_s2, [#allocation17], %s6131_s7, %s6131_s7, %s6132_s5  }
  0x21   :  { %6107 = dma.done.wait [#allocation3], 16384  }
  0x22   :  { %6108 = vsyncadd [#allocation3], 4294950912 }
  0x23   :  { %6109 = dma.done.wait [#allocation5], 16448  }
  0x24   :  { %6110 = vsyncadd [#allocation5], 4294950848 }
  0x25   :  { %6111 = dma.done.wait [#allocation8], 8256  }
  0x26   :  { %6112 = vsyncadd [#allocation8], 4294959040 }
  0x27   :  { %6113 = dma.done.wait [#allocation11], 11520  }
  0x28   :  { %6114 = vsyncadd [#allocation11], 4294955776 }
  0x29   :  { %6115 = dma.done.wait [#allocation14], 2304  }
  0x2a   :  { %6116 = vsyncadd [#allocation14], 4294964992 }
  0x2b   :  { %6117 = dma.done.wait [#allocation17], 1024  }
  0x2c   :  { %6118 = vsyncadd [#allocation17], 4294966272  ;;  %v6257_v0 = vld [vmem:[%s6449_s0] sm:$0xff]  ;;  %v3947_v1 = vld [vmem:[#allocation2 + $0xe0] sm:$0xf]  ;;  %vm211_vm0 = vcmask 1041408  }
  0x2d   :  { %v5463_v2 = vld [vmem:[#allocation2 + $0xec] sm:$0xf0]  ;;  %v200_v3 = vmul.f32 %v6257_v0, %v6257_v0  ;;  %v4075_v5 = vld [vmem:[#allocation2 + $0x1e0] sm:$0xf] }
  0x2e   :  { %v3948_v4 = vor.u32 %v5463_v2, %v3947_v1  ;;  %v5495_v6 = vld [vmem:[#allocation2 + $0x1ec] sm:$0xf0]  ;;  %v4203_v7 = vld [vmem:[#allocation2 + $0x2e0] sm:$0xf] }
  0x2f   :  { %v4076_v8 = vor.u32 %v5495_v6, %v4075_v5  ;;  %v5527_v9 = vld [vmem:[#allocation2 + $0x2ec] sm:$0xf0]  ;;  %v4331_v10 = vld [vmem:[#allocation2 + $0x3e0] sm:$0xf]  ;;  %202 = vst [vmem:[#allocation1] ss:$4 sm:$0xff] %v200_v3 }
  0x30   :  { %v5559_v11 = vld [vmem:[#allocation2 + $0x3ec] sm:$0xf0]  ;;  %1039 = vmatpush.bf16.msra.mxu0 %v3948_v4  ;;  %v4204_v12 = vor.u32 %v5527_v9, %v4203_v7  ;;  %v3931_v14 = vld [vmem:[#allocation2 + $0xc0] sm:$0xf] }
  0x31   :  { %v4332_v13 = vor.u32 %v5559_v11, %v4331_v10  ;;  %v5459_v15 = vld [vmem:[#allocation2 + $0xcc] sm:$0xf0]  ;;  %1052 = vmatpush.bf16.msra.mxu1 %v4076_v8  ;;  %v4059_v17 = vld [vmem:[#allocation2 + $0x1c0] sm:$0xf] }
  0x32   :  { %v3932_v16 = vor.u32 %v5459_v15, %v3931_v14  ;;  %v5491_v18 = vld [vmem:[#allocation2 + $0x1cc] sm:$0xf0]  ;;  %v4187_v19 = vld [vmem:[#allocation2 + $0x2c0] sm:$0xf]  ;;  %1065 = vmatpush.bf16.msra.mxu2 %v4204_v12 }
  0x33   :  { %1078 = vmatpush.bf16.msra.mxu3 %v4332_v13  ;;  %v4060_v20 = vor.u32 %v5491_v18, %v4059_v17  ;;  %v5523_v21 = vld [vmem:[#allocation2 + $0x2cc] sm:$0xf0]  ;;  %v4315_v22 = vld [vmem:[#allocation2 + $0x3c0] sm:$0xf] }
  0x34   :  { %v5555_v23 = vld [vmem:[#allocation2 + $0x3cc] sm:$0xf0]  ;;  %v4188_v24 = vor.u32 %v5523_v21, %v4187_v19  ;;  %v3915_v26 = vld [vmem:[#allocation2 + $0xa0] sm:$0xf]  ;;  %1040 = vmatpush.bf16.msra.mxu0 %v3932_v16 }
  0x35   :  { %v4316_v25 = vor.u32 %v5555_v23, %v4315_v22  ;;  %v5455_v27 = vld [vmem:[#allocation2 + $0xac] sm:$0xf0]  ;;  %v4043_v28 = vld [vmem:[#allocation2 + $0x1a0] sm:$0xf]  ;;  %1053 = vmatpush.bf16.msra.mxu1 %v4060_v20 }
  0x36   :  { %v3916_v29 = vor.u32 %v5455_v27, %v3915_v26  ;;  %v5487_v30 = vld [vmem:[#allocation2 + $0x1ac] sm:$0xf0]  ;;  %v4171_v31 = vld [vmem:[#allocation2 + $0x2a0] sm:$0xf]  ;;  %1066 = vmatpush.bf16.msra.mxu2 %v4188_v24 }
  0x37   :  { %v5519_v32 = vld [vmem:[#allocation2 + $0x2ac] sm:$0xf0]  ;;  %v4044_v33 = vor.u32 %v5487_v30, %v4043_v28  ;;  %v4299_v34 = vld [vmem:[#allocation2 + $0x3a0] sm:$0xf]  ;;  %1079 = vmatpush.bf16.msra.mxu3 %v4316_v25 }
  0x38   :  { %v5551_v35 = vld [vmem:[#allocation2 + $0x3ac] sm:$0xf0]  ;;  %v3899_v36 = vld [vmem:[#allocation2 + $0x80] sm:$0xf]  ;;  %v4172_v37 = vor.u32 %v5519_v32, %v4171_v31  ;;  %1041 = vmatpush.bf16.msra.mxu0 %v3916_v29 }
  0x39   :  { %v4300_v38 = vor.u32 %v5551_v35, %v4299_v34  ;;  %v5451_v39 = vld [vmem:[#allocation2 + $0x8c] sm:$0xf0]  ;;  %v4027_v40 = vld [vmem:[#allocation2 + $0x180] sm:$0xf]  ;;  %1054 = vmatpush.bf16.msra.mxu1 %v4044_v33  ;;  %v6135_v33 = vmov 512.0  }
  0x3a   :  { %v5483_v41 = vld [vmem:[#allocation2 + $0x18c] sm:$0xf0]  ;;  %v203_v42 = vld.sshfl [vmem:[#allocation1] sm:$0xff pattern:$0x73625140]  ;;  %v3900_v46 = vor.u32 %v5451_v39, %v3899_v36  ;;  %1067 = vmatpush.bf16.msra.mxu2 %v4172_v37  ;;  %5861 = vrcp.f32 %v6135_v33 }
  0x3b   :  { %v204_v43 = vld.sshfl [vmem:[#allocation1 + $0x8] sm:$0xff pattern:$0x73625140]  ;;  %v205_v44 = vld.sshfl [vmem:[#allocation1 + $0x10] sm:$0xff pattern:$0x73625140]  ;;  %v4028_v47 = vor.u32 %v5483_v41, %v4027_v40  ;;  %1080 = vmatpush.bf16.msra.mxu3 %v4300_v38 }
  0x3c   :  { %v206_v45 = vld.sshfl [vmem:[#allocation1 + $0x18] sm:$0xff pattern:$0x73625140]  ;;  %v212_v48 = vsel %vm211_vm0, %v203_v42, 0.0  ;;  %v213_v49 = vsel %vm211_vm0, %v204_v43, 0.0  ;;  %v215_v50 = vsel %vm211_vm0, %v205_v44, 0.0  ;;  %1042 = vmatpush.bf16.msra.mxu0 %v3900_v46 }
  0x3d   :  { %v217_v51 = vsel %vm211_vm0, %v206_v45, 0.0  ;;  %v4155_v52 = vld [vmem:[#allocation2 + $0x280] sm:$0xf]  ;;  %v214_v53 = vadd.f32 %v213_v49, %v212_v48  ;;  %v5515_v54 = vld [vmem:[#allocation2 + $0x28c] sm:$0xf0]  ;;  %1055 = vmatpush.bf16.msra.mxu1 %v4028_v47 }
  0x3e   :  { %v4283_v55 = vld [vmem:[#allocation2 + $0x380] sm:$0xf]  ;;  %v5547_v56 = vld [vmem:[#allocation2 + $0x38c] sm:$0xf0]  ;;  %v4156_v57 = vor.u32 %v5515_v54, %v4155_v52  ;;  %v5461_v46 = vld [vmem:[#allocation2 + $0xe4] sm:$0xf] }
  0x3f   :  { %v4284_v58 = vor.u32 %v5547_v56, %v4283_v55  ;;  %v3883_v59 = vld [vmem:[#allocation2 + $0x60] sm:$0xf]  ;;  %v5447_v60 = vld [vmem:[#allocation2 + $0x6c] sm:$0xf0]  ;;  %v216_v62 = vadd.f32 %v215_v50, %v214_v53  ;;  %v3949_v48 = vld [vmem:[#allocation2 + $0xf0] sm:$0xf0] }
  0x40   :  { %v4011_v61 = vld [vmem:[#allocation2 + $0x160] sm:$0xf]  ;;  %v3884_v63 = vor.u32 %v5447_v60, %v3883_v59  ;;  %v5479_v1 = vld [vmem:[#allocation2 + $0x16c] sm:$0xf0]  ;;  %1068 = vmatpush.bf16.msra.mxu2 %v4156_v57  ;;  %v5493_v49 = vld [vmem:[#allocation2 + $0x1e4] sm:$0xf]  ;;  %v6265_v56 = vpop.eup %5861 }
  0x41   :  { %v4139_v2 = vld [vmem:[#allocation2 + $0x260] sm:$0xf]  ;;  %v5511_v3 = vld [vmem:[#allocation2 + $0x26c] sm:$0xf0]  ;;  %v4012_v4 = vor.u32 %v5479_v1, %v4011_v61  ;;  %v218_v8 = vadd.f32 %v217_v51, %v216_v62  ;;  %1081 = vmatpush.bf16.msra.mxu3 %v4284_v58  ;;  %v4077_v50 = vld [vmem:[#allocation2 + $0x1f0] sm:$0xf0]  ;;  %v3952_v51 = vor.u32 %v5461_v46, %v3949_v48  ;;  %vm226_vm1 = vweird.f32 %v6265_v56 }
  0x42   :  { %v4267_v5 = vld [vmem:[#allocation2 + $0x360] sm:$0xf]  ;;  %v5543_v6 = vld [vmem:[#allocation2 + $0x36c] sm:$0xf0]  ;;  %v4140_v9 = vor.u32 %v5511_v3, %v4139_v2  ;;  %1043 = vmatpush.bf16.msra.mxu0 %v3884_v63  ;;  %v4080_v52 = vor.u32 %v5493_v49, %v4077_v50  ;;  %v5525_v53 = vld [vmem:[#allocation2 + $0x2e4] sm:$0xf] }
  0x43   :  { %v3867_v7 = vld [vmem:[#allocation2 + $0x40] sm:$0xf]  ;;  %v4268_v10 = vor.u32 %v5543_v6, %v4267_v5  ;;  %v5443_v11 = vld [vmem:[#allocation2 + $0x4c] sm:$0xf0]  ;;  %219 = vadd.xlane.f32.xlu0 %v218_v8  ;;  %1056 = vmatpush.bf16.msra.mxu1 %v4012_v4  ;;  %v4205_v54 = vld [vmem:[#allocation2 + $0x2f0] sm:$0xf0] }
  0x44   :  { %v3995_v12 = vld [vmem:[#allocation2 + $0x140] sm:$0xf]  ;;  %v5475_v13 = vld [vmem:[#allocation2 + $0x14c] sm:$0xf0]  ;;  %v3868_v17 = vor.u32 %v5443_v11, %v3867_v7  ;;  %1069 = vmatpush.bf16.msra.mxu2 %v4140_v9  ;;  %v5557_v55 = vld [vmem:[#allocation2 + $0x3e4] sm:$0xf]  ;;  %v4208_v57 = vor.u32 %v5525_v53, %v4205_v54 }
  0x45   :  { %v4123_v14 = vld [vmem:[#allocation2 + $0x240] sm:$0xf]  ;;  %v5507_v15 = vld [vmem:[#allocation2 + $0x24c] sm:$0xf0]  ;;  %v3996_v19 = vor.u32 %v5475_v13, %v3995_v12  ;;  %1082 = vmatpush.bf16.msra.mxu3 %v4268_v10  ;;  %v4333_v58 = vld [vmem:[#allocation2 + $0x3f0] sm:$0xf0] }
  0x46   :  { %v4251_v16 = vld [vmem:[#allocation2 + $0x340] sm:$0xf]  ;;  %v5539_v18 = vld [vmem:[#allocation2 + $0x34c] sm:$0xf0]  ;;  %v4124_v20 = vor.u32 %v5507_v15, %v4123_v14  ;;  %1044 = vmatpush.bf16.msra.mxu0 %v3868_v17  ;;  %v5457_v59 = vld [vmem:[#allocation2 + $0xc4] sm:$0xf]  ;;  %v4336_v61 = vor.u32 %v5557_v55, %v4333_v58 }
  0x47   :  { %v4252_v21 = vor.u32 %v5539_v18, %v4251_v16  ;;  %1057 = vmatpush.bf16.msra.mxu1 %v3996_v19  ;;  %v3851_v22 = vld [vmem:[#allocation2 + $0x20] sm:$0xf]  ;;  %v5439_v23 = vld [vmem:[#allocation2 + $0x2c] sm:$0xf0]  ;;  %v3933_v60 = vld [vmem:[#allocation2 + $0xd0] sm:$0xf0] }
  0x48   :  { %1070 = vmatpush.bf16.msra.mxu2 %v4124_v20  ;;  %v3979_v24 = vld [vmem:[#allocation2 + $0x120] sm:$0xf]  ;;  %v3852_v25 = vor.u32 %v5439_v23, %v3851_v22  ;;  %v5471_v26 = vld [vmem:[#allocation2 + $0x12c] sm:$0xf0]  ;;  %v3936_v62 = vor.u32 %v5457_v59, %v3933_v60  ;;  %v5489_v63 = vld [vmem:[#allocation2 + $0x1c4] sm:$0xf] }
  0x49   :  { %1083 = vmatpush.bf16.msra.mxu3 %v4252_v21  ;;  %v4107_v27 = vld [vmem:[#allocation2 + $0x220] sm:$0xf]  ;;  %v5503_v28 = vld [vmem:[#allocation2 + $0x22c] sm:$0xf0]  ;;  %v3980_v29 = vor.u32 %v5471_v26, %v3979_v24  ;;  %v4061_v1 = vld [vmem:[#allocation2 + $0x1d0] sm:$0xf0] }
  0x4a   :  { %v4108_v30 = vor.u32 %v5503_v28, %v4107_v27  ;;  %v4235_v31 = vld [vmem:[#allocation2 + $0x320] sm:$0xf]  ;;  %v5535_v32 = vld [vmem:[#allocation2 + $0x32c] sm:$0xf0]  ;;  %1045 = vmatpush.bf16.msra.mxu0 %v3852_v25  ;;  %v5521_v2 = vld [vmem:[#allocation2 + $0x2c4] sm:$0xf]  ;;  %v4064_v3 = vor.u32 %v5489_v63, %v4061_v1 }
  0x4b   :  { %v4236_v34 = vor.u32 %v5535_v32, %v4235_v31  ;;  %1058 = vmatpush.bf16.msra.mxu1 %v3980_v29  ;;  %v3835_v35 = vld [vmem:[#allocation2] sm:$0xf]  ;;  %v5435_v36 = vld [vmem:[#allocation2 + $0xc] sm:$0xf0]  ;;  %v4189_v4 = vld [vmem:[#allocation2 + $0x2d0] sm:$0xf0] }
  0x4c   :  { %1071 = vmatpush.bf16.msra.mxu2 %v4108_v30  ;;  %v3963_v37 = vld [vmem:[#allocation2 + $0x100] sm:$0xf]  ;;  %v3836_v38 = vor.u32 %v5435_v36, %v3835_v35  ;;  %v5467_v39 = vld [vmem:[#allocation2 + $0x10c] sm:$0xf0]  ;;  %v5553_v5 = vld [vmem:[#allocation2 + $0x3c4] sm:$0xf]  ;;  %v4192_v8 = vor.u32 %v5521_v2, %v4189_v4 }
  0x4d   :  { %1084 = vmatpush.bf16.msra.mxu3 %v4236_v34  ;;  %v4091_v40 = vld [vmem:[#allocation2 + $0x200] sm:$0xf]  ;;  %v5499_v41 = vld [vmem:[#allocation2 + $0x20c] sm:$0xf0]  ;;  %v3964_v42 = vor.u32 %v5467_v39, %v3963_v37  ;;  %v4317_v6 = vld [vmem:[#allocation2 + $0x3d0] sm:$0xf0] }
  0x4e   :  { %v4092_v43 = vor.u32 %v5499_v41, %v4091_v40  ;;  %v4219_v44 = vld [vmem:[#allocation2 + $0x300] sm:$0xf]  ;;  %v5531_v45 = vld [vmem:[#allocation2 + $0x30c] sm:$0xf0]  ;;  %1046 = vmatpush.bf16.msra.mxu0 %v3836_v38  ;;  %v222_v7 = vmul.f32 512.0, %v6265_v56  ;;  %v4320_v9 = vor.u32 %v5553_v5, %v4317_v6 }
  0x4f   :  { %v4220_v47 = vor.u32 %v5531_v45, %v4219_v44  ;;  %1059 = vmatpush.bf16.msra.mxu1 %v3964_v42  ;;  %v5453_v10 = vld [vmem:[#allocation2 + $0xa4] sm:$0xf]  ;;  %v3917_v11 = vld [vmem:[#allocation2 + $0xb0] sm:$0xf0] }
  0x50   :  { %1072 = vmatpush.bf16.msra.mxu2 %v4092_v43  ;;  %v5485_v12 = vld [vmem:[#allocation2 + $0x1a4] sm:$0xf]  ;;  %v3920_v13 = vor.u32 %v5453_v10, %v3917_v11  ;;  %v4045_v14 = vld [vmem:[#allocation2 + $0x1b0] sm:$0xf0]  ;;  %v223_v25 = vsub.f32 1.0, %v222_v7 }
  0x51   :  { %1085 = vmatpush.bf16.msra.mxu3 %v4220_v47  ;;  %v5517_v15 = vld [vmem:[#allocation2 + $0x2a4] sm:$0xf]  ;;  %v4173_v16 = vld [vmem:[#allocation2 + $0x2b0] sm:$0xf0]  ;;  %v4048_v17 = vor.u32 %v5485_v12, %v4045_v14 }
  0x52   :  { %1091 = vmatpush.bf16.msrb.mxu0 %v3952_v51  ;;  %v4176_v18 = vor.u32 %v5517_v15, %v4173_v16  ;;  %v5549_v19 = vld [vmem:[#allocation2 + $0x3a4] sm:$0xf]  ;;  %v4301_v20 = vld [vmem:[#allocation2 + $0x3b0] sm:$0xf0]  ;;  %v224_v38 = vmul.f32 %v6265_v56, %v223_v25 }
  0x53   :  { %1104 = vmatpush.bf16.msrb.mxu1 %v4080_v52  ;;  %v4304_v21 = vor.u32 %v5549_v19, %v4301_v20  ;;  %v5449_v22 = vld [vmem:[#allocation2 + $0x84] sm:$0xf]  ;;  %v3901_v23 = vld [vmem:[#allocation2 + $0x90] sm:$0xf0] }
  0x54   :  { %1117 = vmatpush.bf16.msrb.mxu2 %v4208_v57  ;;  %v5481_v24 = vld [vmem:[#allocation2 + $0x184] sm:$0xf]  ;;  %v3904_v26 = vor.u32 %v5449_v22, %v3901_v23  ;;  %v4029_v27 = vld [vmem:[#allocation2 + $0x190] sm:$0xf0]  ;;  %v225_v51 = vadd.f32 %v6265_v56, %v224_v38  ;;  %v3955_v38 = vld [vmem:[#allocation2 + $0xe8] sm:$0xf] }
  0x55   :  { %1130 = vmatpush.bf16.msrb.mxu3 %v4336_v61  ;;  %v5513_v28 = vld [vmem:[#allocation2 + $0x284] sm:$0xf]  ;;  %v4032_v29 = vor.u32 %v5481_v24, %v4029_v27  ;;  %v4157_v30 = vld [vmem:[#allocation2 + $0x290] sm:$0xf0] }
  0x56   :  { %1092 = vmatpush.bf16.msrb.mxu0 %v3936_v62  ;;  %v5545_v31 = vld [vmem:[#allocation2 + $0x384] sm:$0xf]  ;;  %v4285_v32 = vld [vmem:[#allocation2 + $0x390] sm:$0xf0]  ;;  %v4160_v33 = vor.u32 %v5513_v28, %v4157_v30  ;;  %v227_v6 = vsel %vm226_vm1, %v6265_v56, %v225_v51 }
  0x57   :  { %1105 = vmatpush.bf16.msrb.mxu1 %v4064_v3  ;;  %v4288_v34 = vor.u32 %v5545_v31, %v4285_v32  ;;  %v5445_v35 = vld [vmem:[#allocation2 + $0x64] sm:$0xf]  ;;  %v3885_v36 = vld [vmem:[#allocation2 + $0x70] sm:$0xf0] }
  0x58   :  { %1118 = vmatpush.bf16.msrb.mxu2 %v4192_v8  ;;  %v5477_v37 = vld [vmem:[#allocation2 + $0x164] sm:$0xf]  ;;  %v3888_v39 = vor.u32 %v5445_v35, %v3885_v36  ;;  %v4013_v40 = vld [vmem:[#allocation2 + $0x170] sm:$0xf0] }
  0x59   :  { %1131 = vmatpush.bf16.msrb.mxu3 %v4320_v9  ;;  %v5509_v41 = vld [vmem:[#allocation2 + $0x264] sm:$0xf]  ;;  %v4141_v42 = vld [vmem:[#allocation2 + $0x270] sm:$0xf0]  ;;  %v4016_v43 = vor.u32 %v5477_v37, %v4013_v40  ;;  %v4083_v40 = vld [vmem:[#allocation2 + $0x1e8] sm:$0xf] }
  0x5a   :  { %1093 = vmatpush.bf16.msrb.mxu0 %v3920_v13  ;;  %v4144_v44 = vor.u32 %v5509_v41, %v4141_v42  ;;  %v5541_v45 = vld [vmem:[#allocation2 + $0x364] sm:$0xf]  ;;  %v4269_v46 = vld [vmem:[#allocation2 + $0x370] sm:$0xf0]  ;;  %v5496_v41 = vld [vmem:[#allocation2 + $0x1f4] sm:$0xf0] }
  0x5b   :  { %1106 = vmatpush.bf16.msrb.mxu1 %v4048_v17  ;;  %v4272_v47 = vor.u32 %v5541_v45, %v4269_v46  ;;  %v5441_v48 = vld [vmem:[#allocation2 + $0x44] sm:$0xf]  ;;  %v3869_v49 = vld [vmem:[#allocation2 + $0x50] sm:$0xf0]  ;;  %v4211_v42 = vld [vmem:[#allocation2 + $0x2e8] sm:$0xf] }
  0x5c   :  { %1119 = vmatpush.bf16.msrb.mxu2 %v4176_v18  ;;  %v5473_v50 = vld [vmem:[#allocation2 + $0x144] sm:$0xf]  ;;  %v3872_v52 = vor.u32 %v5441_v48, %v3869_v49  ;;  %v3997_v53 = vld [vmem:[#allocation2 + $0x150] sm:$0xf0]  ;;  %v5560_v45 = vld [vmem:[#allocation2 + $0x3f4] sm:$0xf0] }
  0x5d   :  { %1132 = vmatpush.bf16.msrb.mxu3 %v4304_v21  ;;  %v5505_v54 = vld [vmem:[#allocation2 + $0x244] sm:$0xf]  ;;  %v4125_v55 = vld [vmem:[#allocation2 + $0x250] sm:$0xf0]  ;;  %v4000_v57 = vor.u32 %v5473_v50, %v3997_v53  ;;  %v3939_v48 = vld [vmem:[#allocation2 + $0xc8] sm:$0xf] }
  0x5e   :  { %1094 = vmatpush.bf16.msrb.mxu0 %v3904_v26  ;;  %v4128_v58 = vor.u32 %v5505_v54, %v4125_v55  ;;  %v5537_v59 = vld [vmem:[#allocation2 + $0x344] sm:$0xf]  ;;  %v4253_v60 = vld [vmem:[#allocation2 + $0x350] sm:$0xf0]  ;;  %v5460_v49 = vld [vmem:[#allocation2 + $0xd4] sm:$0xf0]  ;;  %v4084_v54 = vor.u32 %v5496_v41, %v4083_v40 }
  0x5f   :  { %1107 = vmatpush.bf16.msrb.mxu1 %v4032_v29  ;;  %v5437_v61 = vld [vmem:[#allocation2 + $0x24] sm:$0xf]  ;;  %v4256_v62 = vor.u32 %v5537_v59, %v4253_v60  ;;  %v3853_v63 = vld [vmem:[#allocation2 + $0x30] sm:$0xf0]  ;;  %v6136_v29 = vmov 269488144  }
  0x60   :  { %1120 = vmatpush.bf16.msrb.mxu2 %v4160_v33  ;;  %v5469_v1 = vld [vmem:[#allocation2 + $0x124] sm:$0xf]  ;;  %v3981_v2 = vld [vmem:[#allocation2 + $0x130] sm:$0xf0]  ;;  %v3856_v7 = vor.u32 %v5437_v61, %v3853_v63  ;;  %v242_v30 = vunpack.c.l.s4 %v6136_v29  ;;  %v4067_v60 = vld [vmem:[#allocation2 + $0x1c8] sm:$0xf] }
  0x61   :  { %1133 = vmatpush.bf16.msrb.mxu3 %v4288_v34  ;;  %v5501_v3 = vld [vmem:[#allocation2 + $0x224] sm:$0xf]  ;;  %v4109_v4 = vld [vmem:[#allocation2 + $0x230] sm:$0xf0]  ;;  %v3984_v8 = vor.u32 %v5469_v1, %v3981_v2  ;;  %v5492_v61 = vld [vmem:[#allocation2 + $0x1d4] sm:$0xf0] }
  0x62   :  { %1095 = vmatpush.bf16.msrb.mxu0 %v3888_v39  ;;  %v5533_v5 = vld [vmem:[#allocation2 + $0x324] sm:$0xf]  ;;  %v4237_v9 = vld [vmem:[#allocation2 + $0x330] sm:$0xf0]  ;;  %v4112_v11 = vor.u32 %v5501_v3, %v4109_v4  ;;  %v243_v33 = vunpack.c.0.s8 %v242_v30  ;;  %v5464_v39 = vld [vmem:[#allocation2 + $0xf4] sm:$0xf0]  ;;  %v3940_v3 = vor.u32 %v5460_v49, %v3939_v48  ;;  %v4068_v4 = vor.u32 %v5492_v61, %v4067_v60 }
  0x63   :  { %1108 = vmatpush.bf16.msrb.mxu1 %v4016_v43  ;;  %v5433_v10 = vld [vmem:[#allocation2 + $0x4] sm:$0xf]  ;;  %v3837_v12 = vld [vmem:[#allocation2 + $0x10] sm:$0xf0]  ;;  %v4240_v16 = vor.u32 %v5533_v5, %v4237_v9  ;;  %v5528_v43 = vld [vmem:[#allocation2 + $0x2f4] sm:$0xf0] }
  0x64   :  { %1121 = vmatpush.bf16.msrb.mxu2 %v4144_v44  ;;  %v5465_v13 = vld [vmem:[#allocation2 + $0x104] sm:$0xf]  ;;  %v3965_v14 = vld [vmem:[#allocation2 + $0x110] sm:$0xf0]  ;;  %v3840_v56 = vor.u32 %v5433_v10, %v3837_v12  ;;  %v4339_v44 = vld [vmem:[#allocation2 + $0x3e8] sm:$0xf] }
  0x65   :  { %1134 = vmatpush.bf16.msrb.mxu3 %v4272_v47  ;;  %v5497_v17 = vld [vmem:[#allocation2 + $0x204] sm:$0xf]  ;;  %v4093_v18 = vld [vmem:[#allocation2 + $0x210] sm:$0xf0]  ;;  %v3968_v22 = vor.u32 %v5465_v13, %v3965_v14  ;;  %v4340_v59 = vor.u32 %v5560_v45, %v4339_v44  ;;  %v5524_v63 = vld [vmem:[#allocation2 + $0x2d4] sm:$0xf0] }
  0x66   :  { %1096 = vmatpush.bf16.msrb.mxu0 %v3872_v52  ;;  %v5529_v20 = vld [vmem:[#allocation2 + $0x304] sm:$0xf]  ;;  %v4221_v21 = vld [vmem:[#allocation2 + $0x310] sm:$0xf0]  ;;  %v4096_v24 = vor.u32 %v5497_v17, %v4093_v18  ;;  %v4323_v1 = vld [vmem:[#allocation2 + $0x3c8] sm:$0xf] }
  0x67   :  { %1109 = vmatpush.bf16.msrb.mxu1 %v4000_v57  ;;  %v4224_v25 = vor.u32 %v5529_v20, %v4221_v21  ;;  %v5556_v2 = vld [vmem:[#allocation2 + $0x3d4] sm:$0xf0]  ;;  %v3923_v5 = vld [vmem:[#allocation2 + $0xa8] sm:$0xf] }
  0x68   :  { %1122 = vmatpush.bf16.msrb.mxu2 %v4128_v58  ;;  %v4212_v58 = vor.u32 %v5528_v43, %v4211_v42  ;;  %v4051_v9 = vld [vmem:[#allocation2 + $0x1a8] sm:$0xf]  ;;  %v5488_v10 = vld [vmem:[#allocation2 + $0x1b4] sm:$0xf0] }
  0x69   :  { %1135 = vmatpush.bf16.msrb.mxu3 %v4256_v62  ;;  %v4195_v62 = vld [vmem:[#allocation2 + $0x2c8] sm:$0xf]  ;;  %v5520_v12 = vld [vmem:[#allocation2 + $0x2b4] sm:$0xf0] }
  0x6a   :  { %1097 = vmatpush.bf16.msrb.mxu0 %v3856_v7  ;;  %v4196_v7 = vor.u32 %v5524_v63, %v4195_v62  ;;  %v4307_v13 = vld [vmem:[#allocation2 + $0x3a8] sm:$0xf]  ;;  %v5552_v14 = vld [vmem:[#allocation2 + $0x3b4] sm:$0xf0] }
  0x6b   :  { %1110 = vmatpush.bf16.msrb.mxu1 %v3984_v8  ;;  %v4324_v8 = vor.u32 %v5556_v2, %v4323_v1  ;;  %v3907_v17 = vld [vmem:[#allocation2 + $0x88] sm:$0xf]  ;;  %v5452_v18 = vld [vmem:[#allocation2 + $0x94] sm:$0xf0]  ;;  %v4308_v20 = vor.u32 %v5552_v14, %v4307_v13 }
  0x6c   :  { %1123 = vmatpush.bf16.msrb.mxu2 %v4112_v11  ;;  %v4179_v11 = vld [vmem:[#allocation2 + $0x2a8] sm:$0xf]  ;;  %v5448_v29 = vld [vmem:[#allocation2 + $0x74] sm:$0xf0] }
  0x6d   :  { %1136 = vmatpush.bf16.msrb.mxu3 %v4240_v16  ;;  %v4052_v16 = vor.u32 %v5488_v10, %v4051_v9  ;;  %v4035_v21 = vld [vmem:[#allocation2 + $0x188] sm:$0xf]  ;;  %v5444_v41 = vld [vmem:[#allocation2 + $0x54] sm:$0xf0] }
  0x6e   :  { %1098 = vmatpush.bf16.msrb.mxu0 %v3840_v56  ;;  %v5484_v56 = vld [vmem:[#allocation2 + $0x194] sm:$0xf0]  ;;  %v3875_v40 = vld [vmem:[#allocation2 + $0x48] sm:$0xf] }
  0x6f   :  { %1111 = vmatpush.bf16.msrb.mxu1 %v3968_v22  ;;  %v4163_v22 = vld [vmem:[#allocation2 + $0x288] sm:$0xf]  ;;  %v5476_v45 = vld [vmem:[#allocation2 + $0x154] sm:$0xf0] }
  0x70   :  { %1124 = vmatpush.bf16.msrb.mxu2 %v4096_v24  ;;  %v4291_v24 = vld [vmem:[#allocation2 + $0x388] sm:$0xf]  ;;  %v5540_v49 = vld [vmem:[#allocation2 + $0x354] sm:$0xf0] }
  0x71   :  { %1137 = vmatpush.bf16.msrb.mxu3 %v4224_v25  ;;  %v5548_v25 = vld [vmem:[#allocation2 + $0x394] sm:$0xf0]  ;;  %v4003_v44 = vld [vmem:[#allocation2 + $0x148] sm:$0xf] }
  0x72   :  { %v4259_v48 = vld [vmem:[#allocation2 + $0x348] sm:$0xf]  ;;  %v5472_v61 = vld [vmem:[#allocation2 + $0x134] sm:$0xf0] }
  0x73   :  { %v3987_v60 = vld [vmem:[#allocation2 + $0x128] sm:$0xf]  ;;  %v5504_v63 = vld [vmem:[#allocation2 + $0x234] sm:$0xf0] }
  0x74   :  { %v4115_v62 = vld [vmem:[#allocation2 + $0x228] sm:$0xf]  ;;  %v5536_v2 = vld [vmem:[#allocation2 + $0x334] sm:$0xf0] }
  0x75   :  { %v4243_v1 = vld [vmem:[#allocation2 + $0x328] sm:$0xf]  ;;  %v4116_v9 = vor.u32 %v5504_v63, %v4115_v62  ;;  %v5532_v14 = vld [vmem:[#allocation2 + $0x314] sm:$0xf0]  ;;  %v5514_v62 = vld [vmem:[#allocation2 + $0x28c] sm:$0xf] }
  0x76   :  { %v4244_v10 = vor.u32 %v5536_v2, %v4243_v1  ;;  %v4227_v13 = vld [vmem:[#allocation2 + $0x308] sm:$0xf]  ;;  %v4165_v63 = vld [vmem:[#allocation2 + $0x298] sm:$0xf0]  ;;  %v5546_v1 = vld [vmem:[#allocation2 + $0x38c] sm:$0xf] }
  0x77   :  { %v4293_v2 = vld [vmem:[#allocation2 + $0x398] sm:$0xf0] }
  0xb6   :  { %v220_v15 = vpop.xlane.xlu0 %219 }
  0xb7   :  { %v228_v19 = vmul.f32 %v227_v6, %v220_v15  ;;  %v5456_v6 = vld [vmem:[#allocation2 + $0xb4] sm:$0xf0] }
  0xb8   :  { %v3924_v15 = vor.u32 %v5456_v6, %v3923_v5  ;;  %v3988_v5 = vor.u32 %v5472_v61, %v3987_v60  ;;  %v5436_v6 = vld [vmem:[#allocation2 + $0x14] sm:$0xf0]  ;;  %v5482_v60 = vld [vmem:[#allocation2 + $0x18c] sm:$0xf]  ;;  %v4037_v61 = vld [vmem:[#allocation2 + $0x198] sm:$0xf0] }
  0xb9   :  { %v229_v23 = vadd.f32 1e-08, %v228_v19  ;;  %v4180_v19 = vor.u32 %v5520_v12, %v4179_v11  ;;  %v4099_v11 = vld [vmem:[#allocation2 + $0x208] sm:$0xf]  ;;  %v5500_v12 = vld [vmem:[#allocation2 + $0x214] sm:$0xf0] }
  0xbb   :  { %5863 = vrsqrt.f32 %v229_v23  ;;  %vm236_vm3 = vweird.f32 %v229_v23 }
  0xc1   :  { %v5864_v26 = vpop.eup %5863 }
  0xc2   :  { %v231_v27 = vmul.f32 %v5864_v26, %v229_v23  ;;  %vm237_vm2 = vweird.f32 %v5864_v26  ;;  %v5516_v23 = vld [vmem:[#allocation2 + $0x294] sm:$0xf0] }
  0xc3   :  { %vm238_vm4 = vmor %vm236_vm3, %vm237_vm2  ;;  %v4164_v30 = vor.u32 %v5516_v23, %v4163_v22  ;;  %v5558_v22 = vld [vmem:[#allocation2 + $0x3ec] sm:$0xf]  ;;  %v4341_v23 = vld [vmem:[#allocation2 + $0x3f8] sm:$0xf0] }
  0xc4   :  { %v232_v28 = vmul.f32 %v5864_v26, %v231_v27  ;;  %v4036_v27 = vor.u32 %v5484_v56, %v4035_v21  ;;  %v4213_v56 = vld [vmem:[#allocation2 + $0x2f8] sm:$0xf0] }
  0xc6   :  { %v233_v31 = vmul.f32 0.5, %v232_v28  ;;  %v3891_v28 = vld [vmem:[#allocation2 + $0x68] sm:$0xf] }
  0xc8   :  { %v234_v32 = vsub.f32 1.5, %v233_v31  ;;  %v4292_v31 = vor.u32 %v5548_v25, %v4291_v24  ;;  %v4100_v24 = vor.u32 %v5500_v12, %v4099_v11  ;;  %v4228_v25 = vor.u32 %v5532_v14, %v4227_v13  ;;  %v5510_v11 = vld [vmem:[#allocation2 + $0x26c] sm:$0xf]  ;;  %v4149_v12 = vld [vmem:[#allocation2 + $0x278] sm:$0xf0] }
  0xc9   :  { %v5542_v13 = vld [vmem:[#allocation2 + $0x36c] sm:$0xf]  ;;  %v4277_v14 = vld [vmem:[#allocation2 + $0x378] sm:$0xf0] }
  0xca   :  { %v235_v34 = vmul.f32 %v5864_v26, %v234_v32  ;;  %v4019_v32 = vld [vmem:[#allocation2 + $0x168] sm:$0xf] }
  0xcc   :  { %v239_v35 = vsel %vm238_vm4, %v5864_v26, %v235_v34  ;;  %v3908_v26 = vor.u32 %v5452_v18, %v3907_v17  ;;  %v4147_v34 = vld [vmem:[#allocation2 + $0x268] sm:$0xf]  ;;  %v5494_v17 = vld [vmem:[#allocation2 + $0x1ec] sm:$0xf]  ;;  %v4085_v18 = vld [vmem:[#allocation2 + $0x1f8] sm:$0xf0] }
  0xcd   :  { %v244_v36 = vperm.slane %v239_v35, %v243_v33  ;;  %v5480_v33 = vld [vmem:[#allocation2 + $0x174] sm:$0xf0] }
  0xce   :  { %v5512_v35 = vld [vmem:[#allocation2 + $0x274] sm:$0xf0] }
  0xcf   :  { %v246_v37 = vmul.f32 %v244_v36, %v6257_v0  ;;  %v3956_v0 = vor.u32 %v5464_v39, %v3955_v38  ;;  %v4275_v36 = vld [vmem:[#allocation2 + $0x368] sm:$0xf]  ;;  %v3892_v38 = vor.u32 %v5448_v29, %v3891_v28  ;;  %v4020_v39 = vor.u32 %v5480_v33, %v4019_v32  ;;  %v5458_v28 = vld [vmem:[#allocation2 + $0xcc] sm:$0xf]  ;;  %v3941_v29 = vld [vmem:[#allocation2 + $0xd8] sm:$0xf0] }
  0xd0   :  { %v4148_v42 = vor.u32 %v5512_v35, %v4147_v34  ;;  %v5490_v32 = vld [vmem:[#allocation2 + $0x1cc] sm:$0xf]  ;;  %v4069_v33 = vld [vmem:[#allocation2 + $0x1d8] sm:$0xf0] }
  0xd1   :  { %248 = vst [vmem:[#allocation1] ss:$4 sm:$0xff] %v246_v37  ;;  %v5544_v37 = vld [vmem:[#allocation2 + $0x374] sm:$0xf0]  ;;  %v5522_v34 = vld [vmem:[#allocation2 + $0x2cc] sm:$0xf] }
  0xd2   :  { %v4276_v43 = vor.u32 %v5544_v37, %v4275_v36  ;;  %v4197_v35 = vld [vmem:[#allocation2 + $0x2d8] sm:$0xf0]  ;;  %v5554_v36 = vld [vmem:[#allocation2 + $0x3cc] sm:$0xf] }
  0xd3   :  { %v4325_v37 = vld [vmem:[#allocation2 + $0x3d8] sm:$0xf0] }
  0xd8   :  { %v249_v46 = vld.sshfl [vmem:[#allocation1] sm:$0xff pattern:$0x73625140]  ;;  %v250_v47 = vld.sshfl [vmem:[#allocation1 + $0x8] sm:$0xff pattern:$0x73625140] }
  0xd9   :  { %v6273_v50 = vpack.c.bf16 %v249_v46, %v249_v46  ;;  %v6275_v51 = vpack.c.bf16 %v250_v47, %v250_v47  ;;  %v251_v52 = vld.sshfl [vmem:[#allocation1 + $0x10] sm:$0xff pattern:$0x73625140]  ;;  %v252_v53 = vld.sshfl [vmem:[#allocation1 + $0x18] sm:$0xff pattern:$0x73625140] }
  0xda   :  { %v6277_v55 = vpack.c.bf16 %v251_v52, %v251_v52  ;;  %v6279_v57 = vpack.c.bf16 %v252_v53, %v252_v53  ;;  %v4131_v46 = vld [vmem:[#allocation2 + $0x248] sm:$0xf]  ;;  %v5508_v47 = vld [vmem:[#allocation2 + $0x254] sm:$0xf0]  ;;  %v3876_v52 = vor.u32 %v5444_v41, %v3875_v40  ;;  %v4004_v53 = vor.u32 %v5476_v45, %v4003_v44  ;;  %v5454_v40 = vld [vmem:[#allocation2 + $0xac] sm:$0xf] }
  0xdb   :  { %1047 = vmatmul.bf16.vlgmr.msra.gmra.mxu0 %v6273_v50  ;;  %1060 = vmatmul.bf16.vlgmr.msra.gmra.mxu1 %v6275_v51  ;;  %v3925_v41 = vld [vmem:[#allocation2 + $0xb8] sm:$0xf0]  ;;  %v5486_v44 = vld [vmem:[#allocation2 + $0x1ac] sm:$0xf] }
  0xdc   :  { %1073 = vmatmul.bf16.vlgmr.msra.gmra.mxu2 %v6277_v55  ;;  %1086 = vmatmul.bf16.vlgmr.msra.gmra.mxu3 %v6279_v57  ;;  %v4053_v45 = vld [vmem:[#allocation2 + $0x1b8] sm:$0xf0] }
  0xdd   :  { %1143 = vmatpush.bf16.msra.mxu0 %v3956_v0  ;;  %1156 = vmatpush.bf16.msra.mxu1 %v4084_v54  ;;  %v3859_v0 = vld [vmem:[#allocation2 + $0x28] sm:$0xf]  ;;  %v5440_v54 = vld [vmem:[#allocation2 + $0x34] sm:$0xf0] }
  0xde   :  { %1169 = vmatpush.bf16.msra.mxu2 %v4212_v58  ;;  %1182 = vmatpush.bf16.msra.mxu3 %v4340_v59  ;;  %v4132_v58 = vor.u32 %v5508_v47, %v4131_v46  ;;  %v4260_v59 = vor.u32 %v5540_v49, %v4259_v48  ;;  %v5518_v46 = vld [vmem:[#allocation2 + $0x2ac] sm:$0xf]  ;;  %v4181_v47 = vld [vmem:[#allocation2 + $0x2b8] sm:$0xf0] }
  0xdf   :  { %v5550_v48 = vld [vmem:[#allocation2 + $0x3ac] sm:$0xf]  ;;  %v4309_v49 = vld [vmem:[#allocation2 + $0x3b8] sm:$0xf0] }
  0xe1   :  { %1144 = vmatpush.bf16.msra.mxu0 %v3940_v3  ;;  %1157 = vmatpush.bf16.msra.mxu1 %v4068_v4  ;;  %v3843_v3 = vld [vmem:[#allocation2 + $0x8] sm:$0xf]  ;;  %v3860_v4 = vor.u32 %v5440_v54, %v3859_v0  ;;  %v5450_v0 = vld [vmem:[#allocation2 + $0x8c] sm:$0xf]  ;;  %v3909_v54 = vld [vmem:[#allocation2 + $0x98] sm:$0xf0] }
  0xe2   :  { %1170 = vmatpush.bf16.msra.mxu2 %v4196_v7  ;;  %1183 = vmatpush.bf16.msra.mxu3 %v4324_v8  ;;  %v3971_v7 = vld [vmem:[#allocation2 + $0x108] sm:$0xf]  ;;  %v5468_v8 = vld [vmem:[#allocation2 + $0x114] sm:$0xf0] }
  0xe3   :  { %v3972_v21 = vor.u32 %v5468_v8, %v3971_v7  ;;  %v4168_v7 = vor.u32 %v5514_v62, %v4165_v63  ;;  %v4296_v8 = vor.u32 %v5546_v1, %v4293_v2  ;;  %v4443_v63 = vld [vmem:[#allocation6 + $0xc0] sm:$0xf]  ;;  %v5587_v2 = vld [vmem:[#allocation6 + $0xcc] sm:$0xf0] }
  0xe5   :  { %1145 = vmatpush.bf16.msra.mxu0 %v3924_v15  ;;  %1158 = vmatpush.bf16.msra.mxu1 %v4052_v16  ;;  %v5462_v15 = vld [vmem:[#allocation2 + $0xec] sm:$0xf]  ;;  %v3957_v16 = vld [vmem:[#allocation2 + $0xf8] sm:$0xf0] }
  0xe6   :  { %1171 = vmatpush.bf16.msra.mxu2 %v4180_v19  ;;  %1184 = vmatpush.bf16.msra.mxu3 %v4308_v20  ;;  %v5526_v19 = vld [vmem:[#allocation2 + $0x2ec] sm:$0xf]  ;;  %v3844_v20 = vor.u32 %v5436_v6, %v3843_v3  ;;  %v3912_v3 = vor.u32 %v5450_v0, %v3909_v54  ;;  %v3893_v6 = vld [vmem:[#allocation2 + $0x78] sm:$0xf0]  ;;  %v4587_v0 = vld [vmem:[#allocation6 + $0x1e0] sm:$0xf] }
  0xe7   :  { %v5623_v54 = vld [vmem:[#allocation6 + $0x1ec] sm:$0xf0] }
  0xe8   :  { %v4588_v1 = vor.u32 %v5623_v54, %v4587_v0  ;;  %v5577_v0 = vld [vmem:[#allocation6 + $0x84] sm:$0xf]  ;;  %v4413_v54 = vld [vmem:[#allocation6 + $0x90] sm:$0xf0] }
  0xe9   :  { %1146 = vmatpush.bf16.msra.mxu0 %v3908_v26  ;;  %1159 = vmatpush.bf16.msra.mxu1 %v4036_v27  ;;  %v3960_v26 = vor.u32 %v5462_v15, %v3957_v16  ;;  %v4088_v27 = vor.u32 %v5494_v17, %v4085_v18  ;;  %v5442_v17 = vld [vmem:[#allocation2 + $0x4c] sm:$0xf]  ;;  %v3877_v18 = vld [vmem:[#allocation2 + $0x58] sm:$0xf0] }
  0xea   :  { %1172 = vmatpush.bf16.msra.mxu2 %v4164_v30  ;;  %1185 = vmatpush.bf16.msra.mxu3 %v4292_v31  ;;  %v4216_v30 = vor.u32 %v5526_v19, %v4213_v56  ;;  %v4344_v31 = vor.u32 %v5558_v22, %v4341_v23  ;;  %v4152_v19 = vor.u32 %v5510_v11, %v4149_v12  ;;  %v4005_v56 = vld [vmem:[#allocation2 + $0x158] sm:$0xf0]  ;;  %v5506_v22 = vld [vmem:[#allocation2 + $0x24c] sm:$0xf]  ;;  %v4555_v12 = vld [vmem:[#allocation6 + $0x1a0] sm:$0xf] }
  0xeb   :  { %1099 = vmatmul.bf16.vlgmr.msrb.gmra.mxu0 %v6273_v50  ;;  %1112 = vmatmul.bf16.vlgmr.msrb.gmra.mxu1 %v6275_v51  ;;  %v4133_v23 = vld [vmem:[#allocation2 + $0x258] sm:$0xf0] }
  0xec   :  { %1125 = vmatmul.bf16.vlgmr.msrb.gmra.mxu2 %v6277_v55  ;;  %1138 = vmatmul.bf16.vlgmr.msrb.gmra.mxu3 %v6279_v57 }
  0xed   :  { %1147 = vmatpush.bf16.msra.mxu0 %v3892_v38  ;;  %1160 = vmatpush.bf16.msra.mxu1 %v4020_v39  ;;  %v3944_v38 = vor.u32 %v5458_v28, %v3941_v29  ;;  %v4072_v39 = vor.u32 %v5490_v32, %v4069_v33  ;;  %v5438_v28 = vld [vmem:[#allocation2 + $0x2c] sm:$0xf]  ;;  %v3861_v29 = vld [vmem:[#allocation2 + $0x38] sm:$0xf0] }
  0xee   :  { %1173 = vmatpush.bf16.msra.mxu2 %v4148_v42  ;;  %1186 = vmatpush.bf16.msra.mxu3 %v4276_v43  ;;  %v4200_v42 = vor.u32 %v5522_v34, %v4197_v35  ;;  %v4328_v43 = vor.u32 %v5554_v36, %v4325_v37  ;;  %v5470_v32 = vld [vmem:[#allocation2 + $0x12c] sm:$0xf]  ;;  %v3989_v33 = vld [vmem:[#allocation2 + $0x138] sm:$0xf0] }
  0xef   :  { %v5502_v34 = vld [vmem:[#allocation2 + $0x22c] sm:$0xf]  ;;  %v4117_v35 = vld [vmem:[#allocation2 + $0x238] sm:$0xf0] }
  0xf0   :  { %v5534_v36 = vld [vmem:[#allocation2 + $0x32c] sm:$0xf]  ;;  %v4245_v37 = vld [vmem:[#allocation2 + $0x338] sm:$0xf0] }
  0xf1   :  { %1148 = vmatpush.bf16.msra.mxu0 %v3876_v52  ;;  %1161 = vmatpush.bf16.msra.mxu1 %v4004_v53  ;;  %v3928_v52 = vor.u32 %v5454_v40, %v3925_v41  ;;  %v4056_v53 = vor.u32 %v5486_v44, %v4053_v45  ;;  %v5434_v40 = vld [vmem:[#allocation2 + $0xc] sm:$0xf]  ;;  %v3845_v41 = vld [vmem:[#allocation2 + $0x18] sm:$0xf0]  ;;  %v4248_v44 = vor.u32 %v5534_v36, %v4245_v37  ;;  %v5563_v36 = vld [vmem:[#allocation6 + $0xc] sm:$0xf0] }
  0xf2   :  { %1174 = vmatpush.bf16.msra.mxu2 %v4132_v58  ;;  %1187 = vmatpush.bf16.msra.mxu3 %v4260_v59  ;;  %v4184_v58 = vor.u32 %v5518_v46, %v4181_v47  ;;  %v4312_v59 = vor.u32 %v5550_v48, %v4309_v49  ;;  %v3973_v45 = vld [vmem:[#allocation2 + $0x118] sm:$0xf0]  ;;  %v5498_v46 = vld [vmem:[#allocation2 + $0x20c] sm:$0xf]  ;;  %v5589_v37 = vld [vmem:[#allocation6 + $0xe4] sm:$0xf] }
  0xf3   :  { %v4101_v47 = vld [vmem:[#allocation2 + $0x218] sm:$0xf0]  ;;  %v5530_v48 = vld [vmem:[#allocation2 + $0x30c] sm:$0xf] }
  0xf4   :  { %v4229_v49 = vld [vmem:[#allocation2 + $0x318] sm:$0xf0] }
  0xf5   :  { %1149 = vmatpush.bf16.msra.mxu0 %v3860_v4  ;;  %1162 = vmatpush.bf16.msra.mxu1 %v3988_v5  ;;  %v4040_v4 = vor.u32 %v5482_v60, %v4037_v61  ;;  %v5446_v5 = vld [vmem:[#allocation2 + $0x6c] sm:$0xf]  ;;  %v4104_v60 = vor.u32 %v5498_v46, %v4101_v47  ;;  %v4232_v61 = vor.u32 %v5530_v48, %v4229_v49  ;;  %v4491_v46 = vld [vmem:[#allocation6 + $0x120] sm:$0xf]  ;;  %v5599_v47 = vld [vmem:[#allocation6 + $0x12c] sm:$0xf0] }
  0xf6   :  { %1175 = vmatpush.bf16.msra.mxu2 %v4116_v9  ;;  %1188 = vmatpush.bf16.msra.mxu3 %v4244_v10  ;;  %v5478_v9 = vld [vmem:[#allocation2 + $0x16c] sm:$0xf]  ;;  %v4021_v10 = vld [vmem:[#allocation2 + $0x178] sm:$0xf0]  ;;  %v3896_v15 = vor.u32 %v5446_v5, %v3893_v6  ;;  %v4715_v5 = vld [vmem:[#allocation6 + $0x2e0] sm:$0xf] }
  0xf7   :  { %v4024_v16 = vor.u32 %v5478_v9, %v4021_v10  ;;  %v5655_v6 = vld [vmem:[#allocation6 + $0x2ec] sm:$0xf0]  ;;  %v4427_v9 = vld [vmem:[#allocation6 + $0xa0] sm:$0xf] }
  0xf8   :  { %v5583_v10 = vld [vmem:[#allocation6 + $0xac] sm:$0xf0]  ;;  %v4683_v48 = vld [vmem:[#allocation6 + $0x2a0] sm:$0xf] }
  0xf9   :  { %1150 = vmatpush.bf16.msra.mxu0 %v3844_v20  ;;  %1163 = vmatpush.bf16.msra.mxu1 %v3972_v21  ;;  %v4280_v20 = vor.u32 %v5542_v13, %v4277_v14  ;;  %v5474_v21 = vld [vmem:[#allocation2 + $0x14c] sm:$0xf]  ;;  %v5615_v13 = vld [vmem:[#allocation6 + $0x1ac] sm:$0xf0]  ;;  %v4699_v14 = vld [vmem:[#allocation6 + $0x2c0] sm:$0xf] }
  0xfa   :  { %1176 = vmatpush.bf16.msra.mxu2 %v4100_v24  ;;  %1189 = vmatpush.bf16.msra.mxu3 %v4228_v25  ;;  %v5538_v24 = vld [vmem:[#allocation2 + $0x34c] sm:$0xf]  ;;  %v4261_v25 = vld [vmem:[#allocation2 + $0x358] sm:$0xf0] }
  0xfc   :  { %1151 = vmatmul.bf16.vlgmr.msra.gmra.mxu0 %v6273_v50  ;;  %1164 = vmatmul.bf16.vlgmr.msra.gmra.mxu1 %v6275_v51 }
  0xfd   :  { %1195 = vmatpush.bf16.msrb.mxu0 %v3960_v26  ;;  %1208 = vmatpush.bf16.msrb.mxu1 %v4088_v27  ;;  %v3880_v26 = vor.u32 %v5442_v17, %v3877_v18  ;;  %v4008_v27 = vor.u32 %v5474_v21, %v4005_v56  ;;  %v4428_v17 = vor.u32 %v5583_v10, %v4427_v9  ;;  %v4411_v18 = vld [vmem:[#allocation6 + $0x80] sm:$0xf]  ;;  %v5639_v9 = vld [vmem:[#allocation6 + $0x26c] sm:$0xf0] }
  0xfe   :  { %1221 = vmatpush.bf16.msrb.mxu2 %v4216_v30  ;;  %1234 = vmatpush.bf16.msrb.mxu3 %v4344_v31  ;;  %v4136_v30 = vor.u32 %v5506_v22, %v4133_v23  ;;  %v4264_v31 = vor.u32 %v5538_v24, %v4261_v25  ;;  %v4539_v21 = vld [vmem:[#allocation6 + $0x180] sm:$0xf] }
  0xff   :  { %1177 = vmatmul.bf16.vlgmr.msra.gmra.mxu2 %v6277_v55  ;;  %1190 = vmatmul.bf16.vlgmr.msra.gmra.mxu3 %v6279_v57  ;;  %v4395_v56 = vld [vmem:[#allocation6 + $0x60] sm:$0xf] }
 0x100   :  { %v4523_v23 = vld [vmem:[#allocation6 + $0x160] sm:$0xf] }
 0x101   :  { %1196 = vmatpush.bf16.msrb.mxu0 %v3944_v38  ;;  %1209 = vmatpush.bf16.msrb.mxu1 %v4072_v39  ;;  %v3864_v38 = vor.u32 %v5438_v28, %v3861_v29  ;;  %v3992_v39 = vor.u32 %v5470_v32, %v3989_v33  ;;  %v4379_v25 = vld [vmem:[#allocation6 + $0x40] sm:$0xf]  ;;  %v5603_v29 = vld [vmem:[#allocation6 + $0x14c] sm:$0xf0] }
 0x102   :  { %1222 = vmatpush.bf16.msrb.mxu2 %v4200_v42  ;;  %1235 = vmatpush.bf16.msrb.mxu3 %v4328_v43  ;;  %v5466_v42 = vld [vmem:[#allocation2 + $0x10c] sm:$0xf]  ;;  %v4120_v43 = vor.u32 %v5502_v34, %v4117_v35  ;;  %v4507_v28 = vld [vmem:[#allocation6 + $0x140] sm:$0xf]  ;;  %v5567_v33 = vld [vmem:[#allocation6 + $0x2c] sm:$0xf0] }
 0x103   :  { %v4363_v32 = vld [vmem:[#allocation6 + $0x20] sm:$0xf] }
 0x104   :  { %v4364_v34 = vor.u32 %v5567_v33, %v4363_v32  ;;  %v4347_v35 = vld [vmem:[#allocation6] sm:$0xf] }
 0x105   :  { %1197 = vmatpush.bf16.msrb.mxu0 %v3928_v52  ;;  %1210 = vmatpush.bf16.msrb.mxu1 %v4056_v53  ;;  %v4459_v52 = vld [vmem:[#allocation6 + $0xe0] sm:$0xf]  ;;  %v5591_v53 = vld [vmem:[#allocation6 + $0xec] sm:$0xf0] }
 0x106   :  { %1223 = vmatpush.bf16.msrb.mxu2 %v4184_v58  ;;  %1236 = vmatpush.bf16.msrb.mxu3 %v4312_v59  ;;  %v3848_v58 = vor.u32 %v5434_v40, %v3845_v41  ;;  %v3976_v59 = vor.u32 %v5466_v42, %v3973_v45  ;;  %v4460_v62 = vor.u32 %v5591_v53, %v4459_v52  ;;  %v5585_v41 = vld [vmem:[#allocation6 + $0xc4] sm:$0xf]  ;;  %v4445_v42 = vld [vmem:[#allocation6 + $0xd0] sm:$0xf0]  ;;  %v5647_v53 = vld [vmem:[#allocation6 + $0x2ac] sm:$0xf0] }
 0x107   :  { %v4429_v45 = vld [vmem:[#allocation6 + $0xb0] sm:$0xf0]  ;;  %v4492_v52 = vor.u32 %v5599_v47, %v4491_v46  ;;  %v4843_v32 = vld [vmem:[#allocation6 + $0x3e0] sm:$0xf]  ;;  %v5601_v47 = vld [vmem:[#allocation6 + $0x144] sm:$0xf] }
 0x109   :  { %1198 = vmatpush.bf16.msrb.mxu0 %v3912_v3  ;;  %1211 = vmatpush.bf16.msrb.mxu1 %v4040_v4  ;;  %v4571_v3 = vld [vmem:[#allocation6 + $0x1c0] sm:$0xf]  ;;  %v5619_v4 = vld [vmem:[#allocation6 + $0x1cc] sm:$0xf0] }
 0x10a   :  { %1224 = vmatpush.bf16.msrb.mxu2 %v4168_v7  ;;  %1237 = vmatpush.bf16.msrb.mxu3 %v4296_v8  ;;  %v4716_v7 = vor.u32 %v5655_v6, %v4715_v5  ;;  %v4444_v8 = vor.u32 %v5587_v2, %v4443_v63  ;;  %v4572_v11 = vor.u32 %v5619_v4, %v4571_v3  ;;  %v5643_v63 = vld [vmem:[#allocation6 + $0x28c] sm:$0xf0]  ;;  %v5621_v2 = vld [vmem:[#allocation6 + $0x1e4] sm:$0xf]  ;;  %v4589_v3 = vld [vmem:[#allocation6 + $0x1f0] sm:$0xf0] }
 0x10b   :  { %v4416_v4 = vor.u32 %v5577_v0, %v4413_v54  ;;  %v4592_v5 = vor.u32 %v5621_v2, %v4589_v3  ;;  %v5573_v6 = vld [vmem:[#allocation6 + $0x64] sm:$0xf]  ;;  %v4685_v2 = vld [vmem:[#allocation6 + $0x2b0] sm:$0xf0] }
 0x10d   :  { %1199 = vmatpush.bf16.msrb.mxu0 %v3896_v15  ;;  %1212 = vmatpush.bf16.msrb.mxu1 %v4024_v16  ;;  %v5651_v15 = vld [vmem:[#allocation6 + $0x2cc] sm:$0xf0] }
 0x10e   :  { %1225 = vmatpush.bf16.msrb.mxu2 %v4152_v19  ;;  %1238 = vmatpush.bf16.msrb.mxu3 %v4280_v20  ;;  %v4700_v16 = vor.u32 %v5651_v15, %v4699_v14  ;;  %v4556_v19 = vor.u32 %v5615_v13, %v4555_v12  ;;  %v5579_v20 = vld [vmem:[#allocation6 + $0x8c] sm:$0xf0]  ;;  %v5617_v12 = vld [vmem:[#allocation6 + $0x1c4] sm:$0xf]  ;;  %v4381_v14 = vld [vmem:[#allocation6 + $0x50] sm:$0xf0] }
 0x10f   :  { %v5569_v13 = vld [vmem:[#allocation6 + $0x44] sm:$0xf]  ;;  %v4573_v15 = vld [vmem:[#allocation6 + $0x1d0] sm:$0xf0] }
 0x111   :  { %1200 = vmatpush.bf16.msrb.mxu0 %v3880_v26  ;;  %1213 = vmatpush.bf16.msrb.mxu1 %v4008_v27  ;;  %v5571_v27 = vld [vmem:[#allocation6 + $0x4c] sm:$0xf0] }
 0x112   :  { %1226 = vmatpush.bf16.msrb.mxu2 %v4136_v30  ;;  %1239 = vmatpush.bf16.msrb.mxu3 %v4264_v31  ;;  %v4380_v30 = vor.u32 %v5571_v27, %v4379_v25  ;;  %v4508_v31 = vor.u32 %v5603_v29, %v4507_v28  ;;  %v5609_v25 = vld [vmem:[#allocation6 + $0x184] sm:$0xf]  ;;  %v4349_v27 = vld [vmem:[#allocation6 + $0x10] sm:$0xf0] }
 0x113   :  { %v4541_v28 = vld [vmem:[#allocation6 + $0x190] sm:$0xf0] }
 0x114   :  { %v4544_v29 = vor.u32 %v5609_v25, %v4541_v28  ;;  %v4637_v28 = vld [vmem:[#allocation6 + $0x250] sm:$0xf0] }
 0x115   :  { %1201 = vmatpush.bf16.msrb.mxu0 %v3864_v38  ;;  %1214 = vmatpush.bf16.msrb.mxu1 %v3992_v39  ;;  %v4461_v38 = vld [vmem:[#allocation6 + $0xf0] sm:$0xf0]  ;;  %v4348_v39 = vor.u32 %v5563_v36, %v4347_v35  ;;  %v5605_v35 = vld [vmem:[#allocation6 + $0x164] sm:$0xf] }
 0x116   :  { %1227 = vmatpush.bf16.msrb.mxu2 %v4120_v43  ;;  %1240 = vmatpush.bf16.msrb.mxu3 %v4248_v44  ;;  %v4464_v40 = vor.u32 %v5589_v37, %v4461_v38  ;;  %v4448_v43 = vor.u32 %v5585_v41, %v4445_v42  ;;  %v5581_v44 = vld [vmem:[#allocation6 + $0xa4] sm:$0xf]  ;;  %v4525_v36 = vld [vmem:[#allocation6 + $0x170] sm:$0xf0] }
 0x117   :  { %v4432_v49 = vor.u32 %v5581_v44, %v4429_v45  ;;  %v4717_v41 = vld [vmem:[#allocation6 + $0x2f0] sm:$0xf0]  ;;  %v4827_v44 = vld [vmem:[#allocation6 + $0x3c0] sm:$0xf]  ;;  %v5683_v45 = vld [vmem:[#allocation6 + $0x3cc] sm:$0xf0] }
 0x118   :  { %v4828_v46 = vor.u32 %v5683_v45, %v4827_v44 }
 0x119   :  { %1202 = vmatpush.bf16.msrb.mxu0 %v3848_v58  ;;  %1215 = vmatpush.bf16.msrb.mxu1 %v3976_v59  ;;  %v4684_v58 = vor.u32 %v5647_v53, %v4683_v48  ;;  %v4475_v59 = vld [vmem:[#allocation6 + $0x100] sm:$0xf]  ;;  %v4509_v48 = vld [vmem:[#allocation6 + $0x150] sm:$0xf0] }
 0x11a   :  { %1228 = vmatpush.bf16.msrb.mxu2 %v4104_v60  ;;  %1241 = vmatpush.bf16.msrb.mxu3 %v4232_v61  ;;  %v5595_v60 = vld [vmem:[#allocation6 + $0x10c] sm:$0xf0]  ;;  %v4667_v61 = vld [vmem:[#allocation6 + $0x280] sm:$0xf]  ;;  %v4701_v53 = vld [vmem:[#allocation6 + $0x2d0] sm:$0xf0] }
 0x11c   :  { %1203 = vmatmul.bf16.vlgmr.msrb.gmra.mxu0 %v6273_v50  ;;  %1216 = vmatmul.bf16.vlgmr.msrb.gmra.mxu1 %v6275_v51  ;;  %v5611_v50 = vld [vmem:[#allocation6 + $0x18c] sm:$0xf0]  ;;  %v4412_v51 = vor.u32 %v5579_v20, %v4411_v18 }
 0x11d   :  { %2045 = vmatpush.bf16.msra.mxu0 %v4460_v62  ;;  %2058 = vmatpush.bf16.msra.mxu1 %v4588_v1  ;;  %v4540_v22 = vor.u32 %v5611_v50, %v4539_v21  ;;  %v4476_v62 = vor.u32 %v5595_v60, %v4475_v59  ;;  %v4668_v1 = vor.u32 %v5643_v63, %v4667_v61  ;;  %v5635_v18 = vld [vmem:[#allocation6 + $0x24c] sm:$0xf0]  ;;  %v5613_v21 = vld [vmem:[#allocation6 + $0x1a4] sm:$0xf] }
 0x11e   :  { %1229 = vmatmul.bf16.vlgmr.msrb.gmra.mxu2 %v6277_v55  ;;  %1242 = vmatmul.bf16.vlgmr.msrb.gmra.mxu3 %v6279_v57  ;;  %v5575_v55 = vld [vmem:[#allocation6 + $0x6c] sm:$0xf0]  ;;  %v5565_v50 = vld [vmem:[#allocation6 + $0x24] sm:$0xf] }
 0x11f   :  { %2071 = vmatpush.bf16.msra.mxu2 %v4716_v7  ;;  %v5607_v57 = vld [vmem:[#allocation6 + $0x16c] sm:$0xf0]  ;;  %v4396_v24 = vor.u32 %v5575_v55, %v4395_v56  ;;  %v4397_v7 = vld [vmem:[#allocation6 + $0x70] sm:$0xf0]  ;;  %v4619_v55 = vld [vmem:[#allocation6 + $0x220] sm:$0xf] }
 0x120   :  { %v4524_v26 = vor.u32 %v5607_v57, %v4523_v23  ;;  %v4400_v10 = vor.u32 %v5573_v6, %v4397_v7  ;;  %v4557_v56 = vld [vmem:[#allocation6 + $0x1b0] sm:$0xf0]  ;;  %v5631_v23 = vld [vmem:[#allocation6 + $0x22c] sm:$0xf0]  ;;  %v5597_v61 = vld [vmem:[#allocation6 + $0x124] sm:$0xf] }
 0x121   :  { %2046 = vmatpush.bf16.msra.mxu0 %v4444_v8  ;;  %2059 = vmatpush.bf16.msra.mxu1 %v4572_v11  ;;  %v4651_v8 = vld [vmem:[#allocation6 + $0x260] sm:$0xf]  ;;  %v5679_v59 = vld [vmem:[#allocation6 + $0x3ac] sm:$0xf0]  ;;  %v5645_v63 = vld [vmem:[#allocation6 + $0x2a4] sm:$0xf] }
 0x122   :  { %v4652_v11 = vor.u32 %v5639_v9, %v4651_v8  ;;  %v4795_v6 = vld [vmem:[#allocation6 + $0x380] sm:$0xf]  ;;  %v5675_v7 = vld [vmem:[#allocation6 + $0x38c] sm:$0xf0] }
 0x123   :  { %2072 = vmatpush.bf16.msra.mxu2 %v4700_v16  ;;  %v4576_v16 = vor.u32 %v5617_v12, %v4573_v15  ;;  %v4796_v9 = vor.u32 %v5675_v7, %v4795_v6  ;;  %v5641_v12 = vld [vmem:[#allocation6 + $0x284] sm:$0xf]  ;;  %v4829_v7 = vld [vmem:[#allocation6 + $0x3d0] sm:$0xf0] }
 0x124   :  { %v5681_v6 = vld [vmem:[#allocation6 + $0x3c4] sm:$0xf] }
 0x125   :  { %2047 = vmatpush.bf16.msra.mxu0 %v4428_v17  ;;  %2060 = vmatpush.bf16.msra.mxu1 %v4556_v19  ;;  %v4635_v17 = vld [vmem:[#allocation6 + $0x240] sm:$0xf]  ;;  %v4384_v19 = vor.u32 %v5569_v13, %v4381_v14  ;;  %v4669_v14 = vld [vmem:[#allocation6 + $0x290] sm:$0xf0] }
 0x126   :  { %v4636_v20 = vor.u32 %v5635_v18, %v4635_v17  ;;  %v4672_v15 = vor.u32 %v5641_v12, %v4669_v14  ;;  %v5671_v17 = vld [vmem:[#allocation6 + $0x36c] sm:$0xf0]  ;;  %v5637_v18 = vld [vmem:[#allocation6 + $0x264] sm:$0xf] }
 0x127   :  { %2073 = vmatpush.bf16.msra.mxu2 %v4684_v58  ;;  %v4811_v58 = vld [vmem:[#allocation6 + $0x3a0] sm:$0xf] }
 0x128   :  { %v4812_v60 = vor.u32 %v5679_v59, %v4811_v58  ;;  %v5625_v59 = vld [vmem:[#allocation6 + $0x204] sm:$0xf] }
 0x129   :  { %2048 = vmatpush.bf16.msra.mxu0 %v4412_v51  ;;  %2061 = vmatpush.bf16.msra.mxu1 %v4540_v22  ;;  %v4365_v51 = vld [vmem:[#allocation6 + $0x30] sm:$0xf0]  ;;  %v4560_v22 = vor.u32 %v5613_v21, %v4557_v56 }
 0x12a   :  { %v4368_v57 = vor.u32 %v5565_v50, %v4365_v51  ;;  %v4653_v21 = vld [vmem:[#allocation6 + $0x270] sm:$0xf0] }
 0x12b   :  { %2074 = vmatpush.bf16.msra.mxu2 %v4668_v1  ;;  %v4656_v56 = vor.u32 %v5637_v18, %v4653_v21  ;;  %v5677_v18 = vld [vmem:[#allocation6 + $0x3a4] sm:$0xf] }
 0x12d   :  { %2049 = vmatpush.bf16.msra.mxu0 %v4396_v24  ;;  %2062 = vmatpush.bf16.msra.mxu1 %v4524_v26  ;;  %v4620_v24 = vor.u32 %v5631_v23, %v4619_v55  ;;  %v5561_v26 = vld [vmem:[#allocation6 + $0x4] sm:$0xf] }
 0x12e   :  { %v4352_v37 = vor.u32 %v5561_v26, %v4349_v27  ;;  %v5633_v27 = vld [vmem:[#allocation6 + $0x244] sm:$0xf] }
 0x12f   :  { %2075 = vmatpush.bf16.msra.mxu2 %v4652_v11  ;;  %v4477_v11 = vld [vmem:[#allocation6 + $0x110] sm:$0xf0] }
 0x131   :  { %2050 = vmatpush.bf16.msra.mxu0 %v4380_v30  ;;  %2063 = vmatpush.bf16.msra.mxu1 %v4508_v31  ;;  %v4603_v30 = vld [vmem:[#allocation6 + $0x200] sm:$0xf]  ;;  %v5627_v31 = vld [vmem:[#allocation6 + $0x20c] sm:$0xf0] }
 0x132   :  { %v4604_v33 = vor.u32 %v5627_v31, %v4603_v30  ;;  %v4467_v31 = vld [vmem:[#allocation6 + $0xe8] sm:$0xf] }
 0x133   :  { %2076 = vmatpush.bf16.msra.mxu2 %v4636_v20 }
 0x135   :  { %2051 = vmatpush.bf16.msra.mxu0 %v4364_v34  ;;  %2064 = vmatpush.bf16.msra.mxu1 %v4492_v52  ;;  %v5687_v34 = vld [vmem:[#allocation6 + $0x3ec] sm:$0xf0]  ;;  %v4512_v52 = vor.u32 %v5601_v47, %v4509_v48  ;;  %v4451_v48 = vld [vmem:[#allocation6 + $0xc8] sm:$0xf] }
 0x136   :  { %v4844_v38 = vor.u32 %v5687_v34, %v4843_v32  ;;  %v5592_v32 = vld [vmem:[#allocation6 + $0xf4] sm:$0xf0]  ;;  %v5663_v34 = vld [vmem:[#allocation6 + $0x32c] sm:$0xf0] }
 0x137   :  { %2077 = vmatpush.bf16.msra.mxu2 %v4620_v24  ;;  %v5667_v24 = vld [vmem:[#allocation6 + $0x34c] sm:$0xf0]  ;;  %v4468_v47 = vor.u32 %v5592_v32, %v4467_v31  ;;  %v4387_v32 = vld [vmem:[#allocation6 + $0x48] sm:$0xf] }
 0x138   :  { %2084 = vmatpush.bf16.msra.mxu3 %v4844_v38  ;;  %v5629_v38 = vld [vmem:[#allocation6 + $0x224] sm:$0xf] }
 0x139   :  { %2052 = vmatpush.bf16.msra.mxu0 %v4348_v39  ;;  %2065 = vmatpush.bf16.msra.mxu1 %v4476_v62  ;;  %v4528_v39 = vor.u32 %v5605_v35, %v4525_v36  ;;  %v4493_v62 = vld [vmem:[#allocation6 + $0x130] sm:$0xf0] }
 0x13a   :  { %v4496_v1 = vor.u32 %v5597_v61, %v4493_v62  ;;  %v5685_v61 = vld [vmem:[#allocation6 + $0x3e4] sm:$0xf] }
 0x13b   :  { %2078 = vmatpush.bf16.msra.mxu2 %v4604_v33  ;;  %v4747_v33 = vld [vmem:[#allocation6 + $0x320] sm:$0xf] }
 0x13c   :  { %2085 = vmatpush.bf16.msra.mxu3 %v4828_v46 }
 0x13d   :  { %2097 = vmatpush.bf16.msrb.mxu0 %v4464_v40  ;;  %2110 = vmatpush.bf16.msrb.mxu1 %v4592_v5  ;;  %v5653_v40 = vld [vmem:[#allocation6 + $0x2e4] sm:$0xf]  ;;  %v4688_v5 = vor.u32 %v5645_v63, %v4685_v2  ;;  %v4845_v63 = vld [vmem:[#allocation6 + $0x3f0] sm:$0xf0] }
 0x13e   :  { %v4720_v42 = vor.u32 %v5653_v40, %v4717_v41  ;;  %v4848_v2 = vor.u32 %v5685_v61, %v4845_v63  ;;  %v4355_v61 = vld [vmem:[#allocation6 + $0x8] sm:$0xf] }
 0x140   :  { %2123 = vmatpush.bf16.msrb.mxu2 %v4720_v42  ;;  %2086 = vmatpush.bf16.msra.mxu3 %v4812_v60  ;;  %v4605_v60 = vld [vmem:[#allocation6 + $0x210] sm:$0xf0] }
 0x141   :  { %2098 = vmatpush.bf16.msrb.mxu0 %v4448_v43  ;;  %2111 = vmatpush.bf16.msrb.mxu1 %v4576_v16  ;;  %v6297_v43 = vld [vmem:[#allocation4] sm:$0xf]  ;;  %v4779_v16 = vld [vmem:[#allocation6 + $0x360] sm:$0xf]  ;;  %v4608_v62 = vor.u32 %v5625_v59, %v4605_v60 }
 0x142   :  { %v391_v54 = vperm.slane %v6297_v43, 0  ;;  %v4780_v20 = vor.u32 %v5671_v17, %v4779_v16  ;;  %v392_v36 = vperm.slane %v6297_v43, 1  ;;  %v5580_v16 = vld [vmem:[#allocation6 + $0x94] sm:$0xf0] }
 0x144   :  { %2087 = vmatpush.bf16.msra.mxu3 %v4796_v9 }
 0x145   :  { %2099 = vmatpush.bf16.msrb.mxu0 %v4432_v49  ;;  %2112 = vmatpush.bf16.msrb.mxu1 %v4560_v22  ;;  %v5649_v49 = vld [vmem:[#allocation6 + $0x2c4] sm:$0xf] }
 0x146   :  { %v4704_v0 = vor.u32 %v5649_v49, %v4701_v53  ;;  %v4731_v53 = vld [vmem:[#allocation6 + $0x300] sm:$0xf] }
 0x148   :  { %2124 = vmatpush.bf16.msrb.mxu2 %v4704_v0  ;;  %2088 = vmatpush.bf16.msra.mxu3 %v4780_v20  ;;  %v5659_v0 = vld [vmem:[#allocation6 + $0x30c] sm:$0xf0] }
 0x149   :  { %2100 = vmatpush.bf16.msrb.mxu0 %v4416_v4  ;;  %2113 = vmatpush.bf16.msrb.mxu1 %v4544_v29  ;;  %v4640_v29 = vor.u32 %v5633_v27, %v4637_v28  ;;  %v4732_v58 = vor.u32 %v5659_v0, %v4731_v53  ;;  %v5665_v53 = vld [vmem:[#allocation6 + $0x344] sm:$0xf]  ;;  %v4765_v0 = vld [vmem:[#allocation6 + $0x350] sm:$0xf0] }
 0x14c   :  { %2125 = vmatpush.bf16.msrb.mxu2 %v4688_v5 }
 0x14d   :  { %2101 = vmatpush.bf16.msrb.mxu0 %v4400_v10  ;;  %2114 = vmatpush.bf16.msrb.mxu1 %v4528_v39  ;;  %v5593_v10 = vld [vmem:[#allocation6 + $0x104] sm:$0xf]  ;;  %v4621_v39 = vld [vmem:[#allocation6 + $0x230] sm:$0xf0] }
 0x14e   :  { %v4480_v13 = vor.u32 %v5593_v10, %v4477_v11  ;;  %v4624_v44 = vor.u32 %v5629_v38, %v4621_v39  ;;  %v4832_v10 = vor.u32 %v5681_v6, %v4829_v7  ;;  %v5669_v39 = vld [vmem:[#allocation6 + $0x364] sm:$0xf] }
 0x150   :  { %2126 = vmatpush.bf16.msrb.mxu2 %v4672_v15  ;;  %v4419_v15 = vld [vmem:[#allocation6 + $0x88] sm:$0xf] }
 0x151   :  { %2102 = vmatpush.bf16.msrb.mxu0 %v4384_v19  ;;  %2115 = vmatpush.bf16.msrb.mxu1 %v4512_v52  ;;  %v5588_v52 = vld [vmem:[#allocation6 + $0xd4] sm:$0xf0] }
 0x154   :  { %2127 = vmatpush.bf16.msrb.mxu2 %v4656_v56  ;;  %v5576_v56 = vld [vmem:[#allocation6 + $0x74] sm:$0xf0] }
 0x155   :  { %2103 = vmatpush.bf16.msrb.mxu0 %v4368_v57  ;;  %2116 = vmatpush.bf16.msrb.mxu1 %v4496_v1  ;;  %v4763_v57 = vld [vmem:[#allocation6 + $0x340] sm:$0xf]  ;;  %v4452_v1 = vor.u32 %v5588_v52, %v4451_v48  ;;  %v4563_v48 = vld [vmem:[#allocation6 + $0x1a8] sm:$0xf]  ;;  %v5616_v52 = vld [vmem:[#allocation6 + $0x1b4] sm:$0xf0] }
 0x156   :  { %v4764_v26 = vor.u32 %v5667_v24, %v4763_v57  ;;  %v5673_v57 = vld [vmem:[#allocation6 + $0x384] sm:$0xf]  ;;  %v4797_v24 = vld [vmem:[#allocation6 + $0x390] sm:$0xf0]  ;;  %v4564_v60 = vor.u32 %v5616_v52, %v4563_v48  ;;  %v4483_v48 = vld [vmem:[#allocation6 + $0x108] sm:$0xf] }
 0x157   :  { %v4800_v28 = vor.u32 %v5673_v57, %v4797_v24  ;;  %v5596_v52 = vld [vmem:[#allocation6 + $0x114] sm:$0xf0] }
 0x158   :  { %v1048_v3 = vpop.f32.mrf.mxu0  ;;  %v1061_v4 = vpop.f32.mrf.mxu1  ;;  %2089 = vmatpush.bf16.msra.mxu3 %v4764_v26  ;;  %2128 = vmatpush.bf16.msrb.mxu2 %v4640_v29  ;;  %v393_v29 = vperm.slane %v6297_v43, 2 }
 0x159   :  { %2104 = vmatpush.bf16.msrb.mxu0 %v4352_v37  ;;  %v1049_v8 = vadd.f32 %v1048_v3, %v391_v54  ;;  %2117 = vmatpush.bf16.msrb.mxu1 %v4480_v13  ;;  %v4748_v37 = vor.u32 %v5663_v34, %v4747_v33  ;;  %v4435_v3 = vld [vmem:[#allocation6 + $0xa8] sm:$0xf]  ;;  %v5572_v34 = vld [vmem:[#allocation6 + $0x54] sm:$0xf0] }
 0x15b   :  { %v1062_v19 = vadd.f32 %v1061_v4, %v1049_v8  ;;  %v5584_v4 = vld [vmem:[#allocation6 + $0xb4] sm:$0xf0] }
 0x15c   :  { %2090 = vmatpush.bf16.msra.mxu3 %v4748_v37  ;;  %2129 = vmatpush.bf16.msrb.mxu2 %v4624_v44  ;;  %v4436_v14 = vor.u32 %v5584_v4, %v4435_v3  ;;  %v4388_v44 = vor.u32 %v5572_v34, %v4387_v32  ;;  %v5612_v3 = vld [vmem:[#allocation6 + $0x194] sm:$0xf0]  ;;  %v5590_v4 = vld [vmem:[#allocation6 + $0xec] sm:$0xf]  ;;  %v4707_v34 = vld [vmem:[#allocation6 + $0x2c8] sm:$0xf] }
 0x15f   :  { %v1074_v50 = vpop.f32.mrf.mxu2  ;;  %v1087_v51 = vpop.f32.mrf.mxu3 }
 0x160   :  { %v1075_v22 = vadd.f32 %v1074_v50, %v1062_v19  ;;  %v1050_v55 = vpop.f32.mrf.mxu0  ;;  %v1063_v23 = vpop.f32.mrf.mxu1  ;;  %2091 = vmatpush.bf16.msra.mxu3 %v4732_v58  ;;  %2130 = vmatpush.bf16.msrb.mxu2 %v4608_v62  ;;  %v4813_v19 = vld [vmem:[#allocation6 + $0x3b0] sm:$0xf0]  ;;  %v4420_v50 = vor.u32 %v5580_v16, %v4419_v15  ;;  %v5564_v62 = vld [vmem:[#allocation6 + $0x14] sm:$0xf0]  ;;  %v4531_v15 = vld [vmem:[#allocation6 + $0x168] sm:$0xf] }
 0x161   :  { %v4816_v20 = vor.u32 %v5677_v18, %v4813_v19  ;;  %v5624_v55 = vld [vmem:[#allocation6 + $0x1f4] sm:$0xf0]  ;;  %v5586_v18 = vld [vmem:[#allocation6 + $0xcc] sm:$0xf]  ;;  %v4453_v19 = vld [vmem:[#allocation6 + $0xd8] sm:$0xf0] }
 0x162   :  { %v1088_v25 = vadd.f32 %v1087_v51, %v1075_v22  ;;  %v4403_v51 = vld [vmem:[#allocation6 + $0x68] sm:$0xf] }
 0x163   :  { %v4595_v22 = vld [vmem:[#allocation6 + $0x1e8] sm:$0xf] }
 0x164   :  { %vm1247_vm5 = vcmp.ge.f32.partialorder %v1088_v25, 0.0  ;;  %v1251_v30 = vmul.f32 0.2, %v1088_v25  ;;  %2136 = vmatpush.bf16.msrb.mxu3 %v4848_v2  ;;  %v4596_v31 = vor.u32 %v5624_v55, %v4595_v22  ;;  %v4547_v2 = vld [vmem:[#allocation6 + $0x188] sm:$0xf] }
 0x166   :  { %v1255_v35 = vsel %vm1247_vm5, %v1088_v25, %v1251_v30  ;;  %v4404_v30 = vor.u32 %v5576_v56, %v4403_v51  ;;  %v5656_v51 = vld [vmem:[#allocation6 + $0x2f4] sm:$0xf0]  ;;  %v4733_v56 = vld [vmem:[#allocation6 + $0x310] sm:$0xf0] }
 0x167   :  { %v1259_v40 = vmul.f32 1.4142135, %v1255_v35  ;;  %v1076_v41 = vpop.f32.mrf.mxu2  ;;  %v1089_v42 = vpop.f32.mrf.mxu3  ;;  %v4579_v35 = vld [vmem:[#allocation6 + $0x1c8] sm:$0xf] }
 0x168   :  { %v1100_v45 = vpop.f32.mrf.mxu0  ;;  %v1113_v46 = vpop.f32.mrf.mxu1  ;;  %2137 = vmatpush.bf16.msrb.mxu3 %v4832_v10  ;;  %v4749_v10 = vld [vmem:[#allocation6 + $0x330] sm:$0xf0] }
 0x169   :  { %v6301_v49 = vpack.c.bf16 %v1259_v40, %v1259_v40  ;;  %v1101_v54 = vadd.f32 %v1100_v45, %v392_v36  ;;  %v5620_v36 = vld [vmem:[#allocation6 + $0x1d4] sm:$0xf0]  ;;  %v4781_v40 = vld [vmem:[#allocation6 + $0x370] sm:$0xf0] }
 0x16a   :  { %v4784_v41 = vor.u32 %v5669_v39, %v4781_v40  ;;  %v4580_v45 = vor.u32 %v5620_v36, %v4579_v35  ;;  %v5652_v35 = vld [vmem:[#allocation6 + $0x2d4] sm:$0xf0] }
 0x16b   :  { %2053 = vmatmul.bf16.vlgmr.msra.gmra.mxu0 %v6301_v49  ;;  %v1114_v5 = vadd.f32 %v1113_v46, %v1101_v54  ;;  %v4371_v46 = vld [vmem:[#allocation6 + $0x28] sm:$0xf]  ;;  %v4768_v54 = vor.u32 %v5665_v53, %v4765_v0  ;;  %v5600_v39 = vld [vmem:[#allocation6 + $0x134] sm:$0xf0]  ;;  %v4708_v40 = vor.u32 %v5652_v35, %v4707_v34  ;;  %v5574_v53 = vld [vmem:[#allocation6 + $0x6c] sm:$0xf] }
 0x16c   :  { %2149 = vmatpush.bf16.msra.mxu0 %v4468_v47  ;;  %2138 = vmatpush.bf16.msrb.mxu3 %v4816_v20  ;;  %v5568_v47 = vld [vmem:[#allocation6 + $0x34] sm:$0xf0] }
 0x16d   :  { %v4372_v59 = vor.u32 %v5568_v47, %v4371_v46 }
 0x16f   :  { %v1126_v8 = vpop.f32.mrf.mxu2  ;;  %v1139_v9 = vpop.f32.mrf.mxu3 }
 0x170   :  { %v1127_v11 = vadd.f32 %v1126_v8, %v1114_v5  ;;  %2150 = vmatpush.bf16.msra.mxu0 %v4452_v1  ;;  %v1102_v12 = vpop.f32.mrf.mxu0  ;;  %v1115_v13 = vpop.f32.mrf.mxu1  ;;  %2139 = vmatpush.bf16.msrb.mxu3 %v4800_v28  ;;  %v4469_v8 = vld [vmem:[#allocation6 + $0xf8] sm:$0xf0]  ;;  %v5604_v28 = vld [vmem:[#allocation6 + $0x154] sm:$0xf0] }
 0x171   :  { %v4356_v13 = vor.u32 %v5564_v62, %v4355_v61  ;;  %v4472_v16 = vor.u32 %v5590_v4, %v4469_v8  ;;  %v5644_v61 = vld [vmem:[#allocation6 + $0x294] sm:$0xf0]  ;;  %v4484_v62 = vor.u32 %v5596_v52, %v4483_v48  ;;  %v4659_v4 = vld [vmem:[#allocation6 + $0x268] sm:$0xf] }
 0x172   :  { %v1140_v17 = vadd.f32 %v1139_v9, %v1127_v11  ;;  %v5661_v9 = vld [vmem:[#allocation6 + $0x324] sm:$0xf] }
 0x173   :  { %v4752_v11 = vor.u32 %v5661_v9, %v4749_v10  ;;  %v5640_v9 = vld [vmem:[#allocation6 + $0x274] sm:$0xf0]  ;;  %v5618_v10 = vld [vmem:[#allocation6 + $0x1cc] sm:$0xf] }
 0x174   :  { %vm1248_vm6 = vcmp.ge.f32.partialorder %v1140_v17, 0.0  ;;  %v1252_v21 = vmul.f32 0.2, %v1140_v17  ;;  %2151 = vmatpush.bf16.msra.mxu0 %v4436_v14  ;;  %2140 = vmatpush.bf16.msrb.mxu3 %v4784_v41  ;;  %v4548_v14 = vor.u32 %v5612_v3, %v4547_v2  ;;  %v5578_v41 = vld [vmem:[#allocation6 + $0x8c] sm:$0xf] }
 0x176   :  { %v1256_v23 = vsel %vm1248_vm6, %v1140_v17, %v1252_v21  ;;  %v5608_v17 = vld [vmem:[#allocation6 + $0x174] sm:$0xf0]  ;;  %v5657_v21 = vld [vmem:[#allocation6 + $0x304] sm:$0xf] }
 0x177   :  { %v1260_v25 = vmul.f32 1.4142135, %v1256_v23  ;;  %v1128_v26 = vpop.f32.mrf.mxu2  ;;  %v1141_v27 = vpop.f32.mrf.mxu3  ;;  %v4532_v55 = vor.u32 %v5608_v17, %v4531_v15  ;;  %v4736_v23 = vor.u32 %v5657_v21, %v4733_v56  ;;  %v4643_v15 = vld [vmem:[#allocation6 + $0x248] sm:$0xf]  ;;  %v4373_v17 = vld [vmem:[#allocation6 + $0x38] sm:$0xf0] }
 0x178   :  { %2152 = vmatpush.bf16.msra.mxu0 %v4420_v50  ;;  %2141 = vmatpush.bf16.msrb.mxu3 %v4768_v54  ;;  %v4723_v50 = vld [vmem:[#allocation6 + $0x2e8] sm:$0xf]  ;;  %v4456_v26 = vor.u32 %v5586_v18, %v4453_v19  ;;  %v4405_v54 = vld [vmem:[#allocation6 + $0x78] sm:$0xf0]  ;;  %v5636_v18 = vld [vmem:[#allocation6 + $0x254] sm:$0xf0] }
 0x179   :  { %v6305_v33 = vpack.c.bf16 %v1260_v25, %v1260_v25  ;;  %v1152_v37 = vpop.f32.mrf.mxu0  ;;  %v1165_v38 = vpop.f32.mrf.mxu1  ;;  %v4515_v27 = vld [vmem:[#allocation6 + $0x148] sm:$0xf]  ;;  %v5614_v19 = vld [vmem:[#allocation6 + $0x1ac] sm:$0xf] }
 0x17a   :  { %v1153_v42 = vadd.f32 %v1152_v37, %v393_v29  ;;  %v4724_v29 = vor.u32 %v5656_v51, %v4723_v50  ;;  %v4516_v36 = vor.u32 %v5604_v28, %v4515_v27  ;;  %v5632_v28 = vld [vmem:[#allocation6 + $0x234] sm:$0xf0] }
 0x17b   :  { %2066 = vmatmul.bf16.vlgmr.msra.gmra.mxu1 %v6305_v33  ;;  %2105 = vmatmul.bf16.vlgmr.msrb.gmra.mxu0 %v6301_v49 }
 0x17c   :  { %2153 = vmatpush.bf16.msra.mxu0 %v4404_v30  ;;  %2162 = vmatpush.bf16.msra.mxu1 %v4596_v31  ;;  %v1166_v58 = vadd.f32 %v1165_v38, %v1153_v42  ;;  %v5582_v30 = vld [vmem:[#allocation6 + $0xac] sm:$0xf]  ;;  %v4437_v31 = vld [vmem:[#allocation6 + $0xb8] sm:$0xf0]  ;;  %v4499_v38 = vld [vmem:[#allocation6 + $0x128] sm:$0xf] }
 0x17d   :  { %2142 = vmatpush.bf16.msrb.mxu3 %v4752_v11  ;;  %v4440_v37 = vor.u32 %v5582_v30, %v4437_v31  ;;  %v4421_v42 = vld [vmem:[#allocation6 + $0x98] sm:$0xf0]  ;;  %v4500_v46 = vor.u32 %v5600_v39, %v4499_v38  ;;  %v5628_v38 = vld [vmem:[#allocation6 + $0x214] sm:$0xf0] }
 0x17e   :  { %v4424_v47 = vor.u32 %v5578_v41, %v4421_v42  ;;  %v4581_v11 = vld [vmem:[#allocation6 + $0x1d8] sm:$0xf0]  ;;  %v5688_v41 = vld [vmem:[#allocation6 + $0x3f4] sm:$0xf0]  ;;  %v5606_v42 = vld [vmem:[#allocation6 + $0x16c] sm:$0xf] }
 0x17f   :  { %v4549_v30 = vld [vmem:[#allocation6 + $0x198] sm:$0xf0] }
 0x180   :  { %2154 = vmatpush.bf16.msra.mxu0 %v4388_v44  ;;  %2163 = vmatpush.bf16.msra.mxu1 %v4580_v45  ;;  %v4691_v44 = vld [vmem:[#allocation6 + $0x2a8] sm:$0xf]  ;;  %v5648_v45 = vld [vmem:[#allocation6 + $0x2b4] sm:$0xf0] }
 0x181   :  { %v1154_v6 = vpop.f32.mrf.mxu0  ;;  %v1167_v7 = vpop.f32.mrf.mxu1  ;;  %2143 = vmatpush.bf16.msrb.mxu3 %v4736_v23  ;;  %v4692_v0 = vor.u32 %v5648_v45, %v4691_v44  ;;  %v4627_v23 = vld [vmem:[#allocation6 + $0x228] sm:$0xf]  ;;  %v4533_v44 = vld [vmem:[#allocation6 + $0x178] sm:$0xf0] }
 0x182   :  { %v1178_v63 = vpop.f32.mrf.mxu2  ;;  %v1191_v1 = vpop.f32.mrf.mxu3  ;;  %v4389_v6 = vld [vmem:[#allocation6 + $0x58] sm:$0xf0]  ;;  %v4628_v35 = vor.u32 %v5632_v28, %v4627_v23 }
 0x183   :  { %v1179_v5 = vadd.f32 %v1178_v63, %v1166_v58  ;;  %v5622_v58 = vld [vmem:[#allocation6 + $0x1ec] sm:$0xf]  ;;  %v394_v63 = vperm.slane %v6297_v43, 3  ;;  %v4584_v43 = vor.u32 %v5618_v10, %v4581_v11  ;;  %v4501_v10 = vld [vmem:[#allocation6 + $0x138] sm:$0xf0] }
 0x184   :  { %2155 = vmatpush.bf16.msra.mxu0 %v4372_v59  ;;  %2164 = vmatpush.bf16.msra.mxu1 %v4564_v60  ;;  %v4597_v59 = vld [vmem:[#allocation6 + $0x1f8] sm:$0xf0]  ;;  %v4675_v60 = vld [vmem:[#allocation6 + $0x288] sm:$0xf] }
 0x185   :  { %v1192_v12 = vadd.f32 %v1191_v1, %v1179_v5  ;;  %v4408_v1 = vor.u32 %v5574_v53, %v4405_v54  ;;  %v4600_v2 = vor.u32 %v5622_v58, %v4597_v59  ;;  %v4676_v3 = vor.u32 %v5644_v61, %v4675_v60  ;;  %v5570_v5 = vld [vmem:[#allocation6 + $0x4c] sm:$0xf]  ;;  %v4835_v59 = vld [vmem:[#allocation6 + $0x3c8] sm:$0xf]  ;;  %v4693_v11 = vld [vmem:[#allocation6 + $0x2b8] sm:$0xf0] }
 0x186   :  { %v4536_v58 = vor.u32 %v5606_v42, %v4533_v44  ;;  %v5686_v42 = vld [vmem:[#allocation6 + $0x3ec] sm:$0xf]  ;;  %v4853_v44 = vld [vmem:[#allocation6 + $0x3f8] sm:$0xf0] }
 0x187   :  { %vm1249_vm7 = vcmp.ge.f32.partialorder %v1192_v12, 0.0  ;;  %v1253_v20 = vmul.f32 0.2, %v1192_v12 }
 0x188   :  { %2156 = vmatpush.bf16.msra.mxu0 %v4356_v13  ;;  %2165 = vmatpush.bf16.msra.mxu1 %v4548_v14  ;;  %v4392_v13 = vor.u32 %v5570_v5, %v4389_v6  ;;  %v4660_v14 = vor.u32 %v5640_v9, %v4659_v4  ;;  %v4819_v6 = vld [vmem:[#allocation6 + $0x3a8] sm:$0xf]  ;;  %v5598_v9 = vld [vmem:[#allocation6 + $0x12c] sm:$0xf] }
 0x189   :  { %v1257_v22 = vsel %vm1249_vm7, %v1192_v12, %v1253_v20  ;;  %v4565_v20 = vld [vmem:[#allocation6 + $0x1b8] sm:$0xf0] }
 0x18a   :  { %v1261_v57 = vmul.f32 1.4142135, %v1257_v22  ;;  %v1180_v24 = vpop.f32.mrf.mxu2  ;;  %v1193_v25 = vpop.f32.mrf.mxu3  ;;  %v4644_v22 = vor.u32 %v5636_v18, %v4643_v15  ;;  %v5676_v15 = vld [vmem:[#allocation6 + $0x394] sm:$0xf0]  ;;  %v5642_v18 = vld [vmem:[#allocation6 + $0x28c] sm:$0xf] }
 0x18b   :  { %2118 = vmatmul.bf16.vlgmr.msrb.gmra.mxu1 %v6305_v33  ;;  %2157 = vmatmul.bf16.vlgmr.msra.gmra.mxu0 %v6301_v49  ;;  %v4357_v24 = vld [vmem:[#allocation6 + $0x18] sm:$0xf0] }
 0x18c   :  { %2201 = vmatpush.bf16.msrb.mxu0 %v4472_v16  ;;  %v6309_v32 = vpack.c.bf16 %v1261_v57, %v1261_v57  ;;  %2166 = vmatpush.bf16.msra.mxu1 %v4532_v55  ;;  %v5566_v16 = vld [vmem:[#allocation6 + $0x2c] sm:$0xf]  ;;  %v4568_v55 = vor.u32 %v5614_v19, %v4565_v20  ;;  %v4677_v19 = vld [vmem:[#allocation6 + $0x298] sm:$0xf0] }
 0x18d   :  { %v4376_v50 = vor.u32 %v5566_v16, %v4373_v17  ;;  %v5562_v57 = vld [vmem:[#allocation6 + $0xc] sm:$0xf]  ;;  %v4485_v17 = vld [vmem:[#allocation6 + $0x118] sm:$0xf0] }
 0x18e   :  { %2079 = vmatmul.bf16.vlgmr.msra.gmra.mxu2 %v6309_v32  ;;  %v4360_v34 = vor.u32 %v5562_v57, %v4357_v24  ;;  %v5594_v16 = vld [vmem:[#allocation6 + $0x10c] sm:$0xf]  ;;  %v4771_v24 = vld [vmem:[#allocation6 + $0x348] sm:$0xf] }
 0x18f   :  { %2175 = vmatpush.bf16.msra.mxu2 %v4724_v29  ;;  %v5610_v29 = vld [vmem:[#allocation6 + $0x18c] sm:$0xf] }
 0x190   :  { %2202 = vmatpush.bf16.msrb.mxu0 %v4456_v26  ;;  %2167 = vmatpush.bf16.msra.mxu1 %v4516_v36  ;;  %v4552_v36 = vor.u32 %v5610_v29, %v4549_v30  ;;  %v4755_v30 = vld [vmem:[#allocation6 + $0x328] sm:$0xf] }
 0x193   :  { %2176 = vmatpush.bf16.msra.mxu2 %v4708_v40  ;;  %v4851_v40 = vld [vmem:[#allocation6 + $0x3e8] sm:$0xf] }
 0x194   :  { %2203 = vmatpush.bf16.msrb.mxu0 %v4440_v37  ;;  %2168 = vmatpush.bf16.msra.mxu1 %v4500_v46  ;;  %v4611_v37 = vld [vmem:[#allocation6 + $0x208] sm:$0xf]  ;;  %v5654_v46 = vld [vmem:[#allocation6 + $0x2ec] sm:$0xf]  ;;  %v4852_v54 = vor.u32 %v5688_v41, %v4851_v40  ;;  %v4613_v41 = vld [vmem:[#allocation6 + $0x218] sm:$0xf0] }
 0x195   :  { %v5626_v40 = vld [vmem:[#allocation6 + $0x20c] sm:$0xf] }
 0x197   :  { %2177 = vmatpush.bf16.msra.mxu2 %v4692_v0  ;;  %v4612_v0 = vor.u32 %v5628_v38, %v4611_v37  ;;  %v4739_v38 = vld [vmem:[#allocation6 + $0x308] sm:$0xf] }
 0x198   :  { %2204 = vmatpush.bf16.msrb.mxu0 %v4424_v47  ;;  %2169 = vmatpush.bf16.msra.mxu1 %v4484_v62  ;;  %v4725_v47 = vld [vmem:[#allocation6 + $0x2f8] sm:$0xf0]  ;;  %v5684_v62 = vld [vmem:[#allocation6 + $0x3d4] sm:$0xf0] }
 0x199   :  { %v1204_v7 = vpop.f32.mrf.mxu0  ;;  %v1217_v8 = vpop.f32.mrf.mxu1  ;;  %v4728_v61 = vor.u32 %v5654_v46, %v4725_v47  ;;  %v4836_v4 = vor.u32 %v5684_v62, %v4835_v59  ;;  %v4856_v46 = vor.u32 %v5686_v42, %v4853_v44  ;;  %v5682_v47 = vld [vmem:[#allocation6 + $0x3cc] sm:$0xf]  ;;  %v4805_v59 = vld [vmem:[#allocation6 + $0x398] sm:$0xf0]  ;;  %v4955_v42 = vld [vmem:[#allocation9 + $0xc0] sm:$0xf] }
 0x19a   :  { %v1205_v12 = vadd.f32 %v1204_v7, %v394_v63  ;;  %v5602_v63 = vld [vmem:[#allocation6 + $0x14c] sm:$0xf] }
 0x19b   :  { %2178 = vmatpush.bf16.msra.mxu2 %v4676_v3  ;;  %2170 = vmatmul.bf16.vlgmr.msra.gmra.mxu1 %v6305_v33  ;;  %v4709_v3 = vld [vmem:[#allocation6 + $0x2d8] sm:$0xf0]  ;;  %v5670_v62 = vld [vmem:[#allocation6 + $0x36c] sm:$0xf] }
 0x19c   :  { %2205 = vmatpush.bf16.msrb.mxu0 %v4408_v1  ;;  %2214 = vmatpush.bf16.msrb.mxu1 %v4600_v2  ;;  %v1218_v21 = vadd.f32 %v1217_v8, %v1205_v12  ;;  %v4517_v1 = vld [vmem:[#allocation6 + $0x158] sm:$0xf0]  ;;  %v5650_v2 = vld [vmem:[#allocation6 + $0x2cc] sm:$0xf]  ;;  %v5680_v8 = vld [vmem:[#allocation6 + $0x3b4] sm:$0xf0] }
 0x19d   :  { %v4520_v5 = vor.u32 %v5602_v63, %v4517_v1  ;;  %v4712_v7 = vor.u32 %v5650_v2, %v4709_v3  ;;  %v4820_v12 = vor.u32 %v5680_v8, %v4819_v6  ;;  %v4789_v63 = vld [vmem:[#allocation6 + $0x378] sm:$0xf0]  ;;  %v5666_v2 = vld [vmem:[#allocation6 + $0x34c] sm:$0xf] }
 0x19e   :  { %2131 = vmatmul.bf16.vlgmr.msrb.gmra.mxu2 %v6309_v32  ;;  %v4792_v1 = vor.u32 %v5670_v62, %v4789_v63  ;;  %v4773_v3 = vld [vmem:[#allocation6 + $0x358] sm:$0xf0]  ;;  %v5658_v8 = vld [vmem:[#allocation6 + $0x30c] sm:$0xf]  ;;  %v5701_v62 = vld [vmem:[#allocation9 + $0x64] sm:$0xf] }
 0x19f   :  { %2179 = vmatpush.bf16.msra.mxu2 %v4660_v14  ;;  %v4803_v14 = vld [vmem:[#allocation6 + $0x388] sm:$0xf]  ;;  %v4757_v6 = vld [vmem:[#allocation6 + $0x338] sm:$0xf0]  ;;  %v4909_v63 = vld [vmem:[#allocation9 + $0x68] sm:$0xf0] }
 0x1a0   :  { %2206 = vmatpush.bf16.msrb.mxu0 %v4392_v13  ;;  %2215 = vmatpush.bf16.msrb.mxu1 %v4584_v43  ;;  %v4504_v13 = vor.u32 %v5598_v9, %v4501_v10  ;;  %v4804_v20 = vor.u32 %v5676_v15, %v4803_v14  ;;  %v5702_v14 = vld [vmem:[#allocation9 + $0x64] sm:$0xf0] }
 0x1a1   :  { %v1230_v51 = vpop.f32.mrf.mxu2  ;;  %v1243_v56 = vpop.f32.mrf.mxu3 }
 0x1a2   :  { %v1231_v25 = vadd.f32 %v1230_v51, %v1218_v21  ;;  %v1206_v26 = vpop.f32.mrf.mxu0  ;;  %v1219_v27 = vpop.f32.mrf.mxu1  ;;  %v4488_v21 = vor.u32 %v5594_v16, %v4485_v17  ;;  %v4787_v51 = vld [vmem:[#allocation6 + $0x368] sm:$0xf]  ;;  %v4899_v16 = vld [vmem:[#allocation9 + $0x50] sm:$0xf]  ;;  %v5700_v17 = vld [vmem:[#allocation9 + $0x54] sm:$0xf0] }
 0x1a3   :  { %2180 = vmatpush.bf16.msra.mxu2 %v4644_v22  ;;  %v5638_v22 = vld [vmem:[#allocation6 + $0x26c] sm:$0xf]  ;;  %v4645_v27 = vld [vmem:[#allocation6 + $0x258] sm:$0xf0] }
 0x1a4   :  { %v1244_v31 = vadd.f32 %v1243_v56, %v1231_v25  ;;  %2207 = vmatpush.bf16.msrb.mxu0 %v4376_v50  ;;  %2216 = vmatpush.bf16.msrb.mxu1 %v4568_v55  ;;  %v4680_v50 = vor.u32 %v5642_v18, %v4677_v19  ;;  %v5672_v56 = vld [vmem:[#allocation6 + $0x374] sm:$0xf0]  ;;  %v4661_v55 = vld [vmem:[#allocation6 + $0x278] sm:$0xf0]  ;;  %v5634_v26 = vld [vmem:[#allocation6 + $0x24c] sm:$0xf]  ;;  %v4900_v19 = vor.u32 %v5700_v17, %v4899_v16 }
 0x1a5   :  { %v4788_v23 = vor.u32 %v5672_v56, %v4787_v51  ;;  %v4664_v57 = vor.u32 %v5638_v22, %v4661_v55  ;;  %v5668_v25 = vld [vmem:[#allocation6 + $0x354] sm:$0xf0]  ;;  %v4648_v29 = vor.u32 %v5634_v26, %v4645_v27  ;;  %v4891_v18 = vld [vmem:[#allocation9 + $0x40] sm:$0xf]  ;;  %v4883_v51 = vld [vmem:[#allocation9 + $0x30] sm:$0xf] }
 0x1a6   :  { %vm1250_vm8 = vcmp.ge.f32.partialorder %v1244_v31, 0.0  ;;  %v1254_v39 = vmul.f32 0.2, %v1244_v31  ;;  %v4772_v28 = vor.u32 %v5668_v25, %v4771_v24  ;;  %v5696_v56 = vld [vmem:[#allocation9 + $0x34] sm:$0xf0] }
 0x1a7   :  { %2181 = vmatpush.bf16.msra.mxu2 %v4628_v35  ;;  %v4629_v35 = vld [vmem:[#allocation6 + $0x238] sm:$0xf0]  ;;  %v4979_v22 = vld [vmem:[#allocation9 + $0xf0] sm:$0xf]  ;;  %v4884_v55 = vor.u32 %v5696_v56, %v4883_v51  ;;  %v5694_v24 = vld [vmem:[#allocation9 + $0x24] sm:$0xf0] }
 0x1a8   :  { %v1258_v45 = vsel %vm1250_vm8, %v1244_v31, %v1254_v39  ;;  %2208 = vmatpush.bf16.msrb.mxu0 %v4360_v34  ;;  %2217 = vmatpush.bf16.msrb.mxu1 %v4552_v36  ;;  %v5664_v31 = vld [vmem:[#allocation6 + $0x334] sm:$0xf0]  ;;  %v5630_v34 = vld [vmem:[#allocation6 + $0x22c] sm:$0xf]  ;;  %v4971_v26 = vld [vmem:[#allocation9 + $0xe0] sm:$0xf] }
 0x1a9   :  { %v1262_v48 = vmul.f32 1.4142135, %v1258_v45  ;;  %v1232_v52 = vpop.f32.mrf.mxu2  ;;  %v1245_v53 = vpop.f32.mrf.mxu3  ;;  %v4756_v36 = vor.u32 %v5664_v31, %v4755_v30  ;;  %v4632_v37 = vor.u32 %v5630_v34, %v4629_v35  ;;  %v5660_v39 = vld [vmem:[#allocation6 + $0x314] sm:$0xf0]  ;;  %v4616_v45 = vor.u32 %v5626_v40, %v4613_v41  ;;  %v5718_v27 = vld [vmem:[#allocation9 + $0xe4] sm:$0xf0] }
 0x1aa   :  { %v5678_v53 = vld [vmem:[#allocation6 + $0x3ac] sm:$0xf]  ;;  %v4867_v34 = vld [vmem:[#allocation9 + $0x10] sm:$0xf]  ;;  %v5692_v35 = vld [vmem:[#allocation9 + $0x14] sm:$0xf0] }
 0x1ab   :  { %v6317_v60 = vpack.c.bf16 %v1262_v48, %v1262_v48  ;;  %2209 = vmatmul.bf16.vlgmr.msrb.gmra.mxu0 %v6301_v49  ;;  %2182 = vmatpush.bf16.msra.mxu2 %v4612_v0  ;;  %v5646_v49 = vld [vmem:[#allocation6 + $0x2ac] sm:$0xf]  ;;  %v4837_v48 = vld [vmem:[#allocation6 + $0x3d8] sm:$0xf0]  ;;  %v4859_v40 = vld [vmem:[#allocation9] sm:$0xf] }
 0x1ac   :  { %2218 = vmatpush.bf16.msrb.mxu1 %v4536_v58  ;;  %v4696_v43 = vor.u32 %v5646_v49, %v4693_v11  ;;  %v4840_v52 = vor.u32 %v5682_v47, %v4837_v48  ;;  %v4821_v0 = vld [vmem:[#allocation6 + $0x3b8] sm:$0xf0]  ;;  %v5674_v58 = vld [vmem:[#allocation6 + $0x38c] sm:$0xf]  ;;  %v4915_v49 = vld [vmem:[#allocation9 + $0x70] sm:$0xf] }
 0x1ad   :  { %2092 = vmatmul.bf16.vlgmr.msra.gmra.mxu3 %v6317_v60  ;;  %v5704_v11 = vld [vmem:[#allocation9 + $0x74] sm:$0xf0]  ;;  %v5690_v41 = vld [vmem:[#allocation9 + $0x4] sm:$0xf0]  ;;  %v4923_v51 = vld [vmem:[#allocation9 + $0x80] sm:$0xf] }
 0x1ae   :  { %2188 = vmatpush.bf16.msra.mxu3 %v4852_v54  ;;  %2183 = vmatmul.bf16.vlgmr.msra.gmra.mxu2 %v6309_v32  ;;  %v4824_v54 = vor.u32 %v5678_v53, %v4821_v0  ;;  %v4860_v44 = vor.u32 %v5690_v41, %v4859_v40  ;;  %v4947_v0 = vld [vmem:[#allocation9 + $0xb0] sm:$0xf]  ;;  %v5732_v17 = vld [vmem:[#allocation9 + $0x154] sm:$0xf0]  ;;  %v5706_v56 = vld [vmem:[#allocation9 + $0x84] sm:$0xf0] }
 0x1af   :  { %2227 = vmatpush.bf16.msrb.mxu2 %v4728_v61  ;;  %v4808_v61 = vor.u32 %v5674_v58, %v4805_v59  ;;  %v5043_v58 = vld [vmem:[#allocation9 + $0x170] sm:$0xf]  ;;  %v4973_v40 = vld [vmem:[#allocation9 + $0xe8] sm:$0xf0] }
 0x1b0   :  { %2219 = vmatpush.bf16.msrb.mxu1 %v4520_v5  ;;  %v5662_v5 = vld [vmem:[#allocation6 + $0x32c] sm:$0xf] }
 0x1b2   :  { %2189 = vmatpush.bf16.msra.mxu3 %v4836_v4  ;;  %v4776_v4 = vor.u32 %v5666_v2, %v4773_v3  ;;  %v4912_v2 = vor.u32 %v5701_v62, %v4909_v63  ;;  %v4939_v3 = vld [vmem:[#allocation9 + $0xa0] sm:$0xf]  ;;  %v6343_v62 = vld [vmem:[#allocation7] sm:$0xf]  ;;  %v4995_v63 = vld [vmem:[#allocation9 + $0x110] sm:$0xf] }
 0x1b3   :  { %2228 = vmatpush.bf16.msrb.mxu2 %v4712_v7  ;;  %v4760_v7 = vor.u32 %v5662_v5, %v4757_v6  ;;  %v5035_v5 = vld [vmem:[#allocation9 + $0x160] sm:$0xf] }
 0x1b4   :  { %2220 = vmatpush.bf16.msrb.mxu1 %v4504_v13  ;;  %v4907_v13 = vld [vmem:[#allocation9 + $0x60] sm:$0xf] }
 0x1b6   :  { %2190 = vmatpush.bf16.msra.mxu3 %v4820_v12  ;;  %v4916_v12 = vor.u32 %v5704_v11, %v4915_v49 }
 0x1b7   :  { %2229 = vmatpush.bf16.msrb.mxu2 %v4696_v43  ;;  %v4908_v43 = vor.u32 %v5702_v14, %v4907_v13  ;;  %v4931_v14 = vld [vmem:[#allocation9 + $0x90] sm:$0xf] }
 0x1b8   :  { %2221 = vmatpush.bf16.msrb.mxu1 %v4488_v21  ;;  %2663 = vmatpush.bf16.msra.mxu0 %v4916_v12 }
 0x1ba   :  { %2191 = vmatpush.bf16.msra.mxu3 %v4804_v20  ;;  %v5698_v20 = vld [vmem:[#allocation9 + $0x44] sm:$0xf0] }
 0x1bb   :  { %2230 = vmatpush.bf16.msrb.mxu2 %v4680_v50  ;;  %2222 = vmatmul.bf16.vlgmr.msrb.gmra.mxu1 %v6305_v33  ;;  %v4740_v33 = vor.u32 %v5660_v39, %v4739_v38  ;;  %v4892_v21 = vor.u32 %v5698_v20, %v4891_v18  ;;  %v5716_v38 = vld [vmem:[#allocation9 + $0xd4] sm:$0xf0]  ;;  %v5697_v18 = vld [vmem:[#allocation9 + $0x44] sm:$0xf] }
 0x1bc   :  { %2664 = vmatpush.bf16.msra.mxu0 %v4908_v43  ;;  %v5708_v43 = vld [vmem:[#allocation9 + $0x94] sm:$0xf0] }
 0x1bd   :  { %2144 = vmatmul.bf16.vlgmr.msrb.gmra.mxu3 %v6317_v60  ;;  %v4932_v16 = vor.u32 %v5708_v43, %v4931_v14  ;;  %v5752_v43 = vld [vmem:[#allocation9 + $0x1f4] sm:$0xf0] }
 0x1be   :  { %2192 = vmatpush.bf16.msra.mxu3 %v4788_v23  ;;  %v5720_v23 = vld [vmem:[#allocation9 + $0xf4] sm:$0xf0] }
 0x1bf   :  { %2231 = vmatpush.bf16.msrb.mxu2 %v4664_v57  ;;  %v4875_v57 = vld [vmem:[#allocation9 + $0x20] sm:$0xf]  ;;  %v4980_v25 = vor.u32 %v5720_v23, %v4979_v22  ;;  %v5730_v23 = vld [vmem:[#allocation9 + $0x144] sm:$0xf0] }
 0x1c0   :  { %2665 = vmatpush.bf16.msra.mxu0 %v4900_v19  ;;  %v4893_v19 = vld [vmem:[#allocation9 + $0x48] sm:$0xf0]  ;;  %v5019_v22 = vld [vmem:[#allocation9 + $0x140] sm:$0xf] }
 0x1c1   :  { %2676 = vmatpush.bf16.msra.mxu1 %v4980_v25  ;;  %v5020_v25 = vor.u32 %v5730_v23, %v5019_v22  ;;  %v5709_v23 = vld [vmem:[#allocation9 + $0xa4] sm:$0xf] }
 0x1c2   :  { %2193 = vmatpush.bf16.msra.mxu3 %v4772_v28  ;;  %v4876_v28 = vor.u32 %v5694_v24, %v4875_v57  ;;  %v5695_v57 = vld [vmem:[#allocation9 + $0x34] sm:$0xf]  ;;  %v4885_v24 = vld [vmem:[#allocation9 + $0x38] sm:$0xf0] }
 0x1c3   :  { %2232 = vmatpush.bf16.msrb.mxu2 %v4648_v29  ;;  %v4972_v29 = vor.u32 %v5718_v27, %v4971_v26  ;;  %v4888_v26 = vor.u32 %v5695_v57, %v4885_v24  ;;  %v5719_v27 = vld [vmem:[#allocation9 + $0xf4] sm:$0xf]  ;;  %v4941_v57 = vld [vmem:[#allocation9 + $0xa8] sm:$0xf0] }
 0x1c4   :  { %2666 = vmatpush.bf16.msra.mxu0 %v4892_v21  ;;  %v4896_v21 = vor.u32 %v5697_v18, %v4893_v19  ;;  %v5735_v19 = vld [vmem:[#allocation9 + $0x174] sm:$0xf] }
 0x1c5   :  { %2677 = vmatpush.bf16.msra.mxu1 %v4972_v29 }
 0x1c6   :  { %2194 = vmatpush.bf16.msra.mxu3 %v4756_v36  ;;  %v4963_v36 = vld [vmem:[#allocation9 + $0xd0] sm:$0xf] }
 0x1c7   :  { %2233 = vmatpush.bf16.msrb.mxu2 %v4632_v37  ;;  %v4868_v37 = vor.u32 %v5692_v35, %v4867_v34  ;;  %v4964_v39 = vor.u32 %v5716_v38, %v4963_v36  ;;  %v5011_v34 = vld [vmem:[#allocation9 + $0x130] sm:$0xf]  ;;  %v5728_v35 = vld [vmem:[#allocation9 + $0x134] sm:$0xf0]  ;;  %v5693_v36 = vld [vmem:[#allocation9 + $0x24] sm:$0xf] }
 0x1c8   :  { %2667 = vmatpush.bf16.msra.mxu0 %v4884_v55  ;;  %v4924_v55 = vor.u32 %v5706_v56, %v4923_v51  ;;  %v4877_v38 = vld [vmem:[#allocation9 + $0x28] sm:$0xf0] }
 0x1c9   :  { %2678 = vmatpush.bf16.msra.mxu1 %v4964_v39  ;;  %v5717_v39 = vld [vmem:[#allocation9 + $0xe4] sm:$0xf]  ;;  %v4880_v41 = vor.u32 %v5693_v36, %v4877_v38  ;;  %v5748_v36 = vld [vmem:[#allocation9 + $0x1d4] sm:$0xf0] }
 0x1ca   :  { %2195 = vmatpush.bf16.msra.mxu3 %v4740_v33  ;;  %v5714_v33 = vld [vmem:[#allocation9 + $0xc4] sm:$0xf0] }
 0x1cb   :  { %2234 = vmatpush.bf16.msrb.mxu2 %v4616_v45  ;;  %v5703_v45 = vld [vmem:[#allocation9 + $0x74] sm:$0xf]  ;;  %v4956_v47 = vor.u32 %v5714_v33, %v4955_v42  ;;  %v4976_v42 = vor.u32 %v5717_v39, %v4973_v40  ;;  %v5726_v33 = vld [vmem:[#allocation9 + $0x124] sm:$0xf0]  ;;  %v4933_v40 = vld [vmem:[#allocation9 + $0x98] sm:$0xf0] }
 0x1cc   :  { %2668 = vmatpush.bf16.msra.mxu0 %v4876_v28  ;;  %v4981_v28 = vld [vmem:[#allocation9 + $0xf8] sm:$0xf0]  ;;  %v5707_v39 = vld [vmem:[#allocation9 + $0x94] sm:$0xf] }
 0x1cd   :  { %2196 = vmatmul.bf16.vlgmr.msra.gmra.mxu3 %v6317_v60  ;;  %2679 = vmatpush.bf16.msra.mxu1 %v4956_v47  ;;  %v4869_v47 = vld [vmem:[#allocation9 + $0x18] sm:$0xf0] }
 0x1ce   :  { %2240 = vmatpush.bf16.msrb.mxu3 %v4856_v46  ;;  %2235 = vmatmul.bf16.vlgmr.msrb.gmra.mxu2 %v6309_v32  ;;  %v4741_v32 = vld [vmem:[#allocation6 + $0x318] sm:$0xf0]  ;;  %v4917_v46 = vld [vmem:[#allocation9 + $0x78] sm:$0xf0] }
 0x1cf   :  { %v4744_v9 = vor.u32 %v5658_v8, %v4741_v32  ;;  %v4920_v48 = vor.u32 %v5703_v45, %v4917_v46  ;;  %v5699_v8 = vld [vmem:[#allocation9 + $0x54] sm:$0xf]  ;;  %v4901_v32 = vld [vmem:[#allocation9 + $0x58] sm:$0xf0] }
 0x1d0   :  { %2669 = vmatpush.bf16.msra.mxu0 %v4868_v37  ;;  %v4904_v49 = vor.u32 %v5699_v8, %v4901_v32  ;;  %v5012_v37 = vor.u32 %v5728_v35, %v5011_v34  ;;  %v5691_v46 = vld [vmem:[#allocation9 + $0x14] sm:$0xf]  ;;  %v1397_v8 = vperm.slane %v6343_v62, 0  ;;  %v5091_v35 = vld [vmem:[#allocation9 + $0x1d0] sm:$0xf] }
 0x1d1   :  { %v5092_v38 = vor.u32 %v5748_v36, %v5091_v35 }
 0x1d2   :  { %2241 = vmatpush.bf16.msrb.mxu3 %v4840_v52 }
 0x1d4   :  { %2670 = vmatpush.bf16.msra.mxu0 %v4860_v44  ;;  %v5003_v44 = vld [vmem:[#allocation9 + $0x120] sm:$0xf] }
 0x1d5   :  { %v5004_v45 = vor.u32 %v5726_v33, %v5003_v44 }
 0x1d6   :  { %2242 = vmatpush.bf16.msrb.mxu3 %v4824_v54  ;;  %v5712_v54 = vld [vmem:[#allocation9 + $0xb4] sm:$0xf0] }
 0x1d7   :  { %v4948_v59 = vor.u32 %v5712_v54, %v4947_v0  ;;  %v4872_v0 = vor.u32 %v5691_v46, %v4869_v47  ;;  %v4965_v54 = vld [vmem:[#allocation9 + $0xd8] sm:$0xf0]  ;;  %v5746_v46 = vld [vmem:[#allocation9 + $0x1c4] sm:$0xf0] }
 0x1d8   :  { %2715 = vmatpush.bf16.msrb.mxu0 %v4920_v48  ;;  %v5715_v48 = vld [vmem:[#allocation9 + $0xd4] sm:$0xf] }
 0x1d9   :  { %2680 = vmatpush.bf16.msra.mxu1 %v4948_v59 }
 0x1da   :  { %2243 = vmatpush.bf16.msrb.mxu3 %v4808_v61  ;;  %v5736_v61 = vld [vmem:[#allocation9 + $0x174] sm:$0xf0] }
 0x1dc   :  { %2716 = vmatpush.bf16.msrb.mxu0 %v4912_v2 }
 0x1de   :  { %2244 = vmatpush.bf16.msrb.mxu3 %v4792_v1  ;;  %v5044_v1 = vor.u32 %v5736_v61, %v5043_v58  ;;  %v4968_v61 = vor.u32 %v5715_v48, %v4965_v54  ;;  %v4925_v54 = vld [vmem:[#allocation9 + $0x88] sm:$0xf0] }
 0x1e0   :  { %2689 = vmatpush.bf16.msra.mxu2 %v5044_v1  ;;  %2717 = vmatpush.bf16.msrb.mxu0 %v4904_v49  ;;  %v5724_v1 = vld [vmem:[#allocation9 + $0x114] sm:$0xf0]  ;;  %v4987_v49 = vld [vmem:[#allocation9 + $0x100] sm:$0xf] }
 0x1e1   :  { %v4996_v2 = vor.u32 %v5724_v1, %v4995_v63  ;;  %v5021_v1 = vld [vmem:[#allocation9 + $0x148] sm:$0xf0] }
 0x1e2   :  { %2245 = vmatpush.bf16.msrb.mxu3 %v4776_v4  ;;  %v5710_v4 = vld [vmem:[#allocation9 + $0xa4] sm:$0xf0] }
 0x1e3   :  { %v4940_v6 = vor.u32 %v5710_v4, %v4939_v3  ;;  %v5689_v3 = vld [vmem:[#allocation9 + $0x4] sm:$0xf]  ;;  %v4861_v4 = vld [vmem:[#allocation9 + $0x8] sm:$0xf0] }
 0x1e4   :  { %2718 = vmatpush.bf16.msrb.mxu0 %v4896_v21  ;;  %v5099_v21 = vld [vmem:[#allocation9 + $0x1e0] sm:$0xf] }
 0x1e5   :  { %2681 = vmatpush.bf16.msra.mxu1 %v4940_v6  ;;  %v4864_v6 = vor.u32 %v5689_v3, %v4861_v4 }
 0x1e6   :  { %2246 = vmatpush.bf16.msrb.mxu3 %v4760_v7  ;;  %v5734_v7 = vld [vmem:[#allocation9 + $0x164] sm:$0xf0] }
 0x1e8   :  { %v6327_v10 = vpop.f32.mrf.mxu0  ;;  %2719 = vmatpush.bf16.msrb.mxu0 %v4888_v26  ;;  %v5037_v26 = vld [vmem:[#allocation9 + $0x168] sm:$0xf0] }
 0x1e9   :  { %2682 = vmatpush.bf16.msra.mxu1 %v4932_v16  ;;  %v4949_v16 = vld [vmem:[#allocation9 + $0xb8] sm:$0xf0]  ;;  %v2055_v51 = vadd.f32 %v6327_v10, %v1397_v8 }
 0x1ea   :  { %2247 = vmatpush.bf16.msrb.mxu3 %v4744_v9  ;;  %v5036_v9 = vor.u32 %v5734_v7, %v5035_v5  ;;  %v5713_v5 = vld [vmem:[#allocation9 + $0xc4] sm:$0xf]  ;;  %v4957_v7 = vld [vmem:[#allocation9 + $0xc8] sm:$0xf0] }
 0x1eb   :  { %v4960_v32 = vor.u32 %v5713_v5, %v4957_v7  ;;  %v5744_v7 = vld [vmem:[#allocation9 + $0x1b4] sm:$0xf0] }
 0x1ec   :  { %2690 = vmatpush.bf16.msra.mxu2 %v5036_v9  ;;  %2720 = vmatpush.bf16.msrb.mxu0 %v4880_v41  ;;  %v5731_v41 = vld [vmem:[#allocation9 + $0x154] sm:$0xf] }
 0x1ed   :  { %2248 = vmatmul.bf16.vlgmr.msrb.gmra.mxu3 %v6317_v60  ;;  %2683 = vmatpush.bf16.msra.mxu1 %v4924_v55  ;;  %v5750_v55 = vld [vmem:[#allocation9 + $0x1e4] sm:$0xf0] }
 0x1ee   :  { %v5100_v24 = vor.u32 %v5750_v55, %v5099_v21  ;;  %v4997_v55 = vld [vmem:[#allocation9 + $0x118] sm:$0xf0] }
 0x1f0   :  { %v2056_v15 = vpop.f32.mrf.mxu0  ;;  %2721 = vmatpush.bf16.msrb.mxu0 %v4872_v0  ;;  %v5705_v0 = vld [vmem:[#allocation9 + $0x84] sm:$0xf] }
 0x1f1   :  { %v5027_v15 = vld [vmem:[#allocation9 + $0x150] sm:$0xf]  ;;  %v4928_v63 = vor.u32 %v5705_v0, %v4925_v54 }
 0x1f2   :  { %v5028_v20 = vor.u32 %v5732_v17, %v5027_v15  ;;  %v5711_v15 = vld [vmem:[#allocation9 + $0xb4] sm:$0xf] }
 0x1f3   :  { %v4952_v18 = vor.u32 %v5711_v15, %v4949_v16  ;;  %v5725_v15 = vld [vmem:[#allocation9 + $0x124] sm:$0xf] }
 0x1f4   :  { %2691 = vmatpush.bf16.msra.mxu2 %v5028_v20  ;;  %2722 = vmatpush.bf16.msrb.mxu0 %v4864_v6  ;;  %v5045_v20 = vld [vmem:[#allocation9 + $0x178] sm:$0xf0]  ;;  %v5075_v6 = vld [vmem:[#allocation9 + $0x1b0] sm:$0xf] }
 0x1f5   :  { %v5048_v22 = vor.u32 %v5735_v19, %v5045_v20  ;;  %v5076_v8 = vor.u32 %v5744_v7, %v5075_v6  ;;  %v5741_v7 = vld [vmem:[#allocation9 + $0x1a4] sm:$0xf] }
 0x1f8   :  { %v6329_v50 = vpop.f32.mrf.mxu1  ;;  %v6331_v60 = vpop.f32.mrf.mxu0  ;;  %2692 = vmatpush.bf16.msra.mxu2 %v5020_v25  ;;  %v5733_v25 = vld [vmem:[#allocation9 + $0x164] sm:$0xf] }
 0x1fc   :  { %2693 = vmatpush.bf16.msra.mxu2 %v5012_v37 }
 0x200   :  { %v2069_v30 = vpop.f32.mrf.mxu1  ;;  %v2108_v31 = vpop.f32.mrf.mxu0  ;;  %2694 = vmatpush.bf16.msra.mxu2 %v5004_v45 }
 0x201   :  { %v4984_v31 = vor.u32 %v5719_v27, %v4981_v28  ;;  %v2068_v27 = vadd.f32 %v6329_v50, %v2055_v51  ;;  %v4944_v28 = vor.u32 %v5709_v23, %v4941_v57  ;;  %v5029_v50 = vld [vmem:[#allocation9 + $0x158] sm:$0xf0]  ;;  %v5059_v51 = vld [vmem:[#allocation9 + $0x190] sm:$0xf] }
 0x202   :  { %v5032_v45 = vor.u32 %v5731_v41, %v5029_v50  ;;  %v5101_v50 = vld [vmem:[#allocation9 + $0x1e8] sm:$0xf0] }
 0x203   :  { %2728 = vmatpush.bf16.msrb.mxu1 %v4984_v31 }
 0x204   :  { %2695 = vmatpush.bf16.msra.mxu2 %v4996_v2  ;;  %v1398_v2 = vperm.slane %v6343_v62, 1 }
 0x206   :  { %v2107_v16 = vadd.f32 %v6331_v60, %v1398_v2 }
 0x207   :  { %2729 = vmatpush.bf16.msrb.mxu1 %v4976_v42  ;;  %v4936_v42 = vor.u32 %v5707_v39, %v4933_v40  ;;  %v1399_v39 = vperm.slane %v6343_v62, 2 }
 0x208   :  { %v6333_v52 = vpop.f32.mrf.mxu1  ;;  %v6335_v53 = vpop.f32.mrf.mxu0 }
 0x209   :  { %v2120_v20 = vadd.f32 %v6333_v52, %v2107_v16  ;;  %v5751_v52 = vld [vmem:[#allocation9 + $0x1f4] sm:$0xf]  ;;  %v5737_v16 = vld [vmem:[#allocation9 + $0x184] sm:$0xf] }
 0x20b   :  { %2730 = vmatpush.bf16.msrb.mxu1 %v4968_v61 }
 0x20f   :  { %2731 = vmatpush.bf16.msrb.mxu1 %v4960_v32  ;;  %v5727_v32 = vld [vmem:[#allocation9 + $0x134] sm:$0xf] }
 0x210   :  { %v2121_v12 = vpop.f32.mrf.mxu1  ;;  %v2160_v13 = vpop.f32.mrf.mxu0 }
 0x211   :  { %v6337_v11 = vpop.f32.mrf.mxu2  ;;  %v5722_v12 = vld [vmem:[#allocation9 + $0x104] sm:$0xf0]  ;;  %v5107_v13 = vld [vmem:[#allocation9 + $0x1f0] sm:$0xf] }
 0x212   :  { %v4988_v14 = vor.u32 %v5722_v12, %v4987_v49  ;;  %v5108_v17 = vor.u32 %v5752_v43, %v5107_v13  ;;  %v2081_v31 = vadd.f32 %v6337_v11, %v2068_v27  ;;  %v5083_v11 = vld [vmem:[#allocation9 + $0x1c0] sm:$0xf]  ;;  %v5013_v49 = vld [vmem:[#allocation9 + $0x138] sm:$0xf0]  ;;  %v5742_v43 = vld [vmem:[#allocation9 + $0x1a4] sm:$0xf0] }
 0x213   :  { %2732 = vmatpush.bf16.msrb.mxu1 %v4952_v18  ;;  %v5084_v48 = vor.u32 %v5746_v46, %v5083_v11  ;;  %v5016_v13 = vor.u32 %v5727_v32, %v5013_v49  ;;  %v5005_v18 = vld [vmem:[#allocation9 + $0x128] sm:$0xf0]  ;;  %v5738_v27 = vld [vmem:[#allocation9 + $0x184] sm:$0xf0]  ;;  %v5747_v46 = vld [vmem:[#allocation9 + $0x1d4] sm:$0xf] }
 0x214   :  { %2696 = vmatpush.bf16.msra.mxu2 %v4988_v14  ;;  %2702 = vmatpush.bf16.msra.mxu3 %v5108_v17  ;;  %v5067_v14 = vld [vmem:[#allocation9 + $0x1a0] sm:$0xf]  ;;  %v5008_v21 = vor.u32 %v5725_v15, %v5005_v18 }
 0x215   :  { %v5068_v19 = vor.u32 %v5742_v43, %v5067_v14  ;;  %v5739_v14 = vld [vmem:[#allocation9 + $0x194] sm:$0xf]  ;;  %v5061_v43 = vld [vmem:[#allocation9 + $0x198] sm:$0xf0] }
 0x216   :  { %v5064_v15 = vor.u32 %v5739_v14, %v5061_v43  ;;  %v5772_v14 = vld [vmem:[#allocation12 + $0x98] sm:$0xff]  ;;  %v5781_v43 = vld [vmem:[#allocation12 + $0xe0] sm:$0xff] }
 0x217   :  { %2733 = vmatpush.bf16.msrb.mxu1 %v4944_v28  ;;  %v5721_v28 = vld [vmem:[#allocation9 + $0x104] sm:$0xf] }
 0x218   :  { %v6339_v30 = vpop.f32.mrf.mxu1  ;;  %2741 = vmatpush.bf16.msrb.mxu2 %v5048_v22  ;;  %2703 = vmatpush.bf16.msra.mxu3 %v5100_v24  ;;  %v5723_v22 = vld [vmem:[#allocation9 + $0x114] sm:$0xf] }
 0x219   :  { %v2082_v29 = vpop.f32.mrf.mxu2  ;;  %v5000_v60 = vor.u32 %v5723_v22, %v4997_v55 }
 0x21a   :  { %v5040_v29 = vor.u32 %v5733_v25, %v5037_v26  ;;  %v5051_v26 = vld [vmem:[#allocation9 + $0x180] sm:$0xf] }
 0x21b   :  { %2734 = vmatpush.bf16.msrb.mxu1 %v4936_v42  ;;  %v5052_v35 = vor.u32 %v5738_v27, %v5051_v26  ;;  %v5749_v42 = vld [vmem:[#allocation9 + $0x1e4] sm:$0xf]  ;;  %v2783_v26 = vld [vmem:[#allocation13 + $0x78] sm:$0xff] }
 0x21c   :  { %2742 = vmatpush.bf16.msrb.mxu2 %v5040_v29  ;;  %2704 = vmatpush.bf16.msra.mxu3 %v5092_v38  ;;  %v2782_v27 = vld [vmem:[#allocation13 + $0x70] sm:$0xff] }
 0x21f   :  { %2735 = vmatpush.bf16.msrb.mxu1 %v4928_v63  ;;  %v5745_v63 = vld [vmem:[#allocation9 + $0x1c4] sm:$0xf] }
 0x220   :  { %v2173_v59 = vpop.f32.mrf.mxu1  ;;  %2743 = vmatpush.bf16.msrb.mxu2 %v5032_v45  ;;  %2705 = vmatpush.bf16.msra.mxu3 %v5084_v48  ;;  %v2159_v45 = vadd.f32 %v6335_v53, %v1399_v39  ;;  %v5743_v53 = vld [vmem:[#allocation9 + $0x1b4] sm:$0xf]  ;;  %v2774_v39 = vld [vmem:[#allocation13 + $0x30] sm:$0xff] }
 0x221   :  { %v6341_v58 = vpop.f32.mrf.mxu2  ;;  %v5729_v59 = vld [vmem:[#allocation9 + $0x144] sm:$0xf] }
 0x222   :  { %v5024_v3 = vor.u32 %v5729_v59, %v5021_v1  ;;  %v2133_v23 = vadd.f32 %v6341_v58, %v2120_v20  ;;  %v2172_v11 = vadd.f32 %v6339_v30, %v2159_v45  ;;  %v5085_v1 = vld [vmem:[#allocation9 + $0x1c8] sm:$0xf0] }
 0x223   :  { %v5088_v2 = vor.u32 %v5745_v63, %v5085_v1  ;;  %v5768_v45 = vld [vmem:[#allocation12 + $0x78] sm:$0xff] }
 0x224   :  { %2744 = vmatpush.bf16.msrb.mxu2 %v5024_v3  ;;  %2706 = vmatpush.bf16.msra.mxu3 %v5076_v8  ;;  %v5069_v8 = vld [vmem:[#allocation9 + $0x1a8] sm:$0xf0] }
 0x225   :  { %v5784_v63 = vld [vmem:[#allocation12 + $0xf8] sm:$0xff] }
 0x228   :  { %v6346_v9 = vpop.f32.mrf.mxu0  ;;  %2745 = vmatpush.bf16.msrb.mxu2 %v5016_v13  ;;  %2707 = vmatpush.bf16.msra.mxu3 %v5068_v19  ;;  %v5072_v13 = vor.u32 %v5741_v7, %v5069_v8  ;;  %v1400_v19 = vperm.slane %v6343_v62, 3  ;;  %v6369_v62 = vld [vmem:[%s6455_s6] sm:$0x3] }
 0x229   :  { %v2134_v56 = vpop.f32.mrf.mxu2  ;;  %v5757_v7 = vld [vmem:[#allocation12 + $0x20] sm:$0xff] }
 0x22a   :  { %v5740_v56 = vld [vmem:[#allocation9 + $0x194] sm:$0xf0]  ;;  %v2211_v20 = vadd.f32 %v6346_v9, %v1400_v19  ;;  %v2339_v9 = vperm.slane %v6369_v62, 0  ;;  %v5773_v8 = vld [vmem:[#allocation12 + $0xa0] sm:$0xff]  ;;  %v5780_v19 = vld [vmem:[#allocation12 + $0xd8] sm:$0xff] }
 0x22b   :  { %v5060_v24 = vor.u32 %v5740_v56, %v5059_v51 }
 0x22c   :  { %2746 = vmatpush.bf16.msrb.mxu2 %v5008_v21 }
 0x22d   :  { %2708 = vmatpush.bf16.msra.mxu3 %v5060_v24 }
 0x230   :  { %v2093_v34 = vpop.f32.mrf.mxu3  ;;  %v2212_v10 = vpop.f32.mrf.mxu0  ;;  %2747 = vmatpush.bf16.msrb.mxu2 %v5000_v60 }
 0x231   :  { %v2094_v37 = vadd.f32 %v2093_v34, %v2081_v31  ;;  %v6351_v33 = vpop.f32.mrf.mxu2  ;;  %v4989_v31 = vld [vmem:[#allocation9 + $0x108] sm:$0xf0]  ;;  %v5109_v34 = vld [vmem:[#allocation9 + $0x1f8] sm:$0xf0]  ;;  %2709 = vmatpush.bf16.msra.mxu3 %v5052_v35  ;;  %v2776_v35 = vld [vmem:[#allocation13 + $0x40] sm:$0xff] }
 0x232   :  { %v4992_v58 = vor.u32 %v5721_v28, %v4989_v31  ;;  %v2185_v0 = vadd.f32 %v6351_v33, %v2172_v11  ;;  %v2781_v28 = vld [vmem:[#allocation13 + $0x68] sm:$0xff]  ;;  %v5760_v11 = vld [vmem:[#allocation12 + $0x38] sm:$0xff] }
 0x233   :  { %vm2253_vm9 = vcmp.ge.f32.partialorder %v2094_v37, 0.0  ;;  %v2257_v44 = vmul.f32 0.2, %v2094_v37 }
 0x234   :  { %2748 = vmatpush.bf16.msrb.mxu2 %v4992_v58 }
 0x235   :  { %v2261_v47 = vsel %vm2253_vm9, %v2094_v37, %v2257_v44  ;;  %v5112_v37 = vor.u32 %v5751_v52, %v5109_v34  ;;  %v5104_v44 = vor.u32 %v5749_v42, %v5101_v50  ;;  %v2779_v52 = vld [vmem:[#allocation13 + $0x58] sm:$0xff]  ;;  %v2778_v34 = vld [vmem:[#allocation13 + $0x50] sm:$0xff] }
 0x236   :  { %v2265_v61 = vmul.f32 1.4142135, %v2261_v47  ;;  %v5093_v47 = vld [vmem:[#allocation9 + $0x1d8] sm:$0xf0]  ;;  %v2771_v42 = vld [vmem:[#allocation13 + $0x18] sm:$0xff] }
 0x237   :  { %2754 = vmatpush.bf16.msrb.mxu3 %v5112_v37  ;;  %v5096_v48 = vor.u32 %v5747_v46, %v5093_v47  ;;  %v5776_v46 = vld [vmem:[#allocation12 + $0xb8] sm:$0xff]  ;;  %v2770_v47 = vld [vmem:[#allocation13 + $0x10] sm:$0xff] }
 0x238   :  { %v2269_v4 = vpack.c.bf16 %v2265_v61, %v2265_v61  ;;  %v2095_v5 = vpop.f32.mrf.mxu3  ;;  %v6354_v12 = vpop.f32.mrf.mxu1 }
 0x239   :  { %v2186_v17 = vpop.f32.mrf.mxu2  ;;  %v5077_v5 = vld [vmem:[#allocation9 + $0x1b8] sm:$0xf0]  ;;  %v2224_v21 = vadd.f32 %v6354_v12, %v2211_v20 }
 0x23a   :  { %2671 = vmatmul.bf16.vlgmr.msra.gmra.mxu0 %v2269_v4  ;;  %v5080_v6 = vor.u32 %v5743_v53, %v5077_v5  ;;  %v5053_v17 = vld [vmem:[#allocation9 + $0x188] sm:$0xf0]  ;;  %v5783_v53 = vld [vmem:[#allocation12 + $0xf0] sm:$0xff]  ;;  %v5762_v20 = vld [vmem:[#allocation12 + $0x48] sm:$0xff] }
 0x23b   :  { %2755 = vmatpush.bf16.msrb.mxu3 %v5104_v44  ;;  %v5056_v18 = vor.u32 %v5737_v16, %v5053_v17  ;;  %2784 = vmatpush.msra.mxu0 %v2783_v26  ;;  %v5755_v16 = vld [vmem:[#allocation12 + $0x10] sm:$0xff] }
 0x23d   :  { %2785 = vmatpush.msra.mxu0 %v2782_v27  ;;  %v5791_v27 = vld [vmem:[#allocation12 + $0x130] sm:$0xff] }
 0x23f   :  { %2756 = vmatpush.bf16.msrb.mxu3 %v5096_v48  ;;  %2786 = vmatpush.msra.mxu0 %v2781_v28  ;;  %v2769_v48 = vld [vmem:[#allocation13 + $0x8] sm:$0xff]  ;;  %v5799_v28 = vld [vmem:[#allocation12 + $0x170] sm:$0xff] }
 0x240   :  { %v2145_v57 = vpop.f32.mrf.mxu3  ;;  %v2225_v29 = vpop.f32.mrf.mxu1 }
 0x241   :  { %v2146_v25 = vadd.f32 %v2145_v57, %v2133_v23  ;;  %v2780_v29 = vld [vmem:[#allocation13 + $0x60] sm:$0xff] }
 0x242   :  { %2787 = vmatpush.msra.mxu0 %v2780_v29  ;;  %v5807_v29 = vld [vmem:[#allocation12 + $0x1b0] sm:$0xff] }
 0x243   :  { %vm2254_vm10 = vcmp.ge.f32.partialorder %v2146_v25, 0.0  ;;  %v2258_v10 = vmul.f32 0.2, %v2146_v25  ;;  %2757 = vmatpush.bf16.msrb.mxu3 %v5088_v2  ;;  %v5766_v2 = vld [vmem:[#allocation12 + $0x68] sm:$0xff] }
 0x244   :  { %2788 = vmatpush.msra.mxu0 %v2779_v52 }
 0x245   :  { %v2262_v36 = vsel %vm2254_vm10, %v2146_v25, %v2258_v10  ;;  %v2777_v10 = vld [vmem:[#allocation13 + $0x48] sm:$0xff] }
 0x246   :  { %v2266_v38 = vmul.f32 1.4142135, %v2262_v36  ;;  %2789 = vmatpush.msra.mxu0 %v2778_v34  ;;  %v2775_v36 = vld [vmem:[#allocation13 + $0x38] sm:$0xff]  ;;  %v5798_v34 = vld [vmem:[#allocation12 + $0x168] sm:$0xff] }
 0x247   :  { %2758 = vmatpush.bf16.msrb.mxu3 %v5080_v6  ;;  %v5765_v6 = vld [vmem:[#allocation12 + $0x60] sm:$0xff] }
 0x248   :  { %v2270_v40 = vpack.c.bf16 %v2266_v38, %v2266_v38  ;;  %v2147_v41 = vpop.f32.mrf.mxu3  ;;  %2790 = vmatpush.msra.mxu0 %v2777_v10  ;;  %v5806_v10 = vld [vmem:[#allocation12 + $0x1a8] sm:$0xff] }
 0x249   :  { %v2772_v41 = vld [vmem:[#allocation13 + $0x20] sm:$0xff] }
 0x24a   :  { %2684 = vmatmul.bf16.vlgmr.msra.gmra.mxu1 %v2270_v40  ;;  %2723 = vmatmul.bf16.vlgmr.msrb.gmra.mxu0 %v2269_v4 }
 0x24b   :  { %2759 = vmatpush.bf16.msrb.mxu3 %v5072_v13  ;;  %2791 = vmatpush.msra.mxu0 %v2776_v35  ;;  %v5756_v13 = vld [vmem:[#allocation12 + $0x18] sm:$0xff] }
 0x24c   :  { %2918 = vmatpush.bf16.msra.mxu1 %v5768_v45 }
 0x24d   :  { %2792 = vmatpush.msra.mxu0 %v2775_v36  ;;  %v5789_v36 = vld [vmem:[#allocation12 + $0x120] sm:$0xff] }
 0x24f   :  { %2760 = vmatpush.bf16.msrb.mxu3 %v5064_v15  ;;  %2793 = vmatpush.msra.mxu0 %v2774_v39  ;;  %v5763_v15 = vld [vmem:[#allocation12 + $0x50] sm:$0xff]  ;;  %v2340_v39 = vperm.slane %v6369_v62, 1  ;;  %v5786_v62 = vld [vmem:[#allocation12 + $0x108] sm:$0xff] }
 0x250   :  { %v2197_v54 = vpop.f32.mrf.mxu3 }
 0x251   :  { %v2198_v59 = vadd.f32 %v2197_v54, %v2185_v0  ;;  %v2236_v61 = vpop.f32.mrf.mxu2  ;;  %v2768_v0 = vld [vmem:[#allocation13] sm:$0xff]  ;;  %v5767_v54 = vld [vmem:[#allocation12 + $0x70] sm:$0xff] }
 0x252   :  { %v2237_v51 = vadd.f32 %v2236_v61, %v2224_v21  ;;  %v5775_v61 = vld [vmem:[#allocation12 + $0xb0] sm:$0xff]  ;;  %2919 = vmatpush.bf16.msra.mxu1 %v5767_v54  ;;  %v5754_v21 = vld [vmem:[#allocation12 + $0x8] sm:$0xff] }
 0x253   :  { %vm2255_vm11 = vcmp.ge.f32.partialorder %v2198_v59, 0.0  ;;  %v2259_v3 = vmul.f32 0.2, %v2198_v59  ;;  %2761 = vmatpush.bf16.msrb.mxu3 %v5056_v18  ;;  %v5771_v18 = vld [vmem:[#allocation12 + $0x90] sm:$0xff]  ;;  %v5794_v54 = vld [vmem:[#allocation12 + $0x148] sm:$0xff] }
 0x255   :  { %v2263_v4 = vsel %vm2255_vm11, %v2198_v59, %v2259_v3  ;;  %v5759_v59 = vld [vmem:[#allocation12 + $0x30] sm:$0xff]  ;;  %v5758_v3 = vld [vmem:[#allocation12 + $0x28] sm:$0xff] }
 0x256   :  { %v2267_v30 = vmul.f32 1.4142135, %v2263_v4  ;;  %v5774_v4 = vld [vmem:[#allocation12 + $0xa8] sm:$0xff]  ;;  %2920 = vmatpush.bf16.msra.mxu1 %v5766_v2 }
 0x257   :  { %v2846_v2 = vld [vmem:[#allocation10 + $0x18] sm:$0xff] }
 0x258   :  { %v2271_v32 = vpack.c.bf16 %v2267_v30, %v2267_v30  ;;  %v2199_v49 = vpop.f32.mrf.mxu3 }
 0x259   :  { %v2238_v33 = vpop.f32.mrf.mxu2  ;;  %v5782_v49 = vld [vmem:[#allocation12 + $0xe8] sm:$0xff] }
 0x25a   :  { %2697 = vmatmul.bf16.vlgmr.msra.gmra.mxu2 %v2271_v32  ;;  %2736 = vmatmul.bf16.vlgmr.msrb.gmra.mxu1 %v2270_v40  ;;  %v2773_v40 = vld [vmem:[#allocation13 + $0x28] sm:$0xff]  ;;  %v5764_v33 = vld [vmem:[#allocation12 + $0x58] sm:$0xff] }
 0x25b   :  { %2794 = vmatpush.msra.mxu0 %v2773_v40  ;;  %2985 = vmatpush.bf16.msra.mxu2 %v5760_v11  ;;  %v5787_v11 = vld [vmem:[#allocation12 + $0x110] sm:$0xff] }
 0x25c   :  { %2921 = vmatpush.bf16.msra.mxu1 %v5765_v6  ;;  %v3102_v6 = vld [vmem:[#allocation10 + $0x30] sm:$0xff] }
 0x25d   :  { %2795 = vmatpush.msra.mxu0 %v2772_v41  ;;  %v5788_v41 = vld [vmem:[#allocation12 + $0x118] sm:$0xff] }
 0x25f   :  { %2796 = vmatpush.msra.mxu0 %v2771_v42  ;;  %2986 = vmatpush.bf16.msra.mxu2 %v5759_v59  ;;  %v5796_v42 = vld [vmem:[#allocation12 + $0x158] sm:$0xff] }
 0x260   :  { %2922 = vmatpush.bf16.msra.mxu1 %v5764_v33 }
 0x261   :  { %2797 = vmatpush.msra.mxu0 %v2770_v47  ;;  %v5803_v47 = vld [vmem:[#allocation12 + $0x190] sm:$0xff] }
 0x263   :  { %2798 = vmatpush.msra.mxu0 %v2769_v48  ;;  %2987 = vmatpush.bf16.msra.mxu2 %v5758_v3  ;;  %v5816_v3 = vld [vmem:[#allocation12 + $0x1f8] sm:$0xff] }
 0x264   :  { %2923 = vmatpush.bf16.msra.mxu1 %v5763_v15 }
 0x265   :  { %2799 = vmatpush.msra.mxu0 %v2768_v0 }
 0x267   :  { %3175 = vmatpush.bf16.msrb.mxu0 %v5784_v63  ;;  %2988 = vmatpush.bf16.msra.mxu2 %v5757_v7  ;;  %v5802_v63 = vld [vmem:[#allocation12 + $0x188] sm:$0xff] }
 0x268   :  { %2924 = vmatpush.bf16.msra.mxu1 %v5762_v20  ;;  %v3103_v7 = vld [vmem:[#allocation10 + $0x38] sm:$0xff] }
 0x26a   :  { %2749 = vmatmul.bf16.vlgmr.msrb.gmra.mxu2 %v2271_v32 }
 0x26b   :  { %3176 = vmatpush.bf16.msrb.mxu0 %v5783_v53  ;;  %2989 = vmatpush.bf16.msra.mxu2 %v5756_v13 }
 0x26f   :  { %3177 = vmatpush.bf16.msrb.mxu0 %v5782_v49  ;;  %2990 = vmatpush.bf16.msra.mxu2 %v5755_v16 }
 0x270   :  { %v2249_v56 = vpop.f32.mrf.mxu3 }
 0x271   :  { %v2250_v22 = vadd.f32 %v2249_v56, %v2237_v51  ;;  %v5770_v51 = vld [vmem:[#allocation12 + $0x88] sm:$0xff]  ;;  %v5779_v56 = vld [vmem:[#allocation12 + $0xd0] sm:$0xff] }
 0x273   :  { %vm2256_vm12 = vcmp.ge.f32.partialorder %v2250_v22, 0.0  ;;  %v2260_v55 = vmul.f32 0.2, %v2250_v22  ;;  %3178 = vmatpush.bf16.msrb.mxu0 %v5781_v43  ;;  %2991 = vmatpush.bf16.msra.mxu2 %v5754_v21 }
 0x275   :  { %v2264_v23 = vsel %vm2256_vm12, %v2250_v22, %v2260_v55  ;;  %v5761_v55 = vld [vmem:[#allocation12 + $0x40] sm:$0xff] }
 0x276   :  { %v2268_v57 = vmul.f32 1.4142135, %v2264_v23  ;;  %v5753_v23 = vld [vmem:[#allocation12] sm:$0xff]  ;;  %2925 = vmatpush.bf16.msra.mxu1 %v5761_v55 }
 0x277   :  { %3179 = vmatpush.bf16.msrb.mxu0 %v5780_v19  ;;  %2992 = vmatpush.bf16.msra.mxu2 %v5753_v23  ;;  %v5793_v19 = vld [vmem:[#allocation12 + $0x140] sm:$0xff] }
 0x278   :  { %v2272_v24 = vpack.c.bf16 %v2268_v57, %v2268_v57  ;;  %v2251_v25 = vpop.f32.mrf.mxu3  ;;  %v5769_v57 = vld [vmem:[#allocation12 + $0x80] sm:$0xff] }
 0x279   :  { %v5792_v25 = vld [vmem:[#allocation12 + $0x138] sm:$0xff] }
 0x27a   :  { %2710 = vmatmul.bf16.vlgmr.msra.gmra.mxu3 %v2272_v24  ;;  %3272 = vmatpush.bf16.msrb.mxu1 %v5792_v25 }
 0x27b   :  { %3078 = vmatpush.bf16.msra.mxu3 %v5776_v46  ;;  %3180 = vmatpush.bf16.msrb.mxu0 %v5779_v56  ;;  %v5795_v46 = vld [vmem:[#allocation12 + $0x150] sm:$0xff]  ;;  %v5801_v56 = vld [vmem:[#allocation12 + $0x180] sm:$0xff] }
 0x27e   :  { %3273 = vmatpush.bf16.msrb.mxu1 %v5791_v27  ;;  %v5812_v27 = vld [vmem:[#allocation12 + $0x1d8] sm:$0xff] }
 0x27f   :  { %3079 = vmatpush.bf16.msra.mxu3 %v5775_v61  ;;  %v2845_v61 = vld [vmem:[#allocation10 + $0x10] sm:$0xff] }
 0x283   :  { %3080 = vmatpush.bf16.msra.mxu3 %v5774_v4 }
 0x287   :  { %3081 = vmatpush.bf16.msra.mxu3 %v5773_v8  ;;  %v5785_v8 = vld [vmem:[#allocation12 + $0x100] sm:$0xff] }
 0x28a   :  { %2762 = vmatmul.bf16.vlgmr.msrb.gmra.mxu3 %v2272_v24  ;;  %v5778_v24 = vld [vmem:[#allocation12 + $0xc8] sm:$0xff] }
 0x28b   :  { %3082 = vmatpush.bf16.msra.mxu3 %v5772_v14  ;;  %3181 = vmatpush.bf16.msrb.mxu0 %v5778_v24  ;;  %v5823_v24 = vld [vmem:[#allocation12 + $0x230] sm:$0xff] }
 0x28f   :  { %3083 = vmatpush.bf16.msra.mxu3 %v5771_v18  ;;  %v5815_v18 = vld [vmem:[#allocation12 + $0x1f0] sm:$0xff] }
 0x293   :  { %3084 = vmatpush.bf16.msra.mxu3 %v5770_v51 }
 0x297   :  { %3085 = vmatpush.bf16.msra.mxu3 %v5769_v57  ;;  %v5814_v57 = vld [vmem:[#allocation12 + $0x1e8] sm:$0xff] }
 0x2b7   :  { %v2672_v12 = vpop.f32.mrf.mxu0 }
 0x2b8   :  { %v2673_v60 = vadd.f32 %v2672_v12, %v2339_v9  ;;  %v5777_v9 = vld [vmem:[#allocation12 + $0xc0] sm:$0xff]  ;;  %v5800_v12 = vld [vmem:[#allocation12 + $0x178] sm:$0xff] }
 0x2b9   :  { %3182 = vmatpush.bf16.msrb.mxu0 %v5777_v9  ;;  %3369 = vmatpush.bf16.msrb.mxu2 %v5800_v12  ;;  %v5813_v9 = vld [vmem:[#allocation12 + $0x1e0] sm:$0xff]  ;;  %v5822_v12 = vld [vmem:[#allocation12 + $0x228] sm:$0xff] }
 0x2bd   :  { %3370 = vmatpush.bf16.msrb.mxu2 %v5799_v28 }
 0x2bf   :  { %v2674_v31 = vpop.f32.mrf.mxu0 }
 0x2c0   :  { %v5790_v31 = vld [vmem:[#allocation12 + $0x128] sm:$0xff] }
 0x2c1   :  { %3274 = vmatpush.bf16.msrb.mxu1 %v5790_v31  ;;  %3371 = vmatpush.bf16.msrb.mxu2 %v5798_v34 }
 0x2c5   :  { %3275 = vmatpush.bf16.msrb.mxu1 %v5789_v36 }
 0x2c7   :  { %v2685_v58 = vpop.f32.mrf.mxu1  ;;  %v6372_v37 = vpop.f32.mrf.mxu0 }
 0x2c8   :  { %v2686_v38 = vadd.f32 %v2685_v58, %v2673_v60  ;;  %v5808_v60 = vld [vmem:[#allocation12 + $0x1b8] sm:$0xff]  ;;  %v5797_v58 = vld [vmem:[#allocation12 + $0x160] sm:$0xff] }
 0x2c9   :  { %3466 = vmatpush.bf16.msrb.mxu3 %v5808_v60  ;;  %3372 = vmatpush.bf16.msrb.mxu2 %v5797_v58  ;;  %v5811_v58 = vld [vmem:[#allocation12 + $0x1d0] sm:$0xff] }
 0x2ca   :  { %3276 = vmatpush.bf16.msrb.mxu1 %v5788_v41 }
 0x2cd   :  { %3467 = vmatpush.bf16.msrb.mxu3 %v5807_v29  ;;  %3373 = vmatpush.bf16.msrb.mxu2 %v5796_v42  ;;  %v5810_v42 = vld [vmem:[#allocation12 + $0x1c8] sm:$0xff] }
 0x2ce   :  { %3277 = vmatpush.bf16.msrb.mxu1 %v5787_v11  ;;  %v3199_v11 = vld [vmem:[#allocation10 + $0x40] sm:$0xff] }
 0x2cf   :  { %v2687_v50 = vpop.f32.mrf.mxu1  ;;  %v2726_v44 = vpop.f32.mrf.mxu0 }
 0x2d0   :  { %v5804_v50 = vld [vmem:[#allocation12 + $0x198] sm:$0xff]  ;;  %v2725_v44 = vadd.f32 %v6372_v37, %v2340_v39  ;;  %v2814_v37 = vld [vmem:[#allocation10] sm:$0xff] }
 0x2d1   :  { %3468 = vmatpush.bf16.msrb.mxu3 %v5806_v10  ;;  %3374 = vmatpush.bf16.msrb.mxu2 %v5795_v46  ;;  %v3200_v46 = vld [vmem:[#allocation10 + $0x48] sm:$0xff] }
 0x2d2   :  { %3278 = vmatpush.bf16.msrb.mxu1 %v5786_v62  ;;  %v3394_v62 = vld [vmem:[#allocation10 + $0x68] sm:$0xff] }
 0x2d5   :  { %3375 = vmatpush.bf16.msrb.mxu2 %v5794_v54 }
 0x2d6   :  { %3279 = vmatpush.bf16.msrb.mxu1 %v5785_v8 }
 0x2d7   :  { %v6374_v1 = vpop.f32.mrf.mxu1 }
 0x2d8   :  { %v2738_v45 = vadd.f32 %v6374_v1, %v2725_v44  ;;  %v2815_v1 = vld [vmem:[#allocation10 + $0x8] sm:$0xff]  ;;  %v5809_v44 = vld [vmem:[#allocation12 + $0x1c0] sm:$0xff] }
 0x2d9   :  { %3376 = vmatpush.bf16.msrb.mxu2 %v5793_v19 }
 0x2dd   :  { %v2698_v5 = vpop.f32.mrf.mxu2 }
 0x2de   :  { %v6376_v30 = vadd.f32 %v2698_v5, %v2686_v38  ;;  %v5805_v38 = vld [vmem:[#allocation12 + $0x1a0] sm:$0xff]  ;;  %v3005_v5 = vld [vmem:[#allocation10 + $0x20] sm:$0xff] }
 0x2df   :  { %v2739_v32 = vpop.f32.mrf.mxu1  ;;  %3469 = vmatpush.bf16.msrb.mxu3 %v5805_v38  ;;  %v5821_v38 = vld [vmem:[#allocation12 + $0x220] sm:$0xff] }
 0x2e3   :  { %3470 = vmatpush.bf16.msrb.mxu3 %v5804_v50  ;;  %v5820_v50 = vld [vmem:[#allocation12 + $0x218] sm:$0xff] }
 0x2e5   :  { %v2700_v17 = vpop.f32.mrf.mxu2 }
 0x2e7   :  { %3471 = vmatpush.bf16.msrb.mxu3 %v5803_v47  ;;  %v3296_v47 = vld [vmem:[#allocation10 + $0x50] sm:$0xff] }
 0x2eb   :  { %3472 = vmatpush.bf16.msrb.mxu3 %v5802_v63 }
 0x2ed   :  { %v2750_v22 = vpop.f32.mrf.mxu2 }
 0x2ee   :  { %v2751_v48 = vadd.f32 %v2750_v22, %v2738_v45  ;;  %v5824_v22 = vld [vmem:[#allocation12 + $0x238] sm:$0xff]  ;;  %v5819_v45 = vld [vmem:[#allocation12 + $0x210] sm:$0xff] }
 0x2ef   :  { %3473 = vmatpush.bf16.msrb.mxu3 %v5801_v56 }
 0x2f5   :  { %v2752_v26 = vpop.f32.mrf.mxu2 }
 0x2fd   :  { %v2711_v52 = vpop.f32.mrf.mxu3 }
 0x2fe   :  { %v6379_v35 = vadd.f32 %v2711_v52, %v6376_v30  ;;  %v3006_v30 = vld [vmem:[#allocation10 + $0x28] sm:$0xff] }
 0x305   :  { %v2713_v40 = vpop.f32.mrf.mxu3 }
 0x30d   :  { %v2763_v0 = vpop.f32.mrf.mxu3 }
 0x30e   :  { %v2764_v59 = vadd.f32 %v2763_v0, %v2751_v48  ;;  %v3297_v48 = vld [vmem:[#allocation10 + $0x58] sm:$0xff]  ;;  %v3393_v0 = vld [vmem:[#allocation10 + $0x60] sm:$0xff] }
 0x310   :  { %v2767_v4 = vmul.f32 %v2764_v59, %v2764_v59  ;;  %v6384_v53 = vperm.slane %v2764_v59, 0  ;;  %v2817_v55 = vrot.slane %v2764_v59, 1 }
 0x312   :  { %2800 = vmatmul.f32.vlgmr.msra.gmra.mxu0 %v2767_v4  ;;  %v2847_v32 = vmul.f32 %v2845_v61, %v6384_v53  ;;  %v2848_v49 = vmul.f32 %v2846_v2, %v6384_v53  ;;  %v2822_v33 = vmul.f32 %v6384_v53, %v2814_v37  ;;  %v2823_v13 = vmul.f32 %v6384_v53, %v2815_v1  ;;  %v3490_v4 = vld [vmem:[#allocation10 + $0x70] sm:$0xff] }
 0x313   :  { %v3007_v14 = vmul.f32 %v3005_v5, %v6384_v53  ;;  %v3008_v43 = vmul.f32 %v3006_v30, %v6384_v53  ;;  %3563 = vmatpush.bf16.msra.mxu0 %v5816_v3  ;;  %v3104_v16 = vmul.f32 %v3102_v6, %v6384_v53  ;;  %v3105_v17 = vmul.f32 %v3103_v7, %v6384_v53 }
 0x314   :  { %v2851_v15 = vpack.c.bf16 %v2848_v49, %v2847_v32  ;;  %v2826_v21 = vpack.c.bf16 %v2823_v13, %v2822_v33  ;;  %v6394_v25 = vperm.slane %v2817_v55, 0  ;;  %v3201_v54 = vmul.f32 %v3199_v11, %v6384_v53 }
 0x315   :  { %v2765_v20 = vpop.f32.mrf.mxu3  ;;  %v3011_v51 = vpack.c.bf16 %v3008_v43, %v3007_v14  ;;  %v3108_v23 = vpack.c.bf16 %v3105_v17, %v3104_v16  ;;  %v3202_v59 = vmul.f32 %v3200_v46, %v6384_v53  ;;  %v3298_v63 = vmul.f32 %v3296_v47, %v6384_v53 }
 0x316   :  { %2926 = vmatmul.bf16.vlgmr.msra.gmra.mxu1 %v2851_v15  ;;  %2993 = vmatmul.bf16.vlgmr.msra.gmra.mxu2 %v2826_v21  ;;  %v2849_v60 = vmul.f32 %v2845_v61, %v6394_v25  ;;  %v2850_v26 = vmul.f32 %v2846_v2, %v6394_v25  ;;  %v2824_v28 = vmul.f32 %v6394_v25, %v2814_v37  ;;  %v5818_v61 = vld [vmem:[#allocation12 + $0x208] sm:$0xff]  ;;  %v3587_v20 = vld [vmem:[#allocation10 + $0x80] sm:$0xff]  ;;  %v3588_v21 = vld [vmem:[#allocation10 + $0x88] sm:$0xff] }
 0x317   :  { %3086 = vmatmul.bf16.vlgmr.msra.gmra.mxu3 %v3011_v51  ;;  %3564 = vmatpush.bf16.msra.mxu0 %v5815_v18  ;;  %v2825_v29 = vmul.f32 %v6394_v25, %v2815_v1  ;;  %v3009_v31 = vmul.f32 %v3005_v5, %v6394_v25  ;;  %v3010_v52 = vmul.f32 %v3006_v30, %v6394_v25  ;;  %v3491_v1 = vld [vmem:[#allocation10 + $0x78] sm:$0xff] }
 0x318   :  { %3660 = vmatpush.bf16.msra.mxu1 %v5824_v22  ;;  %5833 = vmatpush.bf16.msra.mxu3 %v5816_v3  ;;  %v2852_v34 = vpack.c.bf16 %v2850_v26, %v2849_v60  ;;  %v3106_v10 = vmul.f32 %v3102_v6, %v6394_v25  ;;  %v3107_v36 = vmul.f32 %v3103_v7, %v6394_v25  ;;  %v5817_v7 = vld [vmem:[#allocation12 + $0x200] sm:$0xff] }
 0x319   :  { %v2827_v39 = vpack.c.bf16 %v2825_v29, %v2824_v28  ;;  %v3012_v40 = vpack.c.bf16 %v3010_v52, %v3009_v31  ;;  %v3299_v2 = vmul.f32 %v3297_v48, %v6384_v53  ;;  %v3395_v37 = vmul.f32 %v3393_v0, %v6384_v53 }
 0x31a   :  { %3183 = vmatmul.bf16.vlgmr.msrb.gmra.mxu0 %v3108_v23  ;;  %v3109_v41 = vpack.c.bf16 %v3107_v36, %v3106_v10  ;;  %v3396_v3 = vmul.f32 %v3394_v62, %v6384_v53  ;;  %v3205_v5 = vpack.c.bf16 %v3202_v59, %v3201_v54  ;;  %v3492_v30 = vmul.f32 %v3490_v4, %v6384_v53 }
 0x31b   :  { %3565 = vmatpush.bf16.msra.mxu0 %v5814_v57  ;;  %v3493_v6 = vmul.f32 %v3491_v1, %v6384_v53  ;;  %v3302_v8 = vpack.c.bf16 %v3299_v2, %v3298_v63  ;;  %v3203_v33 = vmul.f32 %v3199_v11, %v6394_v25  ;;  %v3204_v13 = vmul.f32 %v3200_v46, %v6394_v25 }
 0x31c   :  { %3661 = vmatpush.bf16.msra.mxu1 %v5823_v24  ;;  %5834 = vmatpush.bf16.msra.mxu3 %v5815_v18  ;;  %v3399_v32 = vpack.c.bf16 %v3396_v3, %v3395_v37  ;;  %v3300_v14 = vmul.f32 %v3296_v47, %v6394_v25  ;;  %v3301_v43 = vmul.f32 %v3297_v48, %v6394_v25 }
 0x31d   :  { %v3496_v49 = vpack.c.bf16 %v3493_v6, %v3492_v30  ;;  %v3397_v15 = vmul.f32 %v3393_v0, %v6394_v25  ;;  %v3398_v16 = vmul.f32 %v3394_v62, %v6394_v25  ;;  %v3206_v17 = vpack.c.bf16 %v3204_v13, %v3203_v33  ;;  %v5830_v0 = vld [vmem:[#allocation16 + $0x28] sm:$0xff]  ;;  %v5829_v62 = vld [vmem:[#allocation16 + $0x20] sm:$0xff]  ;;  %v5827_v6 = vld [vmem:[#allocation16 + $0x10] sm:$0xff] }
 0x31e   :  { %v3303_v18 = vpack.c.bf16 %v3301_v43, %v3300_v14  ;;  %v3589_v51 = vmul.f32 %v3587_v20, %v6384_v53  ;;  %v3590_v56 = vmul.f32 %v3588_v21, %v6384_v53  ;;  %v3494_v22 = vmul.f32 %v3490_v4, %v6394_v25  ;;  %v5826_v13 = vld [vmem:[#allocation16 + $0x8] sm:$0xff] }
 0x31f   :  { %3566 = vmatpush.bf16.msra.mxu0 %v5813_v9  ;;  %v3400_v19 = vpack.c.bf16 %v3398_v16, %v3397_v15  ;;  %v3495_v55 = vmul.f32 %v3491_v1, %v6394_v25  ;;  %v3591_v24 = vmul.f32 %v3587_v20, %v6394_v25  ;;  %v5825_v20 = vld [vmem:[#allocation16] sm:$0xff] }
 0x320   :  { %3662 = vmatpush.bf16.msra.mxu1 %v5822_v12  ;;  %5835 = vmatpush.bf16.msra.mxu3 %v5814_v57  ;;  %v3593_v23 = vpack.c.bf16 %v3590_v56, %v3589_v51 }
 0x321   :  { %v3497_v57 = vpack.c.bf16 %v3495_v55, %v3494_v22 }
 0x323   :  { %3567 = vmatpush.bf16.msra.mxu0 %v5812_v27 }
 0x324   :  { %3663 = vmatpush.bf16.msra.mxu1 %v5821_v38  ;;  %5836 = vmatpush.bf16.msra.mxu3 %v5813_v9  ;;  %v3592_v9 = vmul.f32 %v3588_v21, %v6394_v25 }
 0x326   :  { %2931 = vmatmul.bf16.gmra.mxu1 %v2852_v34  ;;  %2998 = vmatmul.bf16.gmra.mxu2 %v2827_v39  ;;  %v3594_v12 = vpack.c.bf16 %v3592_v9, %v3591_v24  ;;  %v5831_v39 = vld [vmem:[#allocation16 + $0x30] sm:$0xff] }
 0x327   :  { %3091 = vmatmul.bf16.gmra.mxu3 %v3012_v40  ;;  %3568 = vmatpush.bf16.msra.mxu0 %v5811_v58  ;;  %v3693_v9 = vld [vmem:[#allocation15] sm:$0xff] }
 0x328   :  { %3664 = vmatpush.bf16.msra.mxu1 %v5820_v50  ;;  %5837 = vmatpush.bf16.msra.mxu3 %v5812_v27 }
 0x32a   :  { %3188 = vmatmul.bf16.gmra.mxu0 %v3109_v41 }
 0x32b   :  { %3569 = vmatpush.bf16.msra.mxu0 %v5810_v42 }
 0x32c   :  { %3665 = vmatpush.bf16.msra.mxu1 %v5819_v45  ;;  %5838 = vmatpush.bf16.msra.mxu3 %v5811_v58  ;;  %v5832_v58 = vld [vmem:[#allocation16 + $0x38] sm:$0xff] }
 0x32d   :  { %3800 = vmatpush.bf16.msra.mxu2 %v5832_v58 }
 0x32f   :  { %3570 = vmatpush.bf16.msra.mxu0 %v5809_v44 }
 0x330   :  { %3666 = vmatpush.bf16.msra.mxu1 %v5818_v61  ;;  %5839 = vmatpush.bf16.msra.mxu3 %v5810_v42 }
 0x331   :  { %3801 = vmatpush.bf16.msra.mxu2 %v5831_v39 }
 0x334   :  { %3667 = vmatpush.bf16.msra.mxu1 %v5817_v7  ;;  %5840 = vmatpush.bf16.msra.mxu3 %v5809_v44 }
 0x335   :  { %3802 = vmatpush.bf16.msra.mxu2 %v5830_v0 }
 0x336   :  { %3280 = vmatmul.bf16.vlgmr.msrb.gmra.mxu1 %v3205_v5  ;;  %3377 = vmatmul.bf16.vlgmr.msrb.gmra.mxu2 %v3302_v8  ;;  %v5828_v5 = vld [vmem:[#allocation16 + $0x18] sm:$0xff] }
 0x337   :  { %3474 = vmatmul.bf16.vlgmr.msrb.gmra.mxu3 %v3399_v32 }
 0x339   :  { %3803 = vmatpush.bf16.msra.mxu2 %v5829_v62 }
 0x33a   :  { %3571 = vmatmul.bf16.vlgmr.msra.gmra.mxu0 %v3496_v49 }
 0x33d   :  { %3804 = vmatpush.bf16.msra.mxu2 %v5828_v5 }
 0x341   :  { %3805 = vmatpush.bf16.msra.mxu2 %v5827_v6 }
 0x345   :  { %3806 = vmatpush.bf16.msra.mxu2 %v5826_v13 }
 0x346   :  { %3285 = vmatmul.bf16.gmra.mxu1 %v3206_v17  ;;  %3382 = vmatmul.bf16.gmra.mxu2 %v3303_v18 }
 0x347   :  { %3479 = vmatmul.bf16.gmra.mxu3 %v3400_v19 }
 0x349   :  { %3807 = vmatpush.bf16.msra.mxu2 %v5825_v20 }
 0x356   :  { %3668 = vmatmul.bf16.vlgmr.msra.gmra.mxu1 %v3593_v23 }
 0x357   :  { %3576 = vmatmul.bf16.vlgmr.msra.gmra.mxu3 %v3497_v57 }
 0x366   :  { %3673 = vmatmul.bf16.gmra.mxu1 %v3594_v12 }
 0x38f   :  { %v2801_v29 = vpop.f32.mrf.mxu0 }
 0x390   :  { %v2802_v40 = vadd.f32 1e-08, %v2801_v29 }
 0x392   :  { %5865 = vrsqrt.f32 %v2802_v40  ;;  %vm2810_vm14 = vweird.f32 %v2802_v40 }
 0x393   :  { %v2927_v60 = vpop.f32.mrf.mxu1 }
 0x397   :  { %v3184_v34 = vpop.f32.mrf.mxu0 }
 0x398   :  { %v5866_v44 = vpop.eup %5865 }
 0x399   :  { %v2994_v27 = vpop.f32.mrf.mxu2  ;;  %v2805_v47 = vmul.f32 %v5866_v44, %v2802_v40  ;;  %vm2811_vm13 = vweird.f32 %v5866_v44  ;;  %v5859_v40 = vld [vmem:[%s6460_s11] ss:$0 sm:$0xff] }
 0x39a   :  { %v3087_v26 = vpop.f32.mrf.mxu3  ;;  %v2995_v48 = vadd.f32 %v2994_v27, %v2927_v60  ;;  %vm2812_vm15 = vmor %vm2810_vm14, %vm2811_vm13 }
 0x39b   :  { %v2929_v28 = vpop.f32.mrf.mxu1  ;;  %v2806_v54 = vmul.f32 %v5866_v44, %v2805_v47  ;;  %v3719_v47 = vmul.f32 %v5859_v40, %v6379_v35 }
 0x39c   :  { %v3097_v59 = vadd.f32 %v3087_v26, %v2995_v48 }
 0x39d   :  { %v2807_v37 = vmul.f32 0.5, %v2806_v54 }
 0x39e   :  { %v3194_v1 = vadd.f32 %v3184_v34, %v3097_v59 }
 0x39f   :  { %v3186_v25 = vpop.f32.mrf.mxu0  ;;  %v2808_v7 = vsub.f32 1.5, %v2807_v37 }
 0x3a1   :  { %v2996_v52 = vpop.f32.mrf.mxu2  ;;  %v2809_v43 = vmul.f32 %v5866_v44, %v2808_v7 }
 0x3a2   :  { %v3089_v53 = vpop.f32.mrf.mxu3  ;;  %v2997_v4 = vadd.f32 %v2996_v52, %v2929_v28 }
 0x3a3   :  { %v2932_v31 = vpop.f32.mrf.mxu1  ;;  %v2813_v21 = vsel %vm2812_vm15, %v5866_v44, %v2809_v43 }
 0x3a4   :  { %v3098_v8 = vadd.f32 %v3089_v53, %v2997_v4  ;;  %v3685_v24 = vperm.slane %v2813_v21, 0  ;;  %v3722_v4 = vperm.slane %v3719_v47, 0 }
 0x3a6   :  { %v3195_v16 = vadd.f32 %v3186_v25, %v3098_v8 }
 0x3a7   :  { %v3189_v11 = vpop.f32.mrf.mxu0 }
 0x3a9   :  { %v2999_v38 = vpop.f32.mrf.mxu2 }
 0x3aa   :  { %v3092_v10 = vpop.f32.mrf.mxu3  ;;  %v3000_v18 = vadd.f32 %v2999_v38, %v2932_v31 }
 0x3ab   :  { %v6424_v36 = vpop.f32.mrf.mxu1 }
 0x3ac   :  { %v3099_v23 = vadd.f32 %v3092_v10, %v3000_v18 }
 0x3ae   :  { %v3196_v28 = vadd.f32 %v3189_v11, %v3099_v23 }
 0x3af   :  { %v3191_v3 = vpop.f32.mrf.mxu0 }
 0x3b1   :  { %v3001_v50 = vpop.f32.mrf.mxu2 }
 0x3b2   :  { %v6426_v41 = vpop.f32.mrf.mxu3  ;;  %v3002_v27 = vadd.f32 %v3001_v50, %v6424_v36  ;;  %v3684_v36 = vrot.slane %v2813_v21, 1 }
 0x3b3   :  { %v3281_v42 = vpop.f32.mrf.mxu1 }
 0x3b4   :  { %v3291_v30 = vadd.f32 %v3281_v42, %v3194_v1  ;;  %v3100_v58 = vadd.f32 %v6426_v41, %v3002_v27  ;;  %v3694_v42 = vld [vmem:[#allocation15 + $0x8] sm:$0xff]  ;;  %v3686_v37 = vperm.slane %v3684_v36, 0 }
 0x3b7   :  { %v3572_v17 = vpop.f32.mrf.mxu0 }
 0x3b9   :  { %v3378_v63 = vpop.f32.mrf.mxu2 }
 0x3ba   :  { %v3475_v45 = vpop.f32.mrf.mxu3  ;;  %v3388_v32 = vadd.f32 %v3378_v63, %v3291_v30 }
 0x3bb   :  { %v3283_v46 = vpop.f32.mrf.mxu1 }
 0x3bc   :  { %v3485_v15 = vadd.f32 %v3475_v45, %v3388_v32  ;;  %v3292_v19 = vadd.f32 %v3283_v46, %v3195_v16  ;;  %v3197_v45 = vadd.f32 %v3191_v3, %v3100_v58  ;;  %v3721_v16 = vrot.slane %v3719_v47, 1 }
 0x3be   :  { %v3582_v56 = vadd.f32 %v3572_v17, %v3485_v15  ;;  %v3723_v20 = vperm.slane %v3721_v16, 0 }
 0x3bf   :  { %v3574_v53 = vpop.f32.mrf.mxu0 }
 0x3c1   :  { %v3380_v14 = vpop.f32.mrf.mxu2 }
 0x3c2   :  { %v3477_v61 = vpop.f32.mrf.mxu3  ;;  %v3389_v51 = vadd.f32 %v3380_v14, %v3292_v19 }
 0x3c3   :  { %v3286_v2 = vpop.f32.mrf.mxu1 }
 0x3c4   :  { %v3486_v12 = vadd.f32 %v3477_v61, %v3389_v51  ;;  %v3293_v31 = vadd.f32 %v3286_v2, %v3196_v28 }
 0x3c6   :  { %v3583_v52 = vadd.f32 %v3574_v53, %v3486_v12 }
 0x3c9   :  { %v3383_v26 = vpop.f32.mrf.mxu2 }
 0x3ca   :  { %v3480_v49 = vpop.f32.mrf.mxu3  ;;  %v3390_v38 = vadd.f32 %v3383_v26, %v3293_v31 }
 0x3cb   :  { %v3288_v33 = vpop.f32.mrf.mxu1 }
 0x3cc   :  { %v3487_v50 = vadd.f32 %v3480_v49, %v3390_v38  ;;  %v3294_v41 = vadd.f32 %v3288_v33, %v3197_v45 }
 0x3d1   :  { %v3385_v48 = vpop.f32.mrf.mxu2 }
 0x3d2   :  { %v3482_v22 = vpop.f32.mrf.mxu3  ;;  %v3391_v61 = vadd.f32 %v3385_v48, %v3294_v41 }
 0x3d3   :  { %v3669_v55 = vpop.f32.mrf.mxu1 }
 0x3d4   :  { %v3679_v57 = vadd.f32 %v3669_v55, %v3582_v56  ;;  %v3488_v7 = vadd.f32 %v3482_v22, %v3391_v61  ;;  %v5860_v55 = vld [vmem:[%s6462_s13] ss:$0 sm:$0xff] }
 0x3d6   :  { %v3689_v60 = vmul.f32 %v3685_v24, %v3679_v57 }
 0x3d8   :  { %v3695_v29 = vadd.f32 %v3693_v9, %v3689_v60 }
 0x3da   :  { %v3703_v39 = vmul.f32 0.2, %v3695_v29  ;;  %vm3699_vm0 = vcmp.ge.f32.partialorder %v3695_v29, 0.0  ;;  %v3577_v25 = vpop.f32.mrf.mxu3 }
 0x3db   :  { %v3671_v34 = vpop.f32.mrf.mxu1  ;;  %v3584_v0 = vadd.f32 %v3577_v25, %v3487_v50 }
 0x3dc   :  { %v3680_v10 = vadd.f32 %v3671_v34, %v3583_v52  ;;  %v3707_v11 = vsel %vm3699_vm0, %v3695_v29, %v3703_v39 }
 0x3dd   :  { %v3711_v54 = vmul.f32 1.4142135, %v3707_v11 }
 0x3de   :  { %v3690_v44 = vmul.f32 %v3685_v24, %v3680_v10 }
 0x3df   :  { %v3726_v30 = vmul.f32 %v3722_v4, %v3711_v54 }
 0x3e0   :  { %v3696_v46 = vadd.f32 %v3694_v42, %v3690_v44 }
 0x3e2   :  { %vm3700_vm1 = vcmp.ge.f32.partialorder %v3696_v46, 0.0  ;;  %v3704_v62 = vmul.f32 0.2, %v3696_v46  ;;  %v3579_v6 = vpop.f32.mrf.mxu3 }
 0x3e3   :  { %v3674_v59 = vpop.f32.mrf.mxu1  ;;  %v3585_v32 = vadd.f32 %v3579_v6, %v3488_v7 }
 0x3e4   :  { %v3708_v63 = vsel %vm3700_vm1, %v3696_v46, %v3704_v62  ;;  %v3681_v2 = vadd.f32 %v3674_v59, %v3584_v0 }
 0x3e5   :  { %v3712_v1 = vmul.f32 1.4142135, %v3708_v63 }
 0x3e6   :  { %v3691_v5 = vmul.f32 %v3686_v37, %v3681_v2 }
 0x3e7   :  { %v3727_v3 = vmul.f32 %v3722_v4, %v3712_v1 }
 0x3e8   :  { %v3697_v8 = vadd.f32 %v3693_v9, %v3691_v5 }
 0x3e9   :  { %v3730_v35 = vpack.c.bf16 %v3727_v3, %v3726_v30 }
 0x3ea   :  { %v3705_v33 = vmul.f32 0.2, %v3697_v8  ;;  %vm3701_vm2 = vcmp.ge.f32.partialorder %v3697_v8, 0.0 }
 0x3eb   :  { %v3676_v49 = vpop.f32.mrf.mxu1  ;;  %3808 = vmatmul.bf16.vlgmr.msra.gmra.mxu2 %v3730_v35 }
 0x3ec   :  { %v3682_v13 = vadd.f32 %v3676_v49, %v3585_v32  ;;  %v3709_v15 = vsel %vm3701_vm2, %v3697_v8, %v3705_v33 }
 0x3ed   :  { %v3713_v18 = vmul.f32 1.4142135, %v3709_v15 }
 0x3ee   :  { %v3692_v14 = vmul.f32 %v3686_v37, %v3682_v13 }
 0x3ef   :  { %v3728_v51 = vmul.f32 %v3723_v20, %v3713_v18 }
 0x3f0   :  { %v3698_v43 = vadd.f32 %v3694_v42, %v3692_v14 }
 0x3f2   :  { %vm3702_vm3 = vcmp.ge.f32.partialorder %v3698_v43, 0.0  ;;  %v3706_v17 = vmul.f32 0.2, %v3698_v43 }
 0x3f4   :  { %v3710_v19 = vsel %vm3702_vm3, %v3698_v43, %v3706_v17 }
 0x3f5   :  { %v3714_v21 = vmul.f32 1.4142135, %v3710_v19 }
 0x3f7   :  { %v3729_v56 = vmul.f32 %v3723_v20, %v3714_v21 }
 0x3f9   :  { %v3731_v22 = vpack.c.bf16 %v3729_v56, %v3728_v51 }
 0x3fb   :  { %3813 = vmatmul.bf16.gmra.mxu2 %v3731_v22 }
 0x46e   :  { %v3809_v23 = vpop.f32.mrf.mxu2 }
 0x46f   :  { %v3810_v57 = vadd.f32 %v5860_v55, %v3809_v23 }
 0x471   :  { %3819 = vst [vmem:[%s6463_s14] sm:$0xff] %v3810_v57 }
 0x476   :  { %v3811_v24 = vpop.f32.mrf.mxu2 }
 0x477   :  { %v3812_v9 = vadd.f32 %v5860_v55, %v3811_v24 }
 0x479   :  { %3820 = vst [vmem:[%s6463_s14 + $0x8] sm:$0xff] %v3812_v9 }
 0x47e   :  { %v3814_v12 = vpop.f32.mrf.mxu2 }
 0x47f   :  { %v3815_v60 = vadd.f32 %v5860_v55, %v3814_v12 }
 0x481   :  { %3821 = vst [vmem:[%s6463_s14 + $0x10] sm:$0xff] %v3815_v60 }
 0x486   :  { %v3816_v26 = vpop.f32.mrf.mxu2 }
 0x487   :  { %v3817_v27 = vadd.f32 %v5860_v55, %v3816_v26 }
 0x489   :  { %3822 = vst [vmem:[%s6463_s14 + $0x18] sm:$0xff] %v3817_v27 }
 0x48a   :  { %3827 = vsyncpa [#allocation3], 1 }
 0x48b   :  { %3828 = vsyncpa [#allocation5], 1 }
 0x48c   :  { %3829 = vsyncpa [#allocation8], 1 }
 0x48d   :  { %3830 = vsyncpa [#allocation11], 1 }
 0x48e   :  { %3831 = vsyncpa [#allocation14], 1 }
 0x48f   :  { %3832 = vsyncpa [#allocation17], 1 }

</bundles_post_ra>
